<compile_context>
chip_gen: v5e
topology: v5e:2x2
jax: 0.10.0
libtpu: 0.0.40
codegen_flags: <defaults>
</compile_context>

<pallas_src>
import functools

import jax
import jax.numpy as jnp
from jax.experimental import pallas as pl
from jax.experimental.pallas import tpu as pltpu


_BN_EPS = 1e-5


# --------------------------- hardware introspection --------------------------- #

def _device_kind():
    try:
        return jax.devices()[0].device_kind.lower()
    except Exception:
        return ""


def _vmem_capacity_bytes():
    try:
        cap = int(getattr(pltpu.get_tpu_info(), "vmem_capacity_bytes", 0))
        if cap > 0:
            return cap
    except Exception:
        pass
    return 64 * 1024 * 1024          # conservative fallback (v7x per-TC)


# ------------------------------- fused kernel --------------------------------- #

def _fused_ir_kernel(*refs, has_expand, use_res, pack, th_out, th_in,
                     w_out, w8, wl, w, pad, stride, dil):
    if has_expand:
        (x_ref, rv_ref, we_ref, be_ref, wd_ref, bd_ref,
         wpj_ref, bpj_ref, o_ref, hid_scr) = refs
    else:
        (x_ref, wd_ref, bd_ref, wpj_ref, bpj_ref, o_ref) = refs
        hid_scr = None

    r = pl.program_id(1)
    row0 = r * (th_out * stride)                 # first padded input row of this tile
    hidden = wd_ref.shape[-1]
    cout = wpj_ref.shape[-1]

    def ds(start, size):                         # stride-fused slice helper
        return pl.ds(start, size) if stride == 1 else pl.ds(start, size, stride)

    if has_expand:
        # --- 1x1 expand (BN scale folded into weights) + bias + ReLU6, interior cols only ---
        xt = x_ref[0, pl.ds(row0, th_in), pl.ds(wl, w8), :]       # (th_in, w8, cin)
        cin = xt.shape[-1]
        hid = jnp.dot(xt.reshape(th_in * w8, cin), we_ref[...],
                      preferred_element_type=jnp.float32)
        hid = jnp.clip(hid + be_ref[...], 0.0, 6.0).reshape(th_in, w8, hidden)
        # Zero rows that are spatial zero-padding (bias + ReLU6 would otherwise leak there).
        rv = rv_ref[pl.ds(row0, th_in), :].reshape(th_in, 1, 1)
        hid = hid * rv
        hid_scr[:, pl.ds(wl, w8), :] = hid.astype(hid_scr.dtype)
        # Zero only the `pad`-wide halo column strips the depthwise taps actually read.
        zstrip = jnp.zeros((th_in, pad, hidden), hid_scr.dtype)
        hid_scr[:, pl.ds(wl - pad, pad), :] = zstrip
        hid_scr[:, pl.ds(wl + w, pad), :] = zstrip

    # --- 3x3 depthwise (BN scale folded into taps), stride fused, + bias + ReLU6 ---
    wd = wd_ref[...]                                              # (3, 3, hidden) f32
    acc = None
    for kh in range(3):
        for kw in range(3):
            if has_expand:
                sub = hid_scr[ds(kh * dil, th_out),
                              ds(wl - pad + kw * dil, w_out), :]
            else:                                 # expand_ratio == 1: taps read x directly
                sub = x_ref[0, ds(row0 + kh * dil, th_out),
                            ds(wl - pad + kw * dil, w_out), :]
            term = sub.astype(jnp.float32) * wd[kh, kw]
            acc = term if acc is None else acc + term
    dw = jnp.clip(acc + bd_ref[...], 0.0, 6.0)                    # (th_out, w_out, hidden)

    # --- 1x1 project (BN scale folded) + bias (+ residual), f32 epilogue ---
    dwm = dw.reshape(th_out * w_out, hidden).astype(wpj_ref.dtype)
    out = jnp.dot(dwm, wpj_ref[...], preferred_element_type=jnp.float32)
    out = (out + bpj_ref[...]).reshape(th_out, w_out, cout)
    if use_res:
        res = x_ref[0, pl.ds(pad + r * th_out, th_out), pl.ds(wl, w_out), :]
        out = out + res.astype(jnp.float32)
    if pack:                                     # lane-dense store: (w_out, cout) -> lanes
        o_ref[0] = out.reshape(th_out, w_out * cout).astype(o_ref.dtype)
    else:
        o_ref[0] = out.astype(o_ref.dtype)


# ------------------------------- host wrappers --------------------------------- #

def _fold_bn(gamma, beta, mean, var):
    scale = gamma / jnp.sqrt(var + _BN_EPS)
    bias = beta - mean * scale
    return scale, bias


def inverted_residual_nhwc(x, params, *, stride, expand_ratio, dilation=1,
                           compute_dtype=jnp.bfloat16):
    """Fused InvertedResidual forward, NHWC in / NHWC out, single pallas_call."""
    n, h, w, cin = x.shape
    hidden = params["w_dw"].shape[-1]
    cout = params["w_proj"].shape[0]
    has_expand = expand_ratio != 1
    use_res = (stride == 1) and (cin == cout)
    out_dtype = x.dtype

    pad = 1 if dilation == 1 else dilation            # ConvBNReLU padding for k=3
    h_out = (h - 1) // stride + 1
    w_out = (w - 1) // stride + 1

    cdt = jnp.dtype(compute_dtype)
    kind = _device_kind()
    scr_dtype = (jnp.bfloat16
                 if (cdt == jnp.dtype(jnp.bfloat16) and ("v6" in kind or "v7" in kind))
                 else jnp.float32)

    # ---- geometry: left pad of 8 keeps every width slice sublane-aligned ----
    wl = ((max(8, pad) + 7) // 8) * 8
    w8 = ((w + 7) // 8) * 8                            # interior cols fed to the expand matmul
    wp_al = ((wl + w + pad + 7) // 8) * 8

    # ---- row tiling: multiple-of-8 th_out, padded output rows, generation-aware budget ----
    cap = _vmem_capacity_bytes()
    scr_item = jnp.dtype(scr_dtype).itemsize
    budget = min(16 * 1024 * 1024, max(4 * 1024 * 1024, cap // 8))
    row_bytes = wp_al * hidden * scr_item
    max_in_rows = max(2 * dilation + 1 + stride, budget // max(1, row_bytes))
    th_out = (max_in_rows - 2 * dilation - 1) // stride + 1
    th_out = max(1, min(th_out, h_out))
    th_out = ((th_out + 7) // 8) * 8
    n_rt = -(-h_out // th_out)
    h_out_pad = n_rt * th_out
    th_in = (th_out - 1) * stride + 2 * dilation + 1
    row0_last = (n_rt - 1) * th_out * stride
    hp = max(h + 2 * pad, row0_last + th_in)

    # Host-side spatial zero-pad of the SMALL (Cin-wide) input, cast to the MXU feed dtype.
    xp = jnp.pad(x, ((0, 0), (pad, hp - h - pad), (wl, wp_al - w - wl), (0, 0))).astype(cdt)

    # Fold BN scales into conv weights (inference BN); only biases go to the kernel.
    if has_expand:
        s1, b1 = _fold_bn(*params["bn1"])
        w_exp = (params["w_expand"].T * s1[None, :]).astype(cdt)           # (Cin, Hid)
        b_exp = b1.reshape(1, hidden).astype(jnp.float32)
        rows = jnp.arange(hp)
        row_valid = ((rows >= pad) & (rows < pad + h)).astype(jnp.float32).reshape(hp, 1)
    s2, b2 = _fold_bn(*params["bn2"])
    w_dw = (params["w_dw"] * s2[None, None, :]).astype(jnp.float32)        # (3,3,Hid) VPU
    b_dw = b2.reshape(1, hidden).astype(jnp.float32)
    s3, b3 = _fold_bn(*params["bn3"])
    w_pj = (params["w_proj"].T * s3[None, :]).astype(cdt)                  # (Hid, Cout)
    b_pj = b3.reshape(1, cout).astype(jnp.float32)

    pack = (cout < 128) and ((w_out * cout) % 128 == 0)

    kern = functools.partial(
        _fused_ir_kernel, has_expand=has_expand, use_res=use_res, pack=pack,
        th_out=th_out, th_in=th_in, w_out=w_out, w8=w8, wl=wl, w=w,
        pad=pad, stride=stride, dil=dilation)

    x_spec = pl.BlockSpec((1, hp, wp_al, cin), lambda b, r: (b, 0, 0, 0))
    wd_spec = pl.BlockSpec((3, 3, hidden), lambda b, r: (0, 0, 0))
    bh_spec = pl.BlockSpec((1, hidden), lambda b, r: (0, 0))
    wp_spec = pl.BlockSpec((hidden, cout), lambda b, r: (0, 0))
    bo_spec = pl.BlockSpec((1, cout), lambda b, r: (0, 0))

    if pack:
        out_shape = jax.ShapeDtypeStruct((n, h_out_pad, w_out * cout), out_dtype)
        o_spec = pl.BlockSpec((1, th_out, w_out * cout), lambda b, r: (b, r, 0))
    else:
        # TODO(synk): lane-pack this path too when (w_out*cout) is not a multiple of 128.
        out_shape = jax.ShapeDtypeStruct((n, h_out_pad, w_out, cout), out_dtype)
        o_spec = pl.BlockSpec((1, th_out, w_out, cout), lambda b, r: (b, r, 0, 0))

    if has_expand:
        rv_spec = pl.BlockSpec((hp, 1), lambda b, r: (0, 0))
        we_spec = pl.BlockSpec((cin, hidden), lambda b, r: (0, 0))
        in_specs = [x_spec, rv_spec, we_spec, bh_spec, wd_spec, bh_spec, wp_spec, bo_spec]
        args = (xp, row_valid, w_exp, b_exp, w_dw, b_dw, w_pj, b_pj)
        scratch = [pltpu.VMEM((th_in, wp_al, hidden), scr_dtype)]
    else:
        in_specs = [x_spec, wd_spec, bh_spec, wp_spec, bo_spec]
        args = (xp, w_dw, b_dw, w_pj, b_pj)
        scratch = []

    # Rough VMEM budget (double-buffered image/output blocks, scratch, f32 intermediates,
    # weights) with headroom below the physical per-core capacity for compiler temporaries.
    it = lambda dt: jnp.dtype(dt).itemsize
    est = (2 * hp * wp_al * cin * it(cdt)
           + 2 * th_out * w_out * cout * it(out_dtype)
           + (th_in * wp_al * hidden * scr_item if has_expand else 0)
           + 5 * th_in * w8 * hidden * 4
           + 4 * th_out * w_out * hidden * 4
           + 2 * (cin * hidden + hidden * cout + 11 * hidden + 2 * cout) * 4
           + (4 << 20))
    vmem_limit = int(min(max(est, 32 << 20), max(32 << 20, cap - (8 << 20))))

    out = pl.pallas_call(
        kern,
        out_shape=out_shape,
        grid=(n, n_rt),
        in_specs=in_specs,
        out_specs=o_spec,
        scratch_shapes=scratch,
        compiler_params=pltpu.CompilerParams(
            dimension_semantics=("parallel", "parallel"),
            vmem_limit_bytes=vmem_limit),
    )(*args)

    if pack:
        out = out.reshape(n, h_out_pad, w_out, cout)
    if h_out_pad != h_out:
        out = out[:, :h_out]
    return out


def inverted_residual_forward(x_nchw, params, *, stride, expand_ratio, dilation=1,
                              compute_dtype=jnp.bfloat16):
    """PyTorch-interface wrapper (NCHW in / NCHW out)."""
    x = jnp.transpose(x_nchw, (0, 2, 3, 1))
    out = inverted_residual_nhwc(x, params, stride=stride, expand_ratio=expand_ratio,
                                 dilation=dilation, compute_dtype=compute_dtype)
    return jnp.transpose(out, (0, 3, 1, 2))


# ----------------------------------- params ------------------------------------ #

def init_params(key, inp, oup, expand_ratio):
    hidden = int(round(inp * expand_ratio))
    keys = jax.random.split(key, 6)

    def bn_init(k, c):
        k1, k2, k3, k4 = jax.random.split(k, 4)
        gamma = 1.0 + 0.1 * jax.random.normal(k1, (c,), jnp.float32)
        beta = 0.1 * jax.random.normal(k2, (c,), jnp.float32)
        mean = 0.1 * jax.random.normal(k3, (c,), jnp.float32)
        var = 1.0 + 0.1 * jax.random.uniform(k4, (c,), jnp.float32)
        return (gamma, beta, mean, var)

    params = {}
    if expand_ratio != 1:
        params["w_expand"] = 0.2 * jax.random.normal(keys[0], (hidden, inp), jnp.float32)
        params["bn1"] = bn_init(keys[1], hidden)
    params["w_dw"] = 0.2 * jax.random.normal(keys[2], (3, 3, hidden), jnp.float32)
    params["bn2"] = bn_init(keys[3], hidden)
    params["w_proj"] = 0.2 * jax.random.normal(keys[4], (oup, hidden), jnp.float32)
    params["bn3"] = bn_init(keys[5], oup)
    return params


# ---------------------------------- reference ----------------------------------- #

def _reference_forward(x_nchw, params, *, stride, expand_ratio, dilation=1):
    def bn_apply(y, bnp):
        g, b, m, v = bnp
        return (y - m) / jnp.sqrt(v + _BN_EPS) * g + b

    x = jnp.transpose(x_nchw, (0, 2, 3, 1))
    hcur = x
    if expand_ratio != 1:
        hcur = jnp.einsum("nhwc,oc->nhwo", hcur, params["w_expand"])
        hcur = jnp.clip(bn_apply(hcur, params["bn1"]), 0.0, 6.0)
    pad = 1 if dilation == 1 else dilation
    hp = jnp.pad(hcur, ((0, 0), (pad, pad), (pad, pad), (0, 0)))
    hh, ww = hcur.shape[1], hcur.shape[2]
    acc = jnp.zeros_like(hcur)
    for kh in range(3):
        for kw in range(3):
            acc = acc + hp[:, kh * dilation:kh * dilation + hh,
                           kw * dilation:kw * dilation + ww, :] * params["w_dw"][kh, kw]
    acc = acc[:, ::stride, ::stride, :]
    acc = jnp.clip(bn_apply(acc, params["bn2"]), 0.0, 6.0)
    out = jnp.einsum("nhwc,oc->nhwo", acc, params["w_proj"])
    out = bn_apply(out, params["bn3"])
    if stride == 1 and x.shape[-1] == out.shape[-1]:
        out = out + x
    return jnp.transpose(out, (0, 3, 1, 2))


# ------------------------------------- main -------------------------------------- #

if __name__ == "__main__":
    key = jax.random.PRNGKey(0)
    keys = jax.random.split(key, 8)

    def run_case(kx, kp, *, n, inp, oup, hw, stride, expand_ratio, compute_dtype):
        x = jax.random.normal(kx, (n, inp, hw, hw), jnp.float32)
        params = init_params(kp, inp, oup, expand_ratio)
        fwd = jax.jit(functools.partial(
            inverted_residual_forward, stride=stride, expand_ratio=expand_ratio,
            dilation=1, compute_dtype=compute_dtype))
        out = jax.block_until_ready(fwd(x, params))
        ref = _reference_forward(x, params, stride=stride, expand_ratio=expand_ratio)
        return out, ref

    # Main config, f32 compute: tight structural check against the pure-JAX reference.
    out, ref = run_case(keys[0], keys[1], n=2, inp=8, oup=8, hw=16, stride=1,
                        expand_ratio=4, compute_dtype=jnp.float32)
    assert out.shape == (2, 8, 16, 16), out.shape
    assert jnp.allclose(out, ref, atol=2e-2, rtol=2e-2), float(jnp.max(jnp.abs(out - ref)))

    # Main config, default bf16 MXU path (f32 accumulation): looser tolerance.
    out_bf, ref_bf = run_case(keys[0], keys[1], n=2, inp=8, oup=8, hw=16, stride=1,
                              expand_ratio=4, compute_dtype=jnp.bfloat16)
    assert out_bf.shape == (2, 8, 16, 16), out_bf.shape
    assert bool(jnp.all(jnp.isfinite(out_bf)))
    assert float(jnp.max(jnp.abs(out_bf - ref_bf))) < 0.25

    # Stride-2 (no residual, strided taps, packed 8x16 output).
    out2, ref2 = run_case(keys[2], keys[3], n=1, inp=8, oup=16, hw=16, stride=2,
                          expand_ratio=4, compute_dtype=jnp.float32)
    assert out2.shape == (1, 16, 8, 8), out2.shape
    assert jnp.allclose(out2, ref2, atol=2e-2, rtol=2e-2)

    # expand_ratio == 1 (no expand conv: taps read the input block directly) + residual.
    out3, ref3 = run_case(keys[4], keys[5], n=1, inp=16, oup=16, hw=16, stride=1,
                          expand_ratio=1, compute_dtype=jnp.float32)
    assert out3.shape == (1, 16, 16, 16), out3.shape
    assert jnp.allclose(out3, ref3, atol=2e-2, rtol=2e-2)

    # 14x14 stage (rows not a multiple of the tile -> padded row tiles, unpacked output).
    out4, ref4 = run_case(keys[6], keys[7], n=1, inp=8, oup=8, hw=14, stride=1,
                          expand_ratio=4, compute_dtype=jnp.float32)
    assert out4.shape == (1, 8, 14, 14), out4.shape
    assert jnp.allclose(out4, ref4, atol=2e-2, rtol=2e-2)

    print("KERNEL_OK")
</pallas_src>

<mosaic_0001>
module attributes {stable_mosaic.version = 11 : i64} {
  func.func @_fused_ir_kernel(%arg0: i32, %arg1: i32, %arg2: memref<1x18x32x8xf32, #tpu.memory_space<vmem>>, %arg3: memref<18x1xf32, #tpu.memory_space<vmem>>, %arg4: memref<8x32xf32, #tpu.memory_space<vmem>>, %arg5: memref<1x32xf32, #tpu.memory_space<vmem>>, %arg6: memref<3x3x32xf32, #tpu.memory_space<vmem>>, %arg7: memref<1x32xf32, #tpu.memory_space<vmem>>, %arg8: memref<32x8xf32, #tpu.memory_space<vmem>>, %arg9: memref<1x8xf32, #tpu.memory_space<vmem>>, %arg10: memref<1x16x128xf32, #tpu.memory_space<vmem>>, %arg11: memref<18x32x32xf32, #tpu.memory_space<vmem>>) attributes {dimension_semantics = [#tpu.dimension_semantics<parallel>, #tpu.dimension_semantics<parallel>], iteration_bounds = array<i64: 2, 1>, scalar_prefetch = 0 : i64, scratch_operands = 1 : i64, tpu.core_type = #tpu.core_type<tc>, window_params = [{transform_indices = @transform_0, window_bounds = array<i64: 1, 18, 32, 8>}, {pipeline_mode = #tpu.pipeline_mode<synchronous>, transform_indices = @transform_1, window_bounds = array<i64: 18, 1>}, {pipeline_mode = #tpu.pipeline_mode<synchronous>, transform_indices = @transform_2, window_bounds = array<i64: 8, 32>}, {pipeline_mode = #tpu.pipeline_mode<synchronous>, transform_indices = @transform_3, window_bounds = array<i64: 1, 32>}, {pipeline_mode = #tpu.pipeline_mode<synchronous>, transform_indices = @transform_4, window_bounds = array<i64: 3, 3, 32>}, {pipeline_mode = #tpu.pipeline_mode<synchronous>, transform_indices = @transform_5, window_bounds = array<i64: 1, 32>}, {pipeline_mode = #tpu.pipeline_mode<synchronous>, transform_indices = @transform_6, window_bounds = array<i64: 32, 8>}, {pipeline_mode = #tpu.pipeline_mode<synchronous>, transform_indices = @transform_7, window_bounds = array<i64: 1, 8>}, {transform_indices = @transform_8, window_bounds = array<i64: 1, 16, 128>}]} {
    %c16_i32 = arith.constant 16 : i32
    %0 = arith.muli %arg1, %c16_i32 : i32
    %c0 = arith.constant 0 : index
    %1 = arith.index_cast %0 : i32 to index
    %c8 = arith.constant 8 : index
    %c0_0 = arith.constant 0 : index
    %2 = vector.load %arg2[%c0, %1, %c8, %c0_0] : memref<1x18x32x8xf32, #tpu.memory_space<vmem>>, vector<1x18x16x8xf32>
    %3 = vector.shape_cast %2 : vector<1x18x16x8xf32> to vector<18x16x8xf32>
    %4 = vector.shape_cast %3 : vector<18x16x8xf32> to vector<288x8xf32>
    %c0_1 = arith.constant 0 : index
    %c0_2 = arith.constant 0 : index
    %5 = vector.load %arg4[%c0_1, %c0_2] : memref<8x32xf32, #tpu.memory_space<vmem>>, vector<8x32xf32>
    %cst = arith.constant dense<0.000000e+00> : vector<288x32xf32>
    %6 = tpu.matmul %4, %5, %cst {dimension_numbers = #tpu.dot_dimension_numbers<[1], [0], [0], [1], [0, 0, 1, 1], [], []>} : vector<288x8xf32>, vector<8x32xf32>, vector<288x32xf32> -> vector<288x32xf32>
    %c0_3 = arith.constant 0 : index
    %c0_4 = arith.constant 0 : index
    %7 = vector.load %arg5[%c0_3, %c0_4] : memref<1x32xf32, #tpu.memory_space<vmem>>, vector<1x32xf32>
    %8 = vector.broadcast %7 : vector<1x32xf32> to vector<288x32xf32>
    %9 = arith.addf %6, %8 : vector<288x32xf32>
    %cst_5 = arith.constant 0.000000e+00 : f32
    %cst_6 = arith.constant 6.000000e+00 : f32
    %10 = vector.broadcast %cst_5 : f32 to vector<288x32xf32>
    %11 = arith.maximumf %10, %9 : vector<288x32xf32>
    %12 = vector.broadcast %cst_6 : f32 to vector<288x32xf32>
    %13 = arith.minimumf %12, %11 : vector<288x32xf32>
    %14 = vector.shape_cast %13 : vector<288x32xf32> to vector<18x16x32xf32>
    %15 = arith.index_cast %0 : i32 to index
    %c0_7 = arith.constant 0 : index
    %16 = vector.load %arg3[%15, %c0_7] : memref<18x1xf32, #tpu.memory_space<vmem>>, vector<18x1xf32>
    %17 = vector.shape_cast %16 : vector<18x1xf32> to vector<18x1x1xf32>
    %18 = vector.broadcast %17 : vector<18x1x1xf32> to vector<18x16x32xf32>
    %19 = arith.mulf %14, %18 : vector<18x16x32xf32>
    %c0_8 = arith.constant 0 : index
    %c8_9 = arith.constant 8 : index
    %c0_10 = arith.constant 0 : index
    %20 = vector.load %arg11[%c0_8, %c8_9, %c0_10] : memref<18x32x32xf32, #tpu.memory_space<vmem>>, vector<18x16x32xf32>
    tpu.vector_store %arg11[%c0_8, %c8_9, %c0_10], %19 {strides = array<i32>} : memref<18x32x32xf32, #tpu.memory_space<vmem>>, vector<18x16x32xf32>,
    %cst_11 = arith.constant 0.000000e+00 : f32
    %21 = vector.broadcast %cst_11 : f32 to vector<18x1x32xf32>
    %c0_12 = arith.constant 0 : index
    %c7 = arith.constant 7 : index
    %c0_13 = arith.constant 0 : index
    %22 = vector.load %arg11[%c0_12, %c7, %c0_13] : memref<18x32x32xf32, #tpu.memory_space<vmem>>, vector<18x1x32xf32>
    tpu.vector_store %arg11[%c0_12, %c7, %c0_13], %21 {strides = array<i32>} : memref<18x32x32xf32, #tpu.memory_space<vmem>>, vector<18x1x32xf32>,
    %c0_14 = arith.constant 0 : index
    %c24 = arith.constant 24 : index
    %c0_15 = arith.constant 0 : index
    %23 = vector.load %arg11[%c0_14, %c24, %c0_15] : memref<18x32x32xf32, #tpu.memory_space<vmem>>, vector<18x1x32xf32>
    tpu.vector_store %arg11[%c0_14, %c24, %c0_15], %21 {strides = array<i32>} : memref<18x32x32xf32, #tpu.memory_space<vmem>>, vector<18x1x32xf32>,
    %c0_16 = arith.constant 0 : index
    %c0_17 = arith.constant 0 : index
    %c0_18 = arith.constant 0 : index
    %24 = vector.load %arg6[%c0_16, %c0_17, %c0_18] : memref<3x3x32xf32, #tpu.memory_space<vmem>>, vector<3x3x32xf32>
    %c0_19 = arith.constant 0 : index
    %c7_20 = arith.constant 7 : index
    %c0_21 = arith.constant 0 : index
    %25 = vector.load %arg11[%c0_19, %c7_20, %c0_21] : memref<18x32x32xf32, #tpu.memory_space<vmem>>, vector<16x16x32xf32>
    %26 = vector.extract_strided_slice %24 {offsets = [0, 0, 0], sizes = [1, 1, 32], strides = [1, 1, 1]} : vector<3x3x32xf32> to vector<1x1x32xf32>
    %27 = vector.shape_cast %26 : vector<1x1x32xf32> to vector<32xf32>
    %28 = vector.shape_cast %27 : vector<32xf32> to vector<1x1x32xf32>
    %29 = vector.broadcast %28 : vector<1x1x32xf32> to vector<16x16x32xf32>
    %30 = arith.mulf %25, %29 : vector<16x16x32xf32>
    %c0_22 = arith.constant 0 : index
    %c8_23 = arith.constant 8 : index
    %c0_24 = arith.constant 0 : index
    %31 = vector.load %arg11[%c0_22, %c8_23, %c0_24] : memref<18x32x32xf32, #tpu.memory_space<vmem>>, vector<16x16x32xf32>
    %32 = vector.extract_strided_slice %24 {offsets = [0, 1, 0], sizes = [1, 1, 32], strides = [1, 1, 1]} : vector<3x3x32xf32> to vector<1x1x32xf32>
    %33 = vector.shape_cast %32 : vector<1x1x32xf32> to vector<32xf32>
    %34 = vector.shape_cast %33 : vector<32xf32> to vector<1x1x32xf32>
    %35 = vector.broadcast %34 : vector<1x1x32xf32> to vector<16x16x32xf32>
    %36 = arith.mulf %31, %35 : vector<16x16x32xf32>
    %37 = arith.addf %30, %36 : vector<16x16x32xf32>
    %c0_25 = arith.constant 0 : index
    %c9 = arith.constant 9 : index
    %c0_26 = arith.constant 0 : index
    %38 = vector.load %arg11[%c0_25, %c9, %c0_26] : memref<18x32x32xf32, #tpu.memory_space<vmem>>, vector<16x16x32xf32>
    %39 = vector.extract_strided_slice %24 {offsets = [0, 2, 0], sizes = [1, 1, 32], strides = [1, 1, 1]} : vector<3x3x32xf32> to vector<1x1x32xf32>
    %40 = vector.shape_cast %39 : vector<1x1x32xf32> to vector<32xf32>
    %41 = vector.shape_cast %40 : vector<32xf32> to vector<1x1x32xf32>
    %42 = vector.broadcast %41 : vector<1x1x32xf32> to vector<16x16x32xf32>
    %43 = arith.mulf %38, %42 : vector<16x16x32xf32>
    %44 = arith.addf %37, %43 : vector<16x16x32xf32>
    %c1 = arith.constant 1 : index
    %c7_27 = arith.constant 7 : index
    %c0_28 = arith.constant 0 : index
    %45 = vector.load %arg11[%c1, %c7_27, %c0_28] : memref<18x32x32xf32, #tpu.memory_space<vmem>>, vector<16x16x32xf32>
    %46 = vector.extract_strided_slice %24 {offsets = [1, 0, 0], sizes = [1, 1, 32], strides = [1, 1, 1]} : vector<3x3x32xf32> to vector<1x1x32xf32>
    %47 = vector.shape_cast %46 : vector<1x1x32xf32> to vector<32xf32>
    %48 = vector.shape_cast %47 : vector<32xf32> to vector<1x1x32xf32>
    %49 = vector.broadcast %48 : vector<1x1x32xf32> to vector<16x16x32xf32>
    %50 = arith.mulf %45, %49 : vector<16x16x32xf32>
    %51 = arith.addf %44, %50 : vector<16x16x32xf32>
    %c1_29 = arith.constant 1 : index
    %c8_30 = arith.constant 8 : index
    %c0_31 = arith.constant 0 : index
    %52 = vector.load %arg11[%c1_29, %c8_30, %c0_31] : memref<18x32x32xf32, #tpu.memory_space<vmem>>, vector<16x16x32xf32>
    %53 = vector.extract_strided_slice %24 {offsets = [1, 1, 0], sizes = [1, 1, 32], strides = [1, 1, 1]} : vector<3x3x32xf32> to vector<1x1x32xf32>
    %54 = vector.shape_cast %53 : vector<1x1x32xf32> to vector<32xf32>
    %55 = vector.shape_cast %54 : vector<32xf32> to vector<1x1x32xf32>
    %56 = vector.broadcast %55 : vector<1x1x32xf32> to vector<16x16x32xf32>
    %57 = arith.mulf %52, %56 : vector<16x16x32xf32>
    %58 = arith.addf %51, %57 : vector<16x16x32xf32>
    %c1_32 = arith.constant 1 : index
    %c9_33 = arith.constant 9 : index
    %c0_34 = arith.constant 0 : index
    %59 = vector.load %arg11[%c1_32, %c9_33, %c0_34] : memref<18x32x32xf32, #tpu.memory_space<vmem>>, vector<16x16x32xf32>
    %60 = vector.extract_strided_slice %24 {offsets = [1, 2, 0], sizes = [1, 1, 32], strides = [1, 1, 1]} : vector<3x3x32xf32> to vector<1x1x32xf32>
    %61 = vector.shape_cast %60 : vector<1x1x32xf32> to vector<32xf32>
    %62 = vector.shape_cast %61 : vector<32xf32> to vector<1x1x32xf32>
    %63 = vector.broadcast %62 : vector<1x1x32xf32> to vector<16x16x32xf32>
    %64 = arith.mulf %59, %63 : vector<16x16x32xf32>
    %65 = arith.addf %58, %64 : vector<16x16x32xf32>
    %c2 = arith.constant 2 : index
    %c7_35 = arith.constant 7 : index
    %c0_36 = arith.constant 0 : index
    %66 = vector.load %arg11[%c2, %c7_35, %c0_36] : memref<18x32x32xf32, #tpu.memory_space<vmem>>, vector<16x16x32xf32>
    %67 = vector.extract_strided_slice %24 {offsets = [2, 0, 0], sizes = [1, 1, 32], strides = [1, 1, 1]} : vector<3x3x32xf32> to vector<1x1x32xf32>
    %68 = vector.shape_cast %67 : vector<1x1x32xf32> to vector<32xf32>
    %69 = vector.shape_cast %68 : vector<32xf32> to vector<1x1x32xf32>
    %70 = vector.broadcast %69 : vector<1x1x32xf32> to vector<16x16x32xf32>
    %71 = arith.mulf %66, %70 : vector<16x16x32xf32>
    %72 = arith.addf %65, %71 : vector<16x16x32xf32>
    %c2_37 = arith.constant 2 : index
    %c8_38 = arith.constant 8 : index
    %c0_39 = arith.constant 0 : index
    %73 = vector.load %arg11[%c2_37, %c8_38, %c0_39] : memref<18x32x32xf32, #tpu.memory_space<vmem>>, vector<16x16x32xf32>
    %74 = vector.extract_strided_slice %24 {offsets = [2, 1, 0], sizes = [1, 1, 32], strides = [1, 1, 1]} : vector<3x3x32xf32> to vector<1x1x32xf32>
    %75 = vector.shape_cast %74 : vector<1x1x32xf32> to vector<32xf32>
    %76 = vector.shape_cast %75 : vector<32xf32> to vector<1x1x32xf32>
    %77 = vector.broadcast %76 : vector<1x1x32xf32> to vector<16x16x32xf32>
    %78 = arith.mulf %73, %77 : vector<16x16x32xf32>
    %79 = arith.addf %72, %78 : vector<16x16x32xf32>
    %c2_40 = arith.constant 2 : index
    %c9_41 = arith.constant 9 : index
    %c0_42 = arith.constant 0 : index
    %80 = vector.load %arg11[%c2_40, %c9_41, %c0_42] : memref<18x32x32xf32, #tpu.memory_space<vmem>>, vector<16x16x32xf32>
    %81 = vector.extract_strided_slice %24 {offsets = [2, 2, 0], sizes = [1, 1, 32], strides = [1, 1, 1]} : vector<3x3x32xf32> to vector<1x1x32xf32>
    %82 = vector.shape_cast %81 : vector<1x1x32xf32> to vector<32xf32>
    %83 = vector.shape_cast %82 : vector<32xf32> to vector<1x1x32xf32>
    %84 = vector.broadcast %83 : vector<1x1x32xf32> to vector<16x16x32xf32>
    %85 = arith.mulf %80, %84 : vector<16x16x32xf32>
    %86 = arith.addf %79, %85 : vector<16x16x32xf32>
    %c0_43 = arith.constant 0 : index
    %c0_44 = arith.constant 0 : index
    %87 = vector.load %arg7[%c0_43, %c0_44] : memref<1x32xf32, #tpu.memory_space<vmem>>, vector<1x32xf32>
    %88 = vector.shape_cast %87 : vector<1x32xf32> to vector<1x1x32xf32>
    %89 = vector.broadcast %88 : vector<1x1x32xf32> to vector<16x16x32xf32>
    %90 = arith.addf %86, %89 : vector<16x16x32xf32>
    %cst_45 = arith.constant 0.000000e+00 : f32
    %cst_46 = arith.constant 6.000000e+00 : f32
    %91 = vector.broadcast %cst_45 : f32 to vector<16x16x32xf32>
    %92 = arith.maximumf %91, %90 : vector<16x16x32xf32>
    %93 = vector.broadcast %cst_46 : f32 to vector<16x16x32xf32>
    %94 = arith.minimumf %93, %92 : vector<16x16x32xf32>
    %95 = vector.shape_cast %94 : vector<16x16x32xf32> to vector<256x32xf32>
    %c0_47 = arith.constant 0 : index
    %c0_48 = arith.constant 0 : index
    %96 = vector.load %arg8[%c0_47, %c0_48] : memref<32x8xf32, #tpu.memory_space<vmem>>, vector<32x8xf32>
    %cst_49 = arith.constant dense<0.000000e+00> : vector<256x8xf32>
    %97 = tpu.matmul %95, %96, %cst_49 {dimension_numbers = #tpu.dot_dimension_numbers<[1], [0], [0], [1], [0, 0, 1, 1], [], []>} : vector<256x32xf32>, vector<32x8xf32>, vector<256x8xf32> -> vector<256x8xf32>
    %c0_50 = arith.constant 0 : index
    %c0_51 = arith.constant 0 : index
    %98 = vector.load %arg9[%c0_50, %c0_51] : memref<1x8xf32, #tpu.memory_space<vmem>>, vector<1x8xf32>
    %99 = vector.broadcast %98 : vector<1x8xf32> to vector<256x8xf32>
    %100 = arith.addf %97, %99 : vector<256x8xf32>
    %101 = vector.shape_cast %100 : vector<256x8xf32> to vector<16x16x8xf32>
    %c16_i32_52 = arith.constant 16 : i32
    %102 = arith.muli %arg1, %c16_i32_52 : i32
    %c1_i32 = arith.constant 1 : i32
    %103 = arith.addi %c1_i32, %102 : i32
    %c0_53 = arith.constant 0 : index
    %104 = arith.index_cast %103 : i32 to index
    %c8_54 = arith.constant 8 : index
    %c0_55 = arith.constant 0 : index
    %105 = vector.load %arg2[%c0_53, %104, %c8_54, %c0_55] : memref<1x18x32x8xf32, #tpu.memory_space<vmem>>, vector<1x16x16x8xf32>
    %106 = vector.shape_cast %105 : vector<1x16x16x8xf32> to vector<16x16x8xf32>
    %107 = arith.addf %101, %106 : vector<16x16x8xf32>
    %108 = vector.shape_cast %107 : vector<16x16x8xf32> to vector<16x128xf32>
    %c0_56 = arith.constant 0 : index
    %c0_57 = arith.constant 0 : index
    %c0_58 = arith.constant 0 : index
    %109 = vector.load %arg10[%c0_56, %c0_57, %c0_58] : memref<1x16x128xf32, #tpu.memory_space<vmem>>, vector<1x16x128xf32>
    %110 = vector.shape_cast %109 : vector<1x16x128xf32> to vector<16x128xf32>
    %111 = vector.shape_cast %108 : vector<16x128xf32> to vector<1x16x128xf32>
    tpu.vector_store %arg10[%c0_56, %c0_57, %c0_58], %111 {strides = array<i32>} : memref<1x16x128xf32, #tpu.memory_space<vmem>>, vector<1x16x128xf32>,
    return
  }
  func.func @transform_0(%arg0: i32, %arg1: i32) -> (i32, i32, i32, i32) {
    %c0_i32 = arith.constant 0 : i32
    %c0_i32_0 = arith.constant 0 : i32
    %c0_i32_1 = arith.constant 0 : i32
    %c0_i32_2 = arith.constant 0 : i32
    return %arg0, %c0_i32, %c0_i32_0, %c0_i32_1 : i32, i32, i32, i32
  }
  func.func @transform_1(%arg0: i32, %arg1: i32) -> (i32, i32) {
    %c0_i32 = arith.constant 0 : i32
    %c0_i32_0 = arith.constant 0 : i32
    %c0_i32_1 = arith.constant 0 : i32
    return %c0_i32, %c0_i32_0 : i32, i32
  }
  func.func @transform_2(%arg0: i32, %arg1: i32) -> (i32, i32) {
    %c0_i32 = arith.constant 0 : i32
    %c0_i32_0 = arith.constant 0 : i32
    %c0_i32_1 = arith.constant 0 : i32
    return %c0_i32, %c0_i32_0 : i32, i32
  }
  func.func @transform_3(%arg0: i32, %arg1: i32) -> (i32, i32) {
    %c0_i32 = arith.constant 0 : i32
    %c0_i32_0 = arith.constant 0 : i32
    %c0_i32_1 = arith.constant 0 : i32
    return %c0_i32, %c0_i32_0 : i32, i32
  }
  func.func @transform_4(%arg0: i32, %arg1: i32) -> (i32, i32, i32) {
    %c0_i32 = arith.constant 0 : i32
    %c0_i32_0 = arith.constant 0 : i32
    %c0_i32_1 = arith.constant 0 : i32
    %c0_i32_2 = arith.constant 0 : i32
    return %c0_i32, %c0_i32_0, %c0_i32_1 : i32, i32, i32
  }
  func.func @transform_5(%arg0: i32, %arg1: i32) -> (i32, i32) {
    %c0_i32 = arith.constant 0 : i32
    %c0_i32_0 = arith.constant 0 : i32
    %c0_i32_1 = arith.constant 0 : i32
    return %c0_i32, %c0_i32_0 : i32, i32
  }
  func.func @transform_6(%arg0: i32, %arg1: i32) -> (i32, i32) {
    %c0_i32 = arith.constant 0 : i32
    %c0_i32_0 = arith.constant 0 : i32
    %c0_i32_1 = arith.constant 0 : i32
    return %c0_i32, %c0_i32_0 : i32, i32
  }
  func.func @transform_7(%arg0: i32, %arg1: i32) -> (i32, i32) {
    %c0_i32 = arith.constant 0 : i32
    %c0_i32_0 = arith.constant 0 : i32
    %c0_i32_1 = arith.constant 0 : i32
    return %c0_i32, %c0_i32_0 : i32, i32
  }
  func.func @transform_8(%arg0: i32, %arg1: i32) -> (i32, i32, i32) {
    %c0_i32 = arith.constant 0 : i32
    %c0_i32_0 = arith.constant 0 : i32
    return %arg0, %arg1, %c0_i32 : i32, i32, i32
  }
}

</mosaic_0001>

<bundles_post_ra>
// kernel: inverted_residual_forward.1
= control target key start
LH: loop header
LB: loop body
LE: loop exit
PB: predicated region body
PF: predicated region fallthrough
CT: control target
= control target key end

     0   :  { %s3090_s27 = smov 0   ;;  %s3092_s28 = smov 0   ;;  %s4439_s0 = inlined_call_operand.vmem [shape: f32[2,18,32,8], index: 0, kind: input, shape index: {}]   ;;  %s4440_s1 = inlined_call_operand.vmem [shape: f32[18,1], index: 1, kind: input, shape index: {}]   ;;  %s4441_s2 = inlined_call_operand.vmem [shape: f32[8,32], index: 2, kind: input, shape index: {}]   ;;  %s4442_s3 = inlined_call_operand.vmem [shape: f32[1,32], index: 3, kind: input, shape index: {}]   ;;  %s4443_s4 = inlined_call_operand.vmem [shape: f32[3,3,32], index: 4, kind: input, shape index: {}]   ;;  %s4444_s5 = inlined_call_operand.vmem [shape: f32[1,32], index: 5, kind: input, shape index: {}]   ;;  %s4445_s6 = inlined_call_operand.vmem [shape: f32[32,8], index: 6, kind: input, shape index: {}]   ;;  %s4446_s7 = inlined_call_operand.vmem [shape: f32[1,8], index: 7, kind: input, shape index: {}]   ;;  %s4447_s8 = inlined_call_operand.vmem [shape: f32[2,16,128], index: 8, kind: output, shape index: {}]  }
   0x1   :  { %s3094_s29 = smov 0  }
   0x2 LB: > { %s30_s30 = sadd.s32 1, %s3020_s28  ;;  %p2838_p0 = scmp.ge.s32.totalorder %s3024_s29, 1  ;;  %s3024_s29 = sphi %s3094_s29, %s18_s29   ;;  %s3020_s28 = sphi %s3092_s28, %s4461_s28   ;;  %s3016_s27 = sphi %s3090_s27, %s4460_s27  }
   0x3   : > { %p32_p1 = scmp.ge.s32.totalorder %s30_s30, 2  ;;  %p276_p2 = scmp.lt.s32.totalorder %s3024_s29, 3 }
   0x5   : > { %s4463_s30 = smov (%p32_p1, %s30_s30), 0  ;;  %p277_p3 = pnand %p2838_p0, %p276_p2 }
   0x7   : > { %280 = sbr.rel (%p277_p3) target bundleno = 727 (0x2d7), region = 52 }
   0xc   : > { %v368_v0 = vld [vmem:[%s4441_s2] sm:$0xff]  ;;  %p314_p4 = scmp.lt.s32.totalorder %s3016_s27, 1  ;;  %v3026_v3 = vmov 0   ;;  %vm373_vm0 = vcmask 64512   ;;  %v681_v24 = vld [vmem:[%s4440_s1 + $0x8] sm:$0xff]  ;;  %vm864_vm1 = vcmask 253952  }
   0xd   : > { %v3114_v1 = vld [vmem:[%s4440_s1] sm:$0xff]  ;;  %497 = vmatpush.msra.mxu0 %v368_v0  ;;  %2945 = vmatpush.msra.mxu2 %v368_v0  ;;  %v709_v25 = vperm.slane %v681_v24, 0  ;;  %v693_v28 = vrot.slane %v681_v24, 1  ;;  %v695_v29 = vrot.slane %v681_v24, 3  ;;  %v694_v34 = vrot.slane %v681_v24, 2  ;;  %s3030_s10 = smov 56  }
   0xe   : > { %v701_v2 = vperm.slane %v3114_v1, 0  ;;  %s4465_s27 = smov (!%p314_p4, %s3016_s27), 1  ;;  %2994 = vset.pattern.permute.xlu0 %v3026_v3  ;;  %2995 = vset.pattern.permute.xlu1 %v3026_v3  ;;  %v686_v4 = vrot.slane %v3114_v1, 1  ;;  %v687_v12 = vrot.slane %v3114_v1, 2  ;;  %v688_v18 = vrot.slane %v3114_v1, 3  ;;  %s3031_s11 = smov 40  }
   0xf   : > { %2996 = vset.pattern.permute.xlu2 %v3026_v3  ;;  %s2950_s13 = smul.u32 576, %s4465_s27  ;;  %v710_v30 = vperm.slane %v693_v28, 0  ;;  %v712_v31 = vperm.slane %v695_v29, 0  ;;  %v690_v35 = vrot.slane %v3114_v1, 5  ;;  %v696_v36 = vrot.slane %v681_v24, 4  ;;  %s3032_s12 = smov 24  }
  0x10   : > { %720 = vperm.xlu0 %2994, %v701_v2   ;;  %v702_v7 = vperm.slane %v686_v4, 0  ;;  %v703_v13 = vperm.slane %v687_v12, 0  ;;  %v704_v19 = vperm.slane %v688_v18, 0  ;;  %v711_v37 = vperm.slane %v694_v34, 0  ;;  %v3185_v54 = vld [vmem:[%s4440_s1 + $0x10] sm:$0x3] }
  0x11   : > { %s3124_s16 = scalar_lea.vmem %s4439_s0, %s2950_s13  ;;  %756 = vperm.xlu2 %2996, %v710_v30   ;;  %v706_v38 = vperm.slane %v690_v35, 0  ;;  %v713_v39 = vperm.slane %v696_v36, 0  ;;  %v689_v42 = vrot.slane %v3114_v1, 4  ;;  %v691_v43 = vrot.slane %v3114_v1, 6  ;;  %s3033_s13 = smov 8  }
  0x12   : > { %v332_v5 = vld [vmem:[%s3124_s16 + $0x8] sm:$0xff]  ;;  %v333_v8 = vld [vmem:[%s3124_s16 + $0x10] sm:$0xff]  ;;  %728 = vperm.xlu1 %2995, %v703_v13   ;;  %v698_v48 = vrot.slane %v681_v24, 6  ;;  %v699_v49 = vrot.slane %v681_v24, 7  ;;  %v717_v57 = vperm.slane %v3185_v54, 0  ;;  %v697_v58 = vrot.slane %v681_v24, 5 }
  0x13   : > { %v350_v6 = vld [vmem:[%s3124_s16 + $0x128] sm:$0xff]  ;;  %2842 = vmatmul.msk.f32.vlgmr.msra.gmra.mxu0 %vm373_vm0, %v332_v5  ;;  %v351_v9 = vld [vmem:[%s3124_s16 + $0x130] sm:$0xff]  ;;  %v705_v44 = vperm.slane %v689_v42, 0  ;;  %v707_v45 = vperm.slane %v691_v43, 0  ;;  %v3027_v62 = vmov 0.0   ;;  %v692_v4 = vrot.slane %v3114_v1, 7 }
  0x14   : > { %2860 = vmatmul.msk.f32.vlgmr.msra.gmra.mxu2 %vm373_vm0, %v350_v6  ;;  %v334_v10 = vld [vmem:[%s3124_s16 + $0x28] sm:$0xff]  ;;  %v335_v14 = vld [vmem:[%s3124_s16 + $0x30] sm:$0xff]  ;;  %v715_v50 = vperm.slane %v698_v48, 0  ;;  %v716_v51 = vperm.slane %v699_v49, 0  ;;  %v714_v59 = vperm.slane %v697_v58, 0  ;;  %vm827_vm2 = vcmask 261120  }
  0x15   : > { %v352_v11 = vld [vmem:[%s3124_s16 + $0x148] sm:$0xff]  ;;  %v353_v15 = vld [vmem:[%s3124_s16 + $0x150] sm:$0xff]  ;;  %865 = vst.msk [vmem:[#allocation2 + $0x7] sm:$0x1] %vm864_vm1, %v3027_v62  ;;  %v708_v5 = vperm.slane %v692_v4, 0  ;;  %vm2132_vm3 = vcmask 1047556  }
  0x16   : > { %v336_v16 = vld [vmem:[%s3124_s16 + $0x48] sm:$0xff]  ;;  %v337_v20 = vld [vmem:[%s3124_s16 + $0x50] sm:$0xff]  ;;  %866 = vst.msk [vmem:[#allocation2 + $0x27] sm:$0x1] %vm864_vm1, %v3027_v62  ;;  %v3248_v1 = vld [vmem:[%s4442_s3] ss:$0 sm:$0xff] }
  0x17   : > { %v354_v17 = vld [vmem:[%s3124_s16 + $0x168] sm:$0xff]  ;;  %v355_v21 = vld [vmem:[%s3124_s16 + $0x170] sm:$0xff]  ;;  %867 = vst.msk [vmem:[#allocation2 + $0x47] sm:$0x1] %vm864_vm1, %v3027_v62  ;;  %v902_v58 = vld [vmem:[%s4443_s4 + $0x4] sm:$0x7] }
  0x18   : > { %724 = vperm.xlu0 %2994, %v702_v7   ;;  %v338_v22 = vld [vmem:[%s3124_s16 + $0x68] sm:$0xff]  ;;  %v339_v26 = vld [vmem:[%s3124_s16 + $0x70] sm:$0xff]  ;;  %868 = vst.msk [vmem:[#allocation2 + $0x67] sm:$0x1] %vm864_vm1, %v3027_v62  ;;  %s3034_s14 = smov 48   ;;  %s3035_s15 = smov 16  }
  0x19   : > { %v356_v23 = vld [vmem:[%s3124_s16 + $0x188] sm:$0xff]  ;;  %v357_v27 = vld [vmem:[%s3124_s16 + $0x190] sm:$0xff]  ;;  %760 = vperm.xlu2 %2996, %v711_v37   ;;  %869 = vst.msk [vmem:[#allocation2 + $0x87] sm:$0x1] %vm864_vm1, %v3027_v62  ;;  %s3036_s17 = smov 32   ;;  %s3037_s18 = smov 72  }
  0x1a   : > { %752 = vperm.xlu1 %2995, %v709_v25   ;;  %v340_v32 = vld [vmem:[%s3124_s16 + $0x88] sm:$0xff]  ;;  %v341_v40 = vld [vmem:[%s3124_s16 + $0x90] sm:$0xff]  ;;  %870 = vst.msk [vmem:[#allocation2 + $0xa7] sm:$0x1] %vm864_vm1, %v3027_v62  ;;  %s3038_s19 = smov 88   ;;  %s3039_s20 = smov 104  }
  0x1b   : > { %2843 = vmatmul.msk.f32.gmra.mxu0 %vm373_vm0, %v333_v8  ;;  %v358_v33 = vld [vmem:[%s3124_s16 + $0x1a8] sm:$0xff]  ;;  %v359_v41 = vld [vmem:[%s3124_s16 + $0x1b0] sm:$0xff]  ;;  %871 = vst.msk [vmem:[#allocation2 + $0xc7] sm:$0x1] %vm864_vm1, %v3027_v62  ;;  %s3040_s21 = smov 96   ;;  %s3041_s22 = smov 112  }
  0x1c   : > { %2861 = vmatmul.msk.f32.gmra.mxu2 %vm373_vm0, %v351_v9  ;;  %v342_v46 = vld [vmem:[%s3124_s16 + $0xa8] sm:$0xff]  ;;  %v343_v52 = vld [vmem:[%s3124_s16 + $0xb0] sm:$0xff]  ;;  %872 = vst.msk [vmem:[#allocation2 + $0xe7] sm:$0x1] %vm864_vm1, %v3027_v62  ;;  %s3042_s23 = smov 80   ;;  %s3043_s24 = smov 64  }
  0x1d   : > { %v360_v47 = vld [vmem:[%s3124_s16 + $0x1c8] sm:$0xff]  ;;  %v361_v53 = vld [vmem:[%s3124_s16 + $0x1d0] sm:$0xff]  ;;  %873 = vst.msk [vmem:[#allocation2 + $0x107] sm:$0x1] %vm864_vm1, %v3027_v62  ;;  %vm2702_vm4 = vcmask 130048   ;;  %vm2705_vm5 = vcmask 195584  }
  0x1e   : > { %v344_v55 = vld [vmem:[%s3124_s16 + $0xc8] sm:$0xff]  ;;  %v345_v60 = vld [vmem:[%s3124_s16 + $0xd0] sm:$0xff]  ;;  %874 = vst.msk [vmem:[#allocation2 + $0x127] sm:$0x1] %vm864_vm1, %v3027_v62  ;;  %vm2710_vm6 = vcmask 326656   ;;  %vm2713_vm7 = vcmask 392192  }
  0x1f   : > { %v362_v56 = vld [vmem:[%s3124_s16 + $0x1e8] sm:$0xff]  ;;  %v363_v61 = vld [vmem:[%s3124_s16 + $0x1f0] sm:$0xff]  ;;  %875 = vst.msk [vmem:[#allocation2 + $0x147] sm:$0x1] %vm864_vm1, %v3027_v62  ;;  %vm2716_vm8 = vcmask 457728   ;;  %vm2719_vm9 = vcmask 523264  }
  0x20   : > { %732 = vperm.xlu0 %2994, %v704_v19   ;;  %v346_v63 = vld [vmem:[%s3124_s16 + $0xe8] sm:$0xff]  ;;  %876 = vst.msk [vmem:[#allocation2 + $0x167] sm:$0x1] %vm864_vm1, %v3027_v62  ;;  %v347_v2 = vld [vmem:[%s3124_s16 + $0xf0] sm:$0xff]  ;;  %vm2722_vm10 = vcmask 588800   ;;  %vm2725_vm11 = vcmask 654336  }
  0x21   : > { %736 = vperm.xlu2 %2996, %v705_v44   ;;  %v364_v0 = vld [vmem:[%s3124_s16 + $0x208] sm:$0xff]  ;;  %877 = vst.msk [vmem:[#allocation2 + $0x187] sm:$0x1] %vm864_vm1, %v3027_v62  ;;  %v365_v3 = vld [vmem:[%s3124_s16 + $0x210] sm:$0xff]  ;;  %vm2728_vm12 = vcmask 719872   ;;  %vm2731_vm13 = vcmask 785408  }
  0x22   : > { %764 = vperm.xlu1 %2995, %v712_v31   ;;  %878 = vst.msk [vmem:[#allocation2 + $0x1a7] sm:$0x1] %vm864_vm1, %v3027_v62  ;;  %v348_v7 = vld [vmem:[%s3124_s16 + $0x108] sm:$0xff]  ;;  %v367_v18 = vld [vmem:[%s3124_s16 + $0x230] sm:$0xff]  ;;  %s2944_s25 = sshll.u32 %s4465_s27, 4  ;;  %vm2734_vm14 = vcmask 850944  }
  0x23   : > { %2844 = vmatmul.msk.f32.gmra.mxu0 %vm373_vm0, %v334_v10  ;;  %879 = vst.msk [vmem:[#allocation2 + $0x1c7] sm:$0x1] %vm864_vm1, %v3027_v62  ;;  %v366_v8 = vld [vmem:[%s3124_s16 + $0x228] sm:$0xff]  ;;  %v1849_v49 = vld [vmem:[%s4445_s6 + $0x10] sm:$0xff]  ;;  %vm2740_vm15 = vcmask 982016  }
  0x24   : > { %2862 = vmatmul.msk.f32.gmra.mxu2 %vm373_vm0, %v352_v11  ;;  %880 = vst.msk [vmem:[#allocation2 + $0x1e7] sm:$0x1] %vm864_vm1, %v3027_v62 }
  0x25   : > { %881 = vst.msk [vmem:[#allocation2 + $0x207] sm:$0x1] %vm864_vm1, %v3027_v62 }
  0x26   : > { %882 = vst.msk [vmem:[#allocation2 + $0x227] sm:$0x1] %vm864_vm1, %v3027_v62 }
  0x27   : > { %883 = vst.msk [vmem:[#allocation2 + $0x18] sm:$0x1] %vm864_vm1, %v3027_v62 }
  0x28   : > { %768 = vperm.xlu0 %2994, %v713_v39   ;;  %884 = vst.msk [vmem:[#allocation2 + $0x38] sm:$0x1] %vm864_vm1, %v3027_v62 }
  0x29   : > { %772 = vperm.xlu2 %2996, %v714_v59   ;;  %885 = vst.msk [vmem:[#allocation2 + $0x58] sm:$0x1] %vm864_vm1, %v3027_v62 }
  0x2a   : > { %740 = vperm.xlu1 %2995, %v706_v38   ;;  %886 = vst.msk [vmem:[#allocation2 + $0x78] sm:$0x1] %vm864_vm1, %v3027_v62 }
  0x2b   : > { %2845 = vmatmul.msk.f32.gmra.mxu0 %vm373_vm0, %v335_v14  ;;  %887 = vst.msk [vmem:[#allocation2 + $0x98] sm:$0x1] %vm864_vm1, %v3027_v62  ;;  %v700_v14 = vrot.slane %v3185_v54, 1 }
  0x2c   : > { %2863 = vmatmul.msk.f32.gmra.mxu2 %vm373_vm0, %v353_v15  ;;  %888 = vst.msk [vmem:[#allocation2 + $0xb8] sm:$0x1] %vm864_vm1, %v3027_v62 }
  0x2d   : > { %889 = vst.msk [vmem:[#allocation2 + $0xd8] sm:$0x1] %vm864_vm1, %v3027_v62  ;;  %v718_v19 = vperm.slane %v700_v14, 0 }
  0x2e   : > { %890 = vst.msk [vmem:[#allocation2 + $0xf8] sm:$0x1] %vm864_vm1, %v3027_v62 }
  0x2f   : > { %891 = vst.msk [vmem:[#allocation2 + $0x118] sm:$0x1] %vm864_vm1, %v3027_v62 }
  0x30   : > { %744 = vperm.xlu0 %2994, %v707_v45   ;;  %892 = vst.msk [vmem:[#allocation2 + $0x138] sm:$0x1] %vm864_vm1, %v3027_v62 }
  0x31   : > { %748 = vperm.xlu2 %2996, %v708_v5   ;;  %893 = vst.msk [vmem:[#allocation2 + $0x158] sm:$0x1] %vm864_vm1, %v3027_v62 }
  0x32   : > { %776 = vperm.xlu1 %2995, %v715_v50   ;;  %894 = vst.msk [vmem:[#allocation2 + $0x178] sm:$0x1] %vm864_vm1, %v3027_v62  ;;  %v901_v50 = vld [vmem:[%s4443_s4] sm:$0x7] }
  0x33   : > { %2846 = vmatmul.msk.f32.gmra.mxu0 %vm373_vm0, %v336_v16  ;;  %895 = vst.msk [vmem:[#allocation2 + $0x198] sm:$0x1] %vm864_vm1, %v3027_v62  ;;  %v3321_v59 = vperm.slane %v901_v50, 0  ;;  %v3330_v4 = vperm.slane %v901_v50, 2 }
  0x34   : > { %2864 = vmatmul.msk.f32.gmra.mxu2 %vm373_vm0, %v354_v17  ;;  %v349_v17 = vld [vmem:[%s3124_s16 + $0x110] sm:$0xff]  ;;  %896 = vst.msk [vmem:[#allocation2 + $0x1b8] sm:$0x1] %vm864_vm1, %v3027_v62 }
  0x35   : > { %897 = vst.msk [vmem:[#allocation2 + $0x1d8] sm:$0x1] %vm864_vm1, %v3027_v62 }
  0x36   : > { %898 = vst.msk [vmem:[#allocation2 + $0x1f8] sm:$0x1] %vm864_vm1, %v3027_v62 }
  0x37   : > { %899 = vst.msk [vmem:[#allocation2 + $0x218] sm:$0x1] %vm864_vm1, %v3027_v62 }
  0x38   : > { %780 = vperm.xlu0 %2994, %v716_v51   ;;  %900 = vst.msk [vmem:[#allocation2 + $0x238] sm:$0x1] %vm864_vm1, %v3027_v62 }
  0x39   : > { %788 = vperm.xlu2 %2996, %v718_v19  }
  0x3a   : > { %784 = vperm.xlu1 %2995, %v717_v57  }
  0x3b   : > { %2847 = vmatmul.msk.f32.gmra.mxu0 %vm373_vm0, %v337_v20 }
  0x3c   : > { %2865 = vmatmul.msk.f32.gmra.mxu2 %vm373_vm0, %v355_v21 }
  0x43   : > { %2848 = vmatmul.msk.f32.gmra.mxu0 %vm373_vm0, %v338_v22 }
  0x44   : > { %2866 = vmatmul.msk.f32.gmra.mxu2 %vm373_vm0, %v356_v23 }
  0x4b   : > { %2849 = vmatmul.msk.f32.gmra.mxu0 %vm373_vm0, %v339_v26 }
  0x4c   : > { %2867 = vmatmul.msk.f32.gmra.mxu2 %vm373_vm0, %v357_v27 }
  0x53   : > { %2850 = vmatmul.msk.f32.gmra.mxu0 %vm373_vm0, %v340_v32 }
  0x54   : > { %2868 = vmatmul.msk.f32.gmra.mxu2 %vm373_vm0, %v358_v33 }
  0x5b   : > { %2851 = vmatmul.msk.f32.gmra.mxu0 %vm373_vm0, %v341_v40 }
  0x5c   : > { %2869 = vmatmul.msk.f32.gmra.mxu2 %vm373_vm0, %v359_v41 }
  0x63   : > { %2852 = vmatmul.msk.f32.gmra.mxu0 %vm373_vm0, %v342_v46  ;;  %v1850_v46 = vld [vmem:[%s4445_s6 + $0x18] sm:$0xff] }
  0x64   : > { %2870 = vmatmul.msk.f32.gmra.mxu2 %vm373_vm0, %v360_v47  ;;  %1963 = vmatpush.msra.mxu1 %v1850_v46 }
  0x65   : > { %2946 = vmatpush.msra.mxu3 %v1850_v46 }
  0x66   : > { %1964 = vmatpush.msra.mxu1 %v1849_v49 }
  0x67   : > { %2947 = vmatpush.msra.mxu3 %v1849_v49 }
  0x6b   : > { %2853 = vmatmul.msk.f32.gmra.mxu0 %vm373_vm0, %v343_v52  ;;  %v757_v37 = vpop.permute.xlu2 %756 }
  0x6c   : > { %2871 = vmatmul.msk.f32.gmra.mxu2 %vm373_vm0, %v361_v53 }
  0x73   : > { %2854 = vmatmul.msk.f32.gmra.mxu0 %vm373_vm0, %v344_v55  ;;  %v1848_v55 = vld [vmem:[%s4445_s6 + $0x8] sm:$0xff]  ;;  %v761_v57 = vpop.permute.xlu2 %760 }
  0x74   : > { %2872 = vmatmul.msk.f32.gmra.mxu2 %vm373_vm0, %v362_v56  ;;  %1965 = vmatpush.msra.mxu1 %v1848_v55 }
  0x75   : > { %2948 = vmatpush.msra.mxu3 %v1848_v55 }
  0x7b   : > { %2855 = vmatmul.msk.f32.gmra.mxu0 %vm373_vm0, %v345_v60  ;;  %v3323_v60 = vperm.slane %v901_v50, 1 }
  0x7c   : > { %2873 = vmatmul.msk.f32.gmra.mxu2 %vm373_vm0, %v363_v61 }
  0x82   : > { %v721_v11 = vpop.permute.xlu0 %720 }
  0x83   : > { %2856 = vmatmul.msk.f32.gmra.mxu0 %vm373_vm0, %v346_v63 }
  0x84   : > { %2874 = vmatmul.msk.f32.gmra.mxu2 %vm373_vm0, %v364_v0  ;;  %v3313_v54 = vpop.permute.xlu1 %728  ;;  %v1847_v0 = vld [vmem:[%s4445_s6] sm:$0xff] }
  0x85   : > { %1966 = vmatpush.msra.mxu1 %v1847_v0  ;;  %2949 = vmatpush.msra.mxu3 %v1847_v0 }
  0x8a   : > { %v725_v34 = vpop.permute.xlu0 %724 }
  0x8b   : > { %2857 = vmatmul.msk.f32.gmra.mxu0 %vm373_vm0, %v347_v2 }
  0x8c   : > { %2875 = vmatmul.msk.f32.gmra.mxu2 %vm373_vm0, %v365_v3 }
  0x90   : > { %v499_v6 = vpop.f32.mrf.mxu0 }
  0x91   : > { %v500_v9 = vadd.f32 %v3248_v1, %v499_v6 }
  0x93   : > { %v607_v10 = vmax.f32 %v500_v9, 0.0  ;;  %2858 = vmatmul.msk.f32.gmra.mxu0 %vm373_vm0, %v348_v7 }
  0x94   : > { %2876 = vmatmul.msk.f32.gmra.mxu2 %vm373_vm0, %v366_v8 }
  0x95   : > { %v643_v12 = vmin.f32 %v607_v10, 6.0 }
  0x97   : > { %v553_v13 = vpop.f32.mrf.mxu2  ;;  %v791_v15 = vmul.f32 %v721_v11, %v643_v12  ;;  %v3335_v12 = vperm.slane %v902_v58, 0 }
  0x98   : > { %v502_v16 = vpop.f32.mrf.mxu0  ;;  %v554_v21 = vadd.f32 %v3248_v1, %v553_v13 }
  0x99   : > { %828 = vst.msk [vmem:[#allocation2 + $0x8] sm:$0xff] %vm827_vm2, %v791_v15  ;;  %v503_v20 = vadd.f32 %v3248_v1, %v502_v16 }
  0x9a   : > { %v625_v25 = vmax.f32 %v554_v21, 0.0 }
  0x9b   : > { %v608_v22 = vmax.f32 %v503_v20, 0.0  ;;  %2859 = vmatmul.msk.f32.gmra.mxu0 %vm373_vm0, %v349_v17 }
  0x9c   : > { %2877 = vmatmul.msk.f32.gmra.mxu2 %vm373_vm0, %v367_v18  ;;  %v661_v31 = vmin.f32 %v625_v25, 6.0 }
  0x9d   : > { %v644_v23 = vmin.f32 %v608_v22, 6.0  ;;  %v3343_v22 = vpop.permute.xlu1 %752 }
  0x9e   : > { %v809_v40 = vmul.f32 %v757_v37, %v661_v31  ;;  %v903_v31 = vld [vmem:[%s4443_s4 + $0x8] sm:$0x7] }
  0x9f   : > { %v556_v24 = vpop.f32.mrf.mxu2  ;;  %v792_v26 = vmul.f32 %v721_v11, %v644_v23 }
  0xa0   : > { %v557_v27 = vadd.f32 %v3248_v1, %v556_v24  ;;  %v505_v28 = vpop.f32.mrf.mxu0  ;;  %846 = vst.msk [vmem:[#allocation2 + $0x128] sm:$0xff] %vm827_vm2, %v809_v40  ;;  %v904_v2 = vld [vmem:[#allocation2 + $0x7] sm:$0xff] }
  0xa1   : > { %829 = vst.msk [vmem:[#allocation2 + $0x10] sm:$0xff] %vm827_vm2, %v792_v26  ;;  %v506_v30 = vadd.f32 %v3248_v1, %v505_v28  ;;  %v969_v3 = vld [vmem:[#allocation2 + $0x8] sm:$0xff]  ;;  %v937_v10 = vmul.f32 %v3321_v59, %v904_v2 }
  0xa2   : > { %v626_v29 = vmax.f32 %v557_v27, 0.0  ;;  %v1002_v11 = vmul.f32 %v3323_v60, %v969_v3  ;;  %v3348_v27 = vperm.slane %v902_v58, 1 }
  0xa3   : > { %v609_v33 = vmax.f32 %v506_v30, 0.0 }
  0xa4   : > { %v662_v32 = vmin.f32 %v626_v29, 6.0  ;;  %v1034_v24 = vadd.f32 %v1002_v11, %v937_v10 }
  0xa5   : > { %v645_v35 = vmin.f32 %v609_v33, 6.0  ;;  %v3353_v33 = vperm.slane %v902_v58, 2 }
  0xa6   : > { %v810_v41 = vmul.f32 %v757_v37, %v662_v32 }
  0xa7   : > { %v559_v36 = vpop.f32.mrf.mxu2  ;;  %v793_v38 = vmul.f32 %v725_v34, %v645_v35 }
  0xa8   : > { %v560_v39 = vadd.f32 %v3248_v1, %v559_v36  ;;  %v508_v42 = vpop.f32.mrf.mxu0  ;;  %847 = vst.msk [vmem:[#allocation2 + $0x130] sm:$0xff] %vm827_vm2, %v810_v41  ;;  %v1066_v7 = vld [vmem:[#allocation2 + $0x9] sm:$0xff]  ;;  %v1067_v28 = vld [vmem:[#allocation2 + $0x11] sm:$0xff] }
  0xa9   : > { %830 = vst.msk [vmem:[#allocation2 + $0x28] sm:$0xff] %vm827_vm2, %v793_v38  ;;  %v509_v44 = vadd.f32 %v3248_v1, %v508_v42  ;;  %v905_v8 = vld [vmem:[#allocation2 + $0xf] sm:$0xff]  ;;  %v1099_v17 = vmul.f32 %v3330_v4, %v1066_v7  ;;  %v3357_v42 = vperm.slane %v903_v31, 0 }
  0xaa   : > { %v627_v43 = vmax.f32 %v560_v39, 0.0  ;;  %v970_v9 = vld [vmem:[#allocation2 + $0x10] sm:$0xff]  ;;  %v938_v18 = vmul.f32 %v3321_v59, %v905_v8  ;;  %v1100_v39 = vmul.f32 %v3330_v4, %v1067_v28 }
  0xab   : > { %v610_v45 = vmax.f32 %v509_v44, 0.0  ;;  %v1003_v19 = vmul.f32 %v3323_v60, %v970_v9  ;;  %v1131_v32 = vadd.f32 %v1099_v17, %v1034_v24  ;;  %v733_v9 = vpop.permute.xlu0 %732  ;;  %v3379_v17 = vperm.slane %v903_v31, 2 }
  0xac   : > { %v663_v47 = vmin.f32 %v627_v43, 6.0 }
  0xad   : > { %v646_v48 = vmin.f32 %v610_v45, 6.0 }
  0xae   : > { %v811_v63 = vmul.f32 %v761_v57, %v663_v47 }
  0xaf   : > { %v562_v51 = vpop.f32.mrf.mxu2  ;;  %v794_v52 = vmul.f32 %v725_v34, %v646_v48  ;;  %v1035_v34 = vadd.f32 %v1003_v19, %v938_v18 }
  0xb0   : > { %v563_v53 = vadd.f32 %v3248_v1, %v562_v51  ;;  %v511_v56 = vpop.f32.mrf.mxu0  ;;  %848 = vst.msk [vmem:[#allocation2 + $0x148] sm:$0xff] %vm827_vm2, %v811_v63  ;;  %v1164_v15 = vld [vmem:[#allocation2 + $0x27] sm:$0xff]  ;;  %v3369_v63 = vperm.slane %v903_v31, 1 }
  0xb1   : > { %831 = vst.msk [vmem:[#allocation2 + $0x30] sm:$0xff] %vm827_vm2, %v794_v52  ;;  %v512_v62 = vadd.f32 %v3248_v1, %v511_v56  ;;  %v1197_v25 = vmul.f32 %v3335_v12, %v1164_v15  ;;  %v1261_v36 = vld [vmem:[#allocation2 + $0x28] sm:$0xff]  ;;  %v1132_v47 = vadd.f32 %v1100_v39, %v1035_v34  ;;  %v939_v7 = vmul.f32 %v1164_v15, %v3321_v59  ;;  %v3398_v39 = vld [vmem:[%s4444_s5] ss:$0 sm:$0xff] }
  0xb2   : > { %v628_v61 = vmax.f32 %v563_v53, 0.0  ;;  %v1294_v45 = vmul.f32 %v3348_v27, %v1261_v36  ;;  %v1004_v8 = vmul.f32 %v1261_v36, %v3323_v60 }
  0xb3   : > { %v611_v6 = vmax.f32 %v512_v62, 0.0  ;;  %v1229_v38 = vadd.f32 %v1197_v25, %v1131_v32 }
  0xb4   : > { %v664_v5 = vmin.f32 %v628_v61, 6.0  ;;  %v765_v61 = vpop.permute.xlu1 %764  ;;  %v1036_v25 = vadd.f32 %v1004_v8, %v939_v7 }
  0xb5   : > { %v647_v13 = vmin.f32 %v611_v6, 6.0  ;;  %v1326_v52 = vadd.f32 %v1294_v45, %v1229_v38 }
  0xb6   : > { %v812_v14 = vmul.f32 %v761_v57, %v664_v5 }
  0xb7   : > { %v565_v16 = vpop.f32.mrf.mxu2  ;;  %v795_v20 = vmul.f32 %v3313_v54, %v647_v13 }
  0xb8   : > { %v566_v21 = vadd.f32 %v3248_v1, %v565_v16  ;;  %849 = vst.msk [vmem:[#allocation2 + $0x150] sm:$0xff] %vm827_vm2, %v812_v14  ;;  %v514_v23 = vpop.f32.mrf.mxu0  ;;  %v1165_v29 = vld [vmem:[#allocation2 + $0x2f] sm:$0xff] }
  0xb9   : > { %832 = vst.msk [vmem:[#allocation2 + $0x48] sm:$0xff] %vm827_vm2, %v795_v20  ;;  %v515_v26 = vadd.f32 %v3248_v1, %v514_v23  ;;  %v1358_v37 = vld [vmem:[#allocation2 + $0x29] sm:$0xff]  ;;  %v1198_v40 = vmul.f32 %v3335_v12, %v1165_v29  ;;  %v1359_v6 = vld [vmem:[#allocation2 + $0x31] sm:$0xff]  ;;  %v940_v13 = vmul.f32 %v1165_v29, %v3321_v59 }
  0xba   : > { %v629_v30 = vmax.f32 %v566_v21, 0.0  ;;  %v1391_v46 = vmul.f32 %v3353_v33, %v1358_v37  ;;  %v1262_v50 = vld [vmem:[#allocation2 + $0x30] sm:$0xff]  ;;  %v1392_v15 = vmul.f32 %v3353_v33, %v1359_v6  ;;  %v1101_v21 = vmul.f32 %v1358_v37, %v3330_v4 }
  0xbb   : > { %v612_v35 = vmax.f32 %v515_v26, 0.0  ;;  %v1230_v55 = vadd.f32 %v1198_v40, %v1132_v47  ;;  %v1005_v14 = vmul.f32 %v1262_v50, %v3323_v60  ;;  %v1102_v45 = vmul.f32 %v1359_v6, %v3330_v4 }
  0xbc   : > { %v665_v43 = vmin.f32 %v629_v30, 6.0  ;;  %v1423_v62 = vadd.f32 %v1391_v46, %v1326_v52 }
  0xbd   : > { %v648_v41 = vmin.f32 %v612_v35, 6.0  ;;  %v1037_v35 = vadd.f32 %v1005_v14, %v940_v13 }
  0xbe   : > { %v813_v0 = vmul.f32 %v765_v61, %v665_v43 }
  0xbf   : > { %v568_v44 = vpop.f32.mrf.mxu2  ;;  %v796_v48 = vmul.f32 %v3313_v54, %v648_v41  ;;  %v1295_v54 = vmul.f32 %v3348_v27, %v1262_v50 }
  0xc0   : > { %v569_v49 = vadd.f32 %v3248_v1, %v568_v44  ;;  %v517_v51 = vpop.f32.mrf.mxu0  ;;  %v3363_v53 = vld [vmem:[#allocation2 + $0x47] sm:$0xff]  ;;  %850 = vst.msk [vmem:[#allocation2 + $0x168] sm:$0xff] %vm827_vm2, %v813_v0  ;;  %v1133_v44 = vadd.f32 %v1101_v21, %v1036_v25 }
  0xc1   : > { %833 = vst.msk [vmem:[#allocation2 + $0x50] sm:$0xff] %vm827_vm2, %v796_v48  ;;  %v518_v57 = vadd.f32 %v3248_v1, %v517_v51  ;;  %v1489_v58 = vmul.f32 %v3357_v42, %v3363_v53  ;;  %v3372_v5 = vld [vmem:[#allocation2 + $0x48] sm:$0xff]  ;;  %v1327_v11 = vadd.f32 %v1295_v54, %v1230_v55  ;;  %v1199_v34 = vmul.f32 %v3363_v53, %v3335_v12  ;;  %v769_v55 = vpop.permute.xlu0 %768 }
  0xc2   : > { %v630_v56 = vmax.f32 %v569_v49, 0.0  ;;  %v1586_v20 = vmul.f32 %v3369_v63, %v3372_v5  ;;  %v1296_v0 = vmul.f32 %v3372_v5, %v3348_v27 }
  0xc3   : > { %v613_v3 = vmax.f32 %v518_v57, 0.0  ;;  %v1521_v10 = vadd.f32 %v1489_v58, %v1423_v62  ;;  %v1424_v30 = vadd.f32 %v1392_v15, %v1327_v11  ;;  %v1231_v52 = vadd.f32 %v1199_v34, %v1133_v44  ;;  %v737_v15 = vpop.permute.xlu2 %736 }
  0xc4   : > { %v666_v2 = vmin.f32 %v630_v56, 6.0  ;;  %v1134_v56 = vadd.f32 %v1102_v45, %v1037_v35  ;;  %v1006_v34 = vmul.f32 %v3372_v5, %v3323_v60 }
  0xc5   : > { %v649_v16 = vmin.f32 %v613_v3, 6.0  ;;  %v1618_v28 = vadd.f32 %v1586_v20, %v1521_v10  ;;  %v1328_v13 = vadd.f32 %v1296_v0, %v1231_v52 }
  0xc6   : > { %v814_v18 = vmul.f32 %v765_v61, %v666_v2 }
  0xc7   : > { %v571_v19 = vpop.f32.mrf.mxu2  ;;  %v797_v23 = vmul.f32 %v733_v9, %v649_v16 }
  0xc8   : > { %v572_v24 = vadd.f32 %v3248_v1, %v571_v19  ;;  %851 = vst.msk [vmem:[#allocation2 + $0x170] sm:$0xff] %vm827_vm2, %v814_v18  ;;  %v520_v26 = vpop.f32.mrf.mxu0  ;;  %v3387_v29 = vld [vmem:[#allocation2 + $0x49] sm:$0xff]  ;;  %v3401_v41 = vld [vmem:[#allocation2 + $0x51] sm:$0xff] }
  0xc9   : > { %v1457_v31 = vld [vmem:[#allocation2 + $0x4f] sm:$0xff]  ;;  %834 = vst.msk [vmem:[#allocation2 + $0x68] sm:$0xff] %vm827_vm2, %v797_v23  ;;  %v521_v37 = vadd.f32 %v3248_v1, %v520_v26  ;;  %v1683_v38 = vmul.f32 %v3379_v17, %v3387_v29  ;;  %v1684_v51 = vmul.f32 %v3379_v17, %v3401_v41  ;;  %v1393_v2 = vmul.f32 %v3387_v29, %v3353_v33 }
  0xca   : > { %v1554_v32 = vld [vmem:[#allocation2 + $0x50] sm:$0xff]  ;;  %v631_v36 = vmax.f32 %v572_v24, 0.0  ;;  %v1490_v40 = vmul.f32 %v3357_v42, %v1457_v31  ;;  %v1200_v46 = vmul.f32 %v1457_v31, %v3335_v12  ;;  %v941_v24 = vmul.f32 %v3363_v53, %v3321_v59 }
  0xcb   : > { %v1587_v43 = vmul.f32 %v3369_v63, %v1554_v32  ;;  %v614_v48 = vmax.f32 %v521_v37, 0.0  ;;  %v1715_v49 = vadd.f32 %v1683_v38, %v1618_v28  ;;  %v1297_v16 = vmul.f32 %v1554_v32, %v3348_v27 }
  0xcc   : > { %v667_v47 = vmin.f32 %v631_v36, 6.0  ;;  %v1522_v50 = vadd.f32 %v1490_v40, %v1424_v30  ;;  %v1232_v3 = vadd.f32 %v1200_v46, %v1134_v56  ;;  %v1425_v21 = vadd.f32 %v1393_v2, %v1328_v13  ;;  %v773_v2 = vpop.permute.xlu2 %772 }
  0xcd   : > { %v650_v57 = vmin.f32 %v614_v48, 6.0  ;;  %v1751_v58 = vadd.f32 %v3398_v39, %v1715_v49  ;;  %v942_v37 = vmul.f32 %v1457_v31, %v3321_v59  ;;  %v1007_v38 = vmul.f32 %v1554_v32, %v3323_v60 }
  0xce   : > { %v1619_v61 = vadd.f32 %v1587_v43, %v1522_v50  ;;  %v815_v62 = vmul.f32 %v769_v55, %v667_v47  ;;  %v1329_v30 = vadd.f32 %v1297_v16, %v1232_v3  ;;  %v1394_v53 = vmul.f32 %v3401_v41, %v3353_v33 }
  0xcf   : > { %v574_v54 = vpop.f32.mrf.mxu2  ;;  %v798_v6 = vmul.f32 %v733_v9, %v650_v57  ;;  %v1783_v8 = vmax.f32 %v1751_v58, 0.0  ;;  %v1103_v46 = vmul.f32 %v3387_v29, %v3330_v4  ;;  %v1038_v48 = vadd.f32 %v1006_v34, %v941_v24 }
  0xd0   : > { %v575_v7 = vadd.f32 %v3248_v1, %v574_v54  ;;  %v1716_v10 = vadd.f32 %v1684_v51, %v1619_v61  ;;  %852 = vst.msk [vmem:[#allocation2 + $0x188] sm:$0xff] %vm827_vm2, %v815_v62  ;;  %v523_v11 = vpop.f32.mrf.mxu0  ;;  %v3415_v14 = vld [vmem:[#allocation2 + $0x67] sm:$0xff]  ;;  %v1426_v31 = vadd.f32 %v1394_v53, %v1329_v30  ;;  %v1039_v57 = vadd.f32 %v1007_v38, %v942_v37 }
  0xd1   : > { %835 = vst.msk [vmem:[#allocation2 + $0x70] sm:$0xff] %vm827_vm2, %v798_v6  ;;  %v524_v19 = vadd.f32 %v3248_v1, %v523_v11  ;;  %v1815_v20 = vmin.f32 %v1783_v8, 6.0  ;;  %v1491_v23 = vmul.f32 %v3357_v42, %v3415_v14  ;;  %v3426_v28 = vld [vmem:[#allocation2 + $0x68] sm:$0xff]  ;;  %v1201_v56 = vmul.f32 %v3415_v14, %v3335_v12 }
  0xd2   : > { %v632_v18 = vmax.f32 %v575_v7, 0.0  ;;  %v1752_v9 = vadd.f32 %v3398_v39, %v1716_v10  ;;  %v1588_v45 = vmul.f32 %v3369_v63, %v3426_v28  ;;  %v1135_v3 = vadd.f32 %v1103_v46, %v1038_v48  ;;  %v741_v46 = vpop.permute.xlu1 %740 }
  0xd3   : > { %v615_v26 = vmax.f32 %v524_v19, 0.0  ;;  %2878 = vmatmul.msk.f32.vlgmr.msra.gmra.mxu1 %vm827_vm2, %v1815_v20  ;;  %v1523_v36 = vadd.f32 %v1491_v23, %v1425_v21  ;;  %v1104_v6 = vmul.f32 %v3401_v41, %v3330_v4  ;;  %v1298_v41 = vmul.f32 %v3426_v28, %v3348_v27 }
  0xd4   : > { %v668_v25 = vmin.f32 %v632_v18, 6.0  ;;  %v1784_v35 = vmax.f32 %v1752_v9, 0.0  ;;  %v1233_v18 = vadd.f32 %v1201_v56, %v1135_v3  ;;  %v1008_v56 = vmul.f32 %v3426_v28, %v3323_v60 }
  0xd5   : > { %v651_v40 = vmin.f32 %v615_v26, 6.0  ;;  %v1620_v50 = vadd.f32 %v1588_v45, %v1523_v36  ;;  %v1136_v19 = vadd.f32 %v1104_v6, %v1039_v57 }
  0xd6   : > { %v816_v43 = vmul.f32 %v769_v55, %v668_v25  ;;  %v1816_v49 = vmin.f32 %v1784_v35, 6.0  ;;  %v1330_v38 = vadd.f32 %v1298_v41, %v1233_v18 }
  0xd7   : > { %v577_v44 = vpop.f32.mrf.mxu2  ;;  %v799_v47 = vmul.f32 %v737_v15, %v651_v40 }
  0xd8   : > { %v578_v5 = vadd.f32 %v3248_v1, %v577_v44  ;;  %853 = vst.msk [vmem:[#allocation2 + $0x190] sm:$0xff] %vm827_vm2, %v816_v43  ;;  %v526_v32 = vpop.f32.mrf.mxu0  ;;  %v3440_v51 = vld [vmem:[#allocation2 + $0x69] sm:$0xff]  ;;  %v3449_v54 = vld [vmem:[#allocation2 + $0x71] sm:$0xff] }
  0xd9   : > { %v1459_v52 = vld [vmem:[#allocation2 + $0x6f] sm:$0xff]  ;;  %836 = vst.msk [vmem:[#allocation2 + $0x88] sm:$0xff] %vm827_vm2, %v799_v47  ;;  %v527_v58 = vadd.f32 %v3248_v1, %v526_v32  ;;  %v1685_v61 = vmul.f32 %v3379_v17, %v3440_v51  ;;  %v1686_v16 = vmul.f32 %v3379_v17, %v3449_v54  ;;  %v1395_v25 = vmul.f32 %v3440_v51, %v3353_v33 }
  0xda   : > { %v1556_v55 = vld [vmem:[#allocation2 + $0x70] sm:$0xff]  ;;  %v633_v29 = vmax.f32 %v578_v5, 0.0  ;;  %v1492_v62 = vmul.f32 %v3357_v42, %v1459_v52  ;;  %v1202_v7 = vmul.f32 %v1459_v52, %v3335_v12  ;;  %v777_v41 = vpop.permute.xlu1 %776 }
  0xdb   : > { %v1589_v0 = vmul.f32 %v3369_v63, %v1556_v55  ;;  %v616_v10 = vmax.f32 %v527_v58, 0.0  ;;  %2879 = vmatmul.msk.f32.gmra.mxu1 %vm827_vm2, %v1816_v49  ;;  %v1717_v11 = vadd.f32 %v1685_v61, %v1620_v50  ;;  %v1299_v43 = vmul.f32 %v1556_v55, %v3348_v27 }
  0xdc   : > { %v669_v8 = vmin.f32 %v633_v29, 6.0  ;;  %v1524_v13 = vadd.f32 %v1492_v62, %v1426_v31  ;;  %v1234_v26 = vadd.f32 %v1202_v7, %v1136_v19  ;;  %v1427_v47 = vadd.f32 %v1395_v25, %v1330_v38 }
  0xdd   : > { %v652_v20 = vmin.f32 %v616_v10, 6.0  ;;  %v1753_v9 = vadd.f32 %v3398_v39, %v1717_v11  ;;  %v943_v31 = vmul.f32 %v3415_v14, %v3321_v59  ;;  %v944_v58 = vmul.f32 %v1459_v52, %v3321_v59 }
  0xde   : > { %v1621_v21 = vadd.f32 %v1589_v0, %v1524_v13  ;;  %v817_v23 = vmul.f32 %v773_v2, %v669_v8  ;;  %v1331_v50 = vadd.f32 %v1299_v43, %v1234_v26  ;;  %v1009_v61 = vmul.f32 %v1556_v55, %v3323_v60 }
  0xdf   : > { %v580_v24 = vpop.f32.mrf.mxu2  ;;  %v800_v30 = vmul.f32 %v737_v15, %v652_v20  ;;  %v1785_v35 = vmax.f32 %v1753_v9, 0.0  ;;  %v1396_v14 = vmul.f32 %v3449_v54, %v3353_v33  ;;  %v1105_v7 = vmul.f32 %v3440_v51, %v3330_v4 }
  0xe0   : > { %v581_v34 = vadd.f32 %v3248_v1, %v580_v24  ;;  %v1718_v36 = vadd.f32 %v1686_v16, %v1621_v21  ;;  %854 = vst.msk [vmem:[#allocation2 + $0x1a8] sm:$0xff] %vm827_vm2, %v817_v23  ;;  %v529_v37 = vpop.f32.mrf.mxu0  ;;  %v3465_v40 = vld [vmem:[#allocation2 + $0x87] sm:$0xff]  ;;  %v1040_v10 = vadd.f32 %v1008_v56, %v943_v31  ;;  %v1041_v20 = vadd.f32 %v1009_v61, %v944_v58 }
  0xe1   : > { %837 = vst.msk [vmem:[#allocation2 + $0x90] sm:$0xff] %vm827_vm2, %v800_v30  ;;  %v530_v44 = vadd.f32 %v3248_v1, %v529_v37  ;;  %v1817_v45 = vmin.f32 %v1785_v35, 6.0  ;;  %v1493_v5 = vmul.f32 %v3357_v42, %v3465_v40  ;;  %v3476_v49 = vld [vmem:[#allocation2 + $0x88] sm:$0xff]  ;;  %v1428_v52 = vadd.f32 %v1396_v14, %v1331_v50 }
  0xe2   : > { %v634_v53 = vmax.f32 %v581_v34, 0.0  ;;  %v1754_v15 = vadd.f32 %v3398_v39, %v1718_v36  ;;  %v1590_v6 = vmul.f32 %v3369_v63, %v3476_v49  ;;  %v1203_v19 = vmul.f32 %v3465_v40, %v3335_v12 }
  0xe3   : > { %v617_v32 = vmax.f32 %v530_v44, 0.0  ;;  %2880 = vmatmul.msk.f32.gmra.mxu1 %vm827_vm2, %v1817_v45  ;;  %v1525_v29 = vadd.f32 %v1493_v5, %v1427_v47  ;;  %v1137_v26 = vadd.f32 %v1105_v7, %v1040_v10  ;;  %v1106_v30 = vmul.f32 %v3449_v54, %v3330_v4 }
  0xe4   : > { %v670_v48 = vmin.f32 %v634_v53, 6.0  ;;  %v1786_v57 = vmax.f32 %v1754_v15, 0.0  ;;  %v1300_v54 = vmul.f32 %v3476_v49, %v3348_v27  ;;  %v945_v14 = vmul.f32 %v3465_v40, %v3321_v59 }
  0xe5   : > { %v653_v62 = vmin.f32 %v617_v32, 6.0  ;;  %v1235_v53 = vadd.f32 %v1203_v19, %v1137_v26  ;;  %v1138_v44 = vadd.f32 %v1106_v30, %v1041_v20  ;;  %v3527_v19 = vld [vmem:[#allocation2 + $0x127] sm:$0xff] }
  0xe6   : > { %v818_v0 = vmul.f32 %v773_v2, %v670_v48  ;;  %v1818_v11 = vmin.f32 %v1786_v57, 6.0  ;;  %v1622_v2 = vadd.f32 %v1590_v6, %v1525_v29 }
  0xe7   : > { %v583_v3 = vpop.f32.mrf.mxu2  ;;  %v801_v8 = vmul.f32 %v741_v46, %v653_v62  ;;  %v1332_v61 = vadd.f32 %v1300_v54, %v1235_v53 }
  0xe8   : > { %v584_v28 = vadd.f32 %v3248_v1, %v583_v3  ;;  %855 = vst.msk [vmem:[#allocation2 + $0x1b0] sm:$0xff] %vm827_vm2, %v818_v0  ;;  %v532_v55 = vpop.f32.mrf.mxu0  ;;  %v1654_v13 = vld [vmem:[#allocation2 + $0x89] sm:$0xff]  ;;  %v3496_v24 = vld [vmem:[#allocation2 + $0x91] sm:$0xff]  ;;  %v1010_v3 = vmul.f32 %v3476_v49, %v3323_v60 }
  0xe9   : > { %v1461_v16 = vld [vmem:[#allocation2 + $0x8f] sm:$0xff]  ;;  %838 = vst.msk [vmem:[#allocation2 + $0xa8] sm:$0xff] %vm827_vm2, %v801_v8  ;;  %v533_v9 = vadd.f32 %v3248_v1, %v532_v55  ;;  %v1687_v21 = vmul.f32 %v3379_v17, %v1654_v13  ;;  %v1688_v43 = vmul.f32 %v3379_v17, %v3496_v24  ;;  %v1397_v48 = vmul.f32 %v1654_v13, %v3353_v33 }
  0xea   : > { %v1558_v18 = vld [vmem:[#allocation2 + $0x90] sm:$0xff]  ;;  %v635_v51 = vmax.f32 %v584_v28, 0.0  ;;  %v1494_v23 = vmul.f32 %v3357_v42, %v1461_v16  ;;  %v1204_v34 = vmul.f32 %v1461_v16, %v3335_v12  ;;  %v3521_v28 = vpop.permute.xlu0 %744  ;;  %v1398_v26 = vmul.f32 %v3496_v24, %v3353_v33 }
  0xeb   : > { %v1591_v25 = vmul.f32 %v3369_v63, %v1558_v18  ;;  %v618_v36 = vmax.f32 %v533_v9, 0.0  ;;  %2881 = vmatmul.msk.f32.gmra.mxu1 %vm827_vm2, %v1818_v11  ;;  %v1719_v37 = vadd.f32 %v1687_v21, %v1622_v2  ;;  %v1301_v0 = vmul.f32 %v1558_v18, %v3348_v27 }
  0xec   : > { %v671_v35 = vmin.f32 %v635_v51, 6.0  ;;  %v1526_v38 = vadd.f32 %v1494_v23, %v1428_v52  ;;  %v1236_v32 = vadd.f32 %v1204_v34, %v1138_v44  ;;  %v1429_v52 = vadd.f32 %v1397_v48, %v1332_v61 }
  0xed   : > { %v654_v45 = vmin.f32 %v618_v36, 6.0  ;;  %v1755_v15 = vadd.f32 %v3398_v39, %v1719_v37  ;;  %v1107_v2 = vmul.f32 %v1654_v13, %v3330_v4  ;;  %v946_v9 = vmul.f32 %v1461_v16, %v3321_v59 }
  0xee   : > { %v819_v47 = vmul.f32 %v777_v41, %v671_v35  ;;  %v1623_v5 = vadd.f32 %v1591_v25, %v1526_v38  ;;  %v1333_v49 = vadd.f32 %v1301_v0, %v1236_v32  ;;  %v1011_v21 = vmul.f32 %v1558_v18, %v3323_v60 }
  0xef   : > { %v586_v31 = vpop.f32.mrf.mxu2  ;;  %v802_v50 = vmul.f32 %v741_v46, %v654_v45  ;;  %v1787_v57 = vmax.f32 %v1755_v15, 0.0  ;;  %v1042_v30 = vadd.f32 %v1010_v3, %v945_v14  ;;  %v3538_v36 = vmul.f32 %v3527_v19, %v3321_v59  ;;  %v3555_v3 = vld [vmem:[#allocation2 + $0x128] sm:$0xff] }
  0xf0   : > { %v587_v56 = vadd.f32 %v3248_v1, %v586_v31  ;;  %856 = vst.msk [vmem:[#allocation2 + $0x1c8] sm:$0xff] %vm827_vm2, %v819_v47  ;;  %v1720_v29 = vadd.f32 %v1688_v43, %v1623_v5  ;;  %v535_v58 = vpop.f32.mrf.mxu0  ;;  %v3511_v62 = vld [vmem:[#allocation2 + $0xa7] sm:$0xff]  ;;  %v1043_v47 = vadd.f32 %v1011_v21, %v946_v9  ;;  %v1108_v5 = vmul.f32 %v3496_v24, %v3330_v4 }
  0xf1   : > { %839 = vst.msk [vmem:[#allocation2 + $0xb0] sm:$0xff] %vm827_vm2, %v802_v50  ;;  %v536_v6 = vadd.f32 %v3248_v1, %v535_v58  ;;  %v1819_v7 = vmin.f32 %v1787_v57, 6.0  ;;  %v1495_v10 = vmul.f32 %v3357_v42, %v3511_v62  ;;  %v1559_v40 = vld [vmem:[#allocation2 + $0xa8] sm:$0xff]  ;;  %v1205_v13 = vmul.f32 %v3511_v62, %v3335_v12 }
  0xf2   : > { %v636_v46 = vmax.f32 %v587_v56, 0.0  ;;  %v1756_v8 = vadd.f32 %v3398_v39, %v1720_v29  ;;  %v1592_v35 = vmul.f32 %v3369_v63, %v1559_v40  ;;  %v1139_v37 = vadd.f32 %v1107_v2, %v1042_v30 }
  0xf3   : > { %v619_v11 = vmax.f32 %v536_v6, 0.0  ;;  %2882 = vmatmul.msk.f32.gmra.mxu1 %vm827_vm2, %v1819_v7  ;;  %v1527_v51 = vadd.f32 %v1495_v10, %v1429_v52  ;;  %v1302_v29 = vmul.f32 %v1559_v40, %v3348_v27  ;;  %v1140_v7 = vadd.f32 %v1108_v5, %v1043_v47 }
  0xf4   : > { %v672_v55 = vmin.f32 %v636_v46, 6.0  ;;  %v1788_v20 = vmax.f32 %v1756_v8, 0.0  ;;  %v1237_v57 = vadd.f32 %v1205_v13, %v1139_v37  ;;  %v781_v46 = vpop.permute.xlu0 %780  ;;  %v947_v8 = vmul.f32 %v3511_v62, %v3321_v59 }
  0xf5   : > { %v655_v23 = vmin.f32 %v619_v11, 6.0  ;;  %v1624_v53 = vadd.f32 %v1592_v35, %v1527_v51  ;;  %v1012_v52 = vmul.f32 %v1559_v40, %v3323_v60  ;;  %v1020_v21 = vmul.f32 %v3555_v3, %v3323_v60 }
  0xf6   : > { %v820_v25 = vmul.f32 %v777_v41, %v672_v55  ;;  %v1430_v41 = vadd.f32 %v1398_v26, %v1333_v49  ;;  %v1820_v43 = vmin.f32 %v1788_v20, 6.0  ;;  %v1334_v20 = vadd.f32 %v1302_v29, %v1237_v57  ;;  %v3569_v26 = vld [vmem:[#allocation2 + $0x129] sm:$0xff]  ;;  %v749_v57 = vpop.permute.xlu2 %748 }
  0xf7   : > { %v589_v34 = vpop.f32.mrf.mxu2  ;;  %v803_v16 = vmul.f32 %v3521_v28, %v655_v23  ;;  %v1044_v13 = vadd.f32 %v1012_v52, %v947_v8  ;;  %v3579_v47 = vadd.f32 %v1020_v21, %v3538_v36  ;;  %v3583_v5 = vmul.f32 %v3569_v26, %v3330_v4 }
  0xf8   : > { %857 = vst.msk [vmem:[#allocation2 + $0x1d0] sm:$0xff] %vm827_vm2, %v820_v25  ;;  %v590_v18 = vadd.f32 %v3248_v1, %v589_v34  ;;  %v538_v38 = vpop.f32.mrf.mxu0  ;;  %v1656_v44 = vld [vmem:[#allocation2 + $0xa9] sm:$0xff]  ;;  %v3549_v50 = vld [vmem:[#allocation2 + $0xb1] sm:$0xff] }
  0xf9   : > { %v1463_v45 = vld [vmem:[#allocation2 + $0xaf] sm:$0xff]  ;;  %840 = vst.msk [vmem:[#allocation2 + $0xc8] sm:$0xff] %vm827_vm2, %v803_v16  ;;  %v539_v54 = vadd.f32 %v3248_v1, %v538_v38  ;;  %v1689_v48 = vmul.f32 %v3379_v17, %v1656_v44  ;;  %v1690_v6 = vmul.f32 %v3379_v17, %v3549_v50  ;;  %v1399_v51 = vmul.f32 %v1656_v44, %v3353_v33 }
  0xfa   : > { %v1560_v15 = vld [vmem:[#allocation2 + $0xb0] sm:$0xff]  ;;  %v637_v31 = vmax.f32 %v590_v18, 0.0  ;;  %v1496_v32 = vmul.f32 %v3357_v42, %v1463_v45  ;;  %v1206_v58 = vmul.f32 %v1463_v45, %v3335_v12  ;;  %v948_v16 = vmul.f32 %v1463_v45, %v3321_v59 }
  0xfb   : > { %v1593_v56 = vmul.f32 %v3369_v63, %v1560_v15  ;;  %v620_v24 = vmax.f32 %v539_v54, 0.0  ;;  %2883 = vmatmul.msk.f32.gmra.mxu1 %vm827_vm2, %v1820_v43  ;;  %v1721_v0 = vadd.f32 %v1689_v48, %v1624_v53  ;;  %v1303_v35 = vmul.f32 %v1560_v15, %v3348_v27 }
  0xfc   : > { %v673_v61 = vmin.f32 %v637_v31, 6.0  ;;  %v1528_v14 = vadd.f32 %v1496_v32, %v1430_v41  ;;  %v1238_v9 = vadd.f32 %v1206_v58, %v1140_v7  ;;  %v1013_v18 = vmul.f32 %v1560_v15, %v3323_v60  ;;  %v3587_v32 = vld [vmem:[#allocation2 + $0x12f] sm:$0xff] }
  0xfd   : > { %v656_v55 = vmin.f32 %v620_v24, 6.0  ;;  %v1757_v11 = vadd.f32 %v3398_v39, %v1721_v0  ;;  %v1431_v43 = vadd.f32 %v1399_v51, %v1334_v20  ;;  %v1109_v48 = vmul.f32 %v1656_v44, %v3330_v4  ;;  %v3595_v24 = vld [vmem:[#allocation2 + $0x148] sm:$0xff] }
  0xfe   : > { %v821_v10 = vmul.f32 %v781_v46, %v673_v61  ;;  %v1625_v49 = vadd.f32 %v1593_v56, %v1528_v14  ;;  %v1335_v54 = vadd.f32 %v1303_v35, %v1238_v9  ;;  %v3589_v56 = vld [vmem:[#allocation2 + $0x147] sm:$0xff]  ;;  %v1045_v58 = vadd.f32 %v1013_v18, %v948_v16  ;;  %4453 = vst [vmem:[#allocation4_spill] sm:$0xff] %v3595_v24 }
  0xff   : > { %v592_v2 = vpop.f32.mrf.mxu2  ;;  %v804_v23 = vmul.f32 %v3521_v28, %v656_v55  ;;  %v1789_v40 = vmax.f32 %v1757_v11, 0.0  ;;  %4452 = vst [vmem:[#allocation3_spill] sm:$0xff] %v3589_v56  ;;  %v3593_v61 = vmul.f32 %v3335_v12, %v3589_v56  ;;  %v3601_v44 = vmul.f32 %v3348_v27, %v3595_v24 }
 0x100   : > { %858 = vst.msk [vmem:[#allocation2 + $0x1e8] sm:$0xff] %vm827_vm2, %v821_v10  ;;  %v593_v62 = vadd.f32 %v3248_v1, %v592_v2  ;;  %v1722_v25 = vadd.f32 %v1690_v6, %v1625_v49  ;;  %v541_v30 = vpop.f32.mrf.mxu0  ;;  %v1464_v34 = vld [vmem:[#allocation2 + $0xc7] sm:$0xff]  ;;  %v1400_v6 = vmul.f32 %v3549_v50, %v3353_v33  ;;  %v1110_v10 = vmul.f32 %v3549_v50, %v3330_v4 }
 0x101   : > { %841 = vst.msk [vmem:[#allocation2 + $0xd0] sm:$0xff] %vm827_vm2, %v804_v23  ;;  %v542_v28 = vadd.f32 %v3248_v1, %v541_v30  ;;  %v1821_v37 = vmin.f32 %v1789_v40, 6.0  ;;  %v1497_v53 = vmul.f32 %v3357_v42, %v1464_v34  ;;  %v1561_v31 = vld [vmem:[#allocation2 + $0xc8] sm:$0xff]  ;;  %v1207_v52 = vmul.f32 %v1464_v34, %v3335_v12 }
 0x102   : > { %v638_v41 = vmax.f32 %v593_v62, 0.0  ;;  %v1758_v38 = vadd.f32 %v3398_v39, %v1722_v25  ;;  %v1594_v8 = vmul.f32 %v3369_v63, %v1561_v31  ;;  %v3609_v55 = vmul.f32 %v3587_v32, %v3321_v59 }
 0x103   : > { %v621_v15 = vmax.f32 %v542_v28, 0.0  ;;  %2884 = vmatmul.msk.f32.gmra.mxu1 %vm827_vm2, %v1821_v37  ;;  %v1529_v36 = vadd.f32 %v1497_v53, %v1431_v43  ;;  %v1432_v49 = vadd.f32 %v1400_v6, %v1335_v54  ;;  %v1141_v2 = vadd.f32 %v1109_v48, %v1044_v13 }
 0x104   : > { %v674_v45 = vmin.f32 %v638_v41, 6.0  ;;  %v1790_v29 = vmax.f32 %v1758_v38, 0.0  ;;  %v1304_v40 = vmul.f32 %v1561_v31, %v3348_v27  ;;  %v1142_v50 = vadd.f32 %v1110_v10, %v1045_v58 }
 0x105   : > { %v657_v14 = vmin.f32 %v621_v15, 6.0  ;;  %v1626_v9 = vadd.f32 %v1594_v8, %v1529_v36  ;;  %v1239_v41 = vadd.f32 %v1207_v52, %v1141_v2  ;;  %v949_v37 = vmul.f32 %v1464_v34, %v3321_v59  ;;  %v785_v15 = vpop.permute.xlu1 %784 }
 0x106   : > { %v822_v0 = vmul.f32 %v781_v46, %v674_v45  ;;  %v1822_v51 = vmin.f32 %v1790_v29, 6.0  ;;  %v1014_v36 = vmul.f32 %v1561_v31, %v3323_v60  ;;  %v3634_v52 = vmul.f32 %v3335_v12, %v3587_v32 }
 0x107   : > { %v595_v7 = vpop.f32.mrf.mxu2  ;;  %v805_v46 = vmul.f32 %v749_v57, %v657_v14 }
 0x108   : > { %859 = vst.msk [vmem:[#allocation2 + $0x1f0] sm:$0xff] %vm827_vm2, %v822_v0  ;;  %v596_v11 = vadd.f32 %v3248_v1, %v595_v7  ;;  %v544_v20 = vpop.f32.mrf.mxu0  ;;  %v1658_v21 = vld [vmem:[#allocation2 + $0xc9] sm:$0xff]  ;;  %v3618_v18 = vld [vmem:[#allocation2 + $0xd1] sm:$0xff]  ;;  %v1336_v7 = vadd.f32 %v1304_v40, %v1239_v41 }
 0x109   : > { %v1465_v23 = vld [vmem:[#allocation2 + $0xcf] sm:$0xff]  ;;  %842 = vst.msk [vmem:[#allocation2 + $0xe8] sm:$0xff] %vm827_vm2, %v805_v46  ;;  %v545_v30 = vadd.f32 %v3248_v1, %v544_v20  ;;  %v1691_v35 = vmul.f32 %v3379_v17, %v1658_v21  ;;  %v1692_v54 = vmul.f32 %v3379_v17, %v3618_v18  ;;  %v1401_v48 = vmul.f32 %v1658_v21, %v3353_v33  ;;  %v3644_v46 = vld [vmem:[%s4442_s3] ss:$0 sm:$0xff] }
 0x10a   : > { %v1562_v62 = vld [vmem:[#allocation2 + $0xd0] sm:$0xff]  ;;  %v639_v25 = vmax.f32 %v596_v11, 0.0  ;;  %v1498_v16 = vmul.f32 %v3357_v42, %v1465_v23  ;;  %v1208_v28 = vmul.f32 %v1465_v23, %v3335_v12  ;;  %v1111_v41 = vmul.f32 %v1658_v21, %v3330_v4 }
 0x10b   : > { %v1595_v13 = vmul.f32 %v3369_v63, %v1562_v62  ;;  %v622_v43 = vmax.f32 %v545_v30, 0.0  ;;  %2885 = vmatmul.msk.f32.gmra.mxu1 %vm827_vm2, %v1822_v51  ;;  %v1723_v53 = vadd.f32 %v1691_v35, %v1626_v9  ;;  %v3624_v1 = vld [vmem:[#allocation2 + $0x130] sm:$0xff]  ;;  %v1305_v8 = vmul.f32 %v1562_v62, %v3348_v27 }
 0x10c   : > { %v675_v38 = vmin.f32 %v639_v25, 6.0  ;;  %v1530_v45 = vadd.f32 %v1498_v16, %v1432_v49  ;;  %v1240_v29 = vadd.f32 %v1208_v28, %v1142_v50  ;;  %v3638_v10 = vmul.f32 %v3624_v1, %v3323_v60 }
 0x10d   : > { %v658_v0 = vmin.f32 %v622_v43, 6.0  ;;  %v1759_v34 = vadd.f32 %v3398_v39, %v1723_v53  ;;  %v1433_v51 = vadd.f32 %v1401_v48, %v1336_v7  ;;  %v1046_v50 = vadd.f32 %v1014_v36, %v949_v37  ;;  %v3660_v43 = vld [vmem:[#allocation2 + $0x14f] sm:$0xff] }
 0x10e   : > { %v823_v58 = vmul.f32 %v785_v15, %v675_v38  ;;  %v1627_v14 = vadd.f32 %v1595_v13, %v1530_v45  ;;  %v1337_v40 = vadd.f32 %v1305_v8, %v1240_v29  ;;  %v3649_v25 = vmul.f32 %v3348_v27, %v3624_v1  ;;  %v3658_v38 = vld [vmem:[#allocation2 + $0x131] sm:$0xff] }
 0x10f   : > { %v598_v6 = vpop.f32.mrf.mxu2  ;;  %v806_v31 = vmul.f32 %v749_v57, %v658_v0  ;;  %v1791_v49 = vmax.f32 %v1759_v34, 0.0  ;;  %v950_v28 = vmul.f32 %v1465_v23, %v3321_v59  ;;  %v1015_v37 = vmul.f32 %v1562_v62, %v3323_v60 }
 0x110   : > { %860 = vst.msk [vmem:[#allocation2 + $0x208] sm:$0xff] %vm827_vm2, %v823_v58  ;;  %v599_v11 = vadd.f32 %v3644_v46, %v598_v6  ;;  %v1724_v2 = vadd.f32 %v1692_v54, %v1627_v14  ;;  %v547_v20 = vpop.f32.mrf.mxu0  ;;  %v1466_v9 = vld [vmem:[#allocation2 + $0xe7] sm:$0xff]  ;;  %v3665_v48 = vmul.f32 %v3353_v33, %v3658_v38  ;;  %v3669_v21 = vmul.f32 %v3357_v42, %v3660_v43  ;;  %v3674_v58 = vld [vmem:[#allocation2 + $0x150] sm:$0xff] }
 0x111   : > { %843 = vst.msk [vmem:[#allocation2 + $0xf0] sm:$0xff] %vm827_vm2, %v806_v31  ;;  %v548_v30 = vadd.f32 %v3644_v46, %v547_v20  ;;  %v1823_v35 = vmin.f32 %v1791_v49, 6.0  ;;  %v1499_v13 = vmul.f32 %v3357_v42, %v1466_v9  ;;  %v1563_v54 = vld [vmem:[#allocation2 + $0xe8] sm:$0xff]  ;;  %v1402_v62 = vmul.f32 %v3618_v18, %v3353_v33 }
 0x112   : > { %v640_v57 = vmax.f32 %v599_v11, 0.0  ;;  %v1760_v16 = vadd.f32 %v3398_v39, %v1724_v2  ;;  %4454 = vst [vmem:[#allocation5_spill] sm:$0xff] %v3669_v21  ;;  %v1209_v36 = vmul.f32 %v1466_v9, %v3335_v12  ;;  %v3678_v14 = vmul.f32 %v3369_v63, %v3674_v58 }
 0x113   : > { %v623_v45 = vmax.f32 %v548_v30, 0.0  ;;  %2886 = vmatmul.msk.f32.gmra.mxu1 %vm827_vm2, %v1823_v35  ;;  %v1531_v29 = vadd.f32 %v1499_v13, %v1433_v51  ;;  %v3682_v6 = vmul.f32 %v3357_v42, %v3527_v19  ;;  %v1596_v8 = vmul.f32 %v3369_v63, %v1563_v54 }
 0x114   : > { %v676_v53 = vmin.f32 %v640_v57, 6.0  ;;  %v1792_v23 = vmax.f32 %v1760_v16, 0.0  ;;  %4455 = vst [vmem:[#allocation6_spill] sm:$0xff] %v3678_v14  ;;  %v1434_v31 = vadd.f32 %v1402_v62, %v1337_v40  ;;  %v1143_v11 = vadd.f32 %v1111_v41, %v1046_v50 }
 0x115   : > { %v659_v34 = vmin.f32 %v623_v45, 6.0  ;;  %v1047_v49 = vadd.f32 %v1015_v37, %v950_v28  ;;  %v1306_v20 = vmul.f32 %v1563_v54, %v3348_v27  ;;  %v1112_v51 = vmul.f32 %v3618_v18, %v3330_v4 }
 0x116   : > { %v824_v0 = vmul.f32 %v785_v15, %v676_v53  ;;  %v1824_v30 = vmin.f32 %v1792_v23, 6.0  ;;  %v1628_v35 = vadd.f32 %v1596_v8, %v1531_v29  ;;  %v1241_v40 = vadd.f32 %v1209_v36, %v1143_v11  ;;  %v789_v8 = vpop.permute.xlu2 %788 }
 0x117   : > { %v601_v7 = vpop.f32.mrf.mxu2  ;;  %v807_v2 = vmul.f32 %v3343_v22, %v659_v34  ;;  %v951_v50 = vmul.f32 %v1466_v9, %v3321_v59  ;;  %v1016_v29 = vmul.f32 %v1563_v54, %v3323_v60  ;;  %v1149_v36 = vadd.f32 %v3583_v5, %v3579_v47 }
 0x118   : > { %861 = vst.msk [vmem:[#allocation2 + $0x210] sm:$0xff] %vm827_vm2, %v824_v0  ;;  %v602_v15 = vadd.f32 %v3644_v46, %v601_v7  ;;  %v550_v57 = vpop.f32.mrf.mxu0  ;;  %v1660_v16 = vld [vmem:[#allocation2 + $0xe9] sm:$0xff]  ;;  %v1661_v62 = vld [vmem:[#allocation2 + $0xf1] sm:$0xff] }
 0x119   : > { %v1467_v13 = vld [vmem:[#allocation2 + $0xef] sm:$0xff]  ;;  %844 = vst.msk [vmem:[#allocation2 + $0x108] sm:$0xff] %vm827_vm2, %v807_v2  ;;  %v551_v28 = vadd.f32 %v3644_v46, %v550_v57  ;;  %v1693_v37 = vmul.f32 %v3379_v17, %v1660_v16  ;;  %v1694_v11 = vmul.f32 %v3379_v17, %v1661_v62  ;;  %v1338_v2 = vadd.f32 %v1306_v20, %v1241_v40 }
 0x11a   : > { %v1564_v53 = vld [vmem:[#allocation2 + $0xf0] sm:$0xff]  ;;  %v641_v41 = vmax.f32 %v602_v15, 0.0  ;;  %v1500_v45 = vmul.f32 %v3357_v42, %v1467_v13  ;;  %v1210_v23 = vmul.f32 %v1467_v13, %v3335_v12  ;;  %v1403_v15 = vmul.f32 %v1660_v16, %v3353_v33 }
 0x11b   : > { %v1597_v18 = vmul.f32 %v3369_v63, %v1564_v53  ;;  %v624_v0 = vmax.f32 %v551_v28, 0.0  ;;  %2887 = vmatmul.msk.f32.gmra.mxu1 %vm827_vm2, %v1824_v30  ;;  %v1725_v34 = vadd.f32 %v1693_v37, %v1628_v35  ;;  %v1144_v57 = vadd.f32 %v1112_v51, %v1047_v49 }
 0x11c   : > { %v677_v9 = vmin.f32 %v641_v41, 6.0  ;;  %v1532_v7 = vadd.f32 %v1500_v45, %v1434_v31  ;;  %v1048_v5 = vadd.f32 %v1016_v29, %v951_v50  ;;  %v1113_v41 = vmul.f32 %v1660_v16, %v3330_v4 }
 0x11d   : > { %v660_v24 = vmin.f32 %v624_v0, 6.0  ;;  %v1761_v54 = vadd.f32 %v3398_v39, %v1725_v34  ;;  %v1242_v47 = vadd.f32 %v1210_v23, %v1144_v57  ;;  %v1247_v30 = vadd.f32 %v3593_v61, %v1149_v36  ;;  %v3735_v34 = vld [vmem:[#allocation2 + $0x167] sm:$0xff] }
 0x11e   : > { %v825_v14 = vmul.f32 %v789_v8, %v677_v9  ;;  %v1629_v56 = vadd.f32 %v1597_v18, %v1532_v7  ;;  %v1435_v51 = vadd.f32 %v1403_v15, %v1338_v2  ;;  %v1307_v28 = vmul.f32 %v1564_v53, %v3348_v27  ;;  %v3742_v57 = vld [vmem:[#allocation2 + $0x168] sm:$0xff] }
 0x11f   : > { %v604_v21 = vpop.f32.mrf.mxu2  ;;  %v808_v31 = vmul.f32 %v3343_v22, %v660_v24  ;;  %v1793_v35 = vmax.f32 %v1761_v54, 0.0  ;;  %v952_v37 = vmul.f32 %v1467_v13, %v3321_v59  ;;  %v1017_v50 = vmul.f32 %v1564_v53, %v3323_v60  ;;  %v3719_v24 = vld [vmem:[#allocation2 + $0x149] sm:$0xff] }
 0x120   : > { %862 = vst.msk [vmem:[#allocation2 + $0x228] sm:$0xff] %vm827_vm2, %v825_v14  ;;  %v605_v20 = vadd.f32 %v3644_v46, %v604_v21  ;;  %v1726_v49 = vadd.f32 %v1694_v11, %v1629_v56  ;;  %v3710_v40 = vld [vmem:[#allocation2 + $0x107] sm:$0xff]  ;;  %v1339_v46 = vadd.f32 %v1307_v28, %v1242_v47  ;;  %v1145_v21 = vadd.f32 %v1113_v41, %v1048_v5 }
 0x121   : > { %845 = vst.msk [vmem:[#allocation2 + $0x110] sm:$0xff] %vm827_vm2, %v808_v31  ;;  %v1825_v16 = vmin.f32 %v1793_v35, 6.0  ;;  %v1501_v22 = vmul.f32 %v3357_v42, %v3710_v40  ;;  %v3721_v56 = vld [vmem:[#allocation2 + $0x108] sm:$0xff]  ;;  %v1211_v13 = vmul.f32 %v3710_v40, %v3335_v12  ;;  %v1409_v53 = vmul.f32 %v3353_v33, %v3719_v24 }
 0x122   : > { %v642_v61 = vmax.f32 %v605_v20, 0.0  ;;  %v1762_v14 = vadd.f32 %v3398_v39, %v1726_v49  ;;  %v1344_v29 = vadd.f32 %v3601_v44, %v1247_v30  ;;  %v1600_v9 = vmul.f32 %v3369_v63, %v3555_v3 }
 0x123   : > { %2888 = vmatmul.msk.f32.gmra.mxu1 %vm827_vm2, %v1825_v16  ;;  %v1533_v23 = vadd.f32 %v1501_v22, %v1435_v51  ;;  %v1243_v36 = vadd.f32 %v1211_v13, %v1145_v21  ;;  %v3733_v0 = vmul.f32 %v3379_v17, %v3569_v26  ;;  %v1049_v7 = vadd.f32 %v1017_v50, %v952_v37 }
 0x124   : > { %v678_v45 = vmin.f32 %v642_v61, 6.0  ;;  %v1794_v18 = vmax.f32 %v1762_v14, 0.0  ;;  %v1598_v2 = vmul.f32 %v3369_v63, %v3721_v56  ;;  %v1404_v15 = vmul.f32 %v1661_v62, %v3353_v33 }
 0x125   : > { %v1507_v44 = vmul.f32 %v3357_v42, %v3735_v34  ;;  %v1308_v54 = vmul.f32 %v3721_v56, %v3348_v27  ;;  %v3748_v47 = vmul.f32 %v3369_v63, %v3742_v57  ;;  %v1114_v5 = vmul.f32 %v1661_v62, %v3330_v4 }
 0x126   : > { %v826_v11 = vmul.f32 %v789_v8, %v678_v45  ;;  %v3753_v8 = vmul.f32 %v3357_v42, %v3587_v32  ;;  %v1826_v41 = vmin.f32 %v1794_v18, 6.0  ;;  %v1630_v30 = vadd.f32 %v1598_v2, %v1533_v23 }
 0x127   : > { %v1436_v31 = vadd.f32 %v1404_v15, %v1339_v46  ;;  %v1441_v20 = vadd.f32 %v1409_v53, %v1344_v29  ;;  %v1340_v28 = vadd.f32 %v1308_v54, %v1243_v36  ;;  %v1146_v37 = vadd.f32 %v1114_v5, %v1049_v7 }
 0x128   : > { %863 = vst.msk [vmem:[#allocation2 + $0x230] sm:$0xff] %vm827_vm2, %v826_v11  ;;  %v1662_v35 = vld [vmem:[#allocation2 + $0x109] sm:$0xff]  ;;  %v1053_v50 = vadd.f32 %v3638_v10, %v3609_v55  ;;  %v1118_v62 = vmul.f32 %v3658_v38, %v3330_v4  ;;  %v1663_v16 = vld [vmem:[#allocation2 + $0x111] sm:$0xff]  ;;  %v1216_v22 = vmul.f32 %v3660_v43, %v3335_v12  ;;  %v1313_v55 = vmul.f32 %v3674_v58, %v3348_v27 }
 0x129   : > { %v1469_v49 = vld [vmem:[#allocation2 + $0x10f] sm:$0xff]  ;;  %v1695_v32 = vmul.f32 %v3379_v17, %v1662_v35  ;;  %v1405_v13 = vmul.f32 %v1662_v35, %v3353_v33  ;;  %v1696_v45 = vmul.f32 %v3379_v17, %v1663_v16  ;;  %v1116_v29 = vmul.f32 %v1663_v16, %v3330_v4 }
 0x12a   : > { %v1566_v51 = vld [vmem:[#allocation2 + $0x110] sm:$0xff]  ;;  %v1502_v61 = vmul.f32 %v3357_v42, %v1469_v49  ;;  %v954_v14 = vmul.f32 %v1469_v49, %v3321_v59  ;;  %v1212_v18 = vmul.f32 %v1469_v49, %v3335_v12  ;;  %v1406_v54 = vmul.f32 %v1663_v16, %v3353_v33 }
 0x12b   : > { %v1599_v46 = vmul.f32 %v3369_v63, %v1566_v51  ;;  %v1019_v21 = vmul.f32 %v1566_v51, %v3323_v60  ;;  %2889 = vmatmul.msk.f32.gmra.mxu1 %vm827_vm2, %v1826_v41  ;;  %v1727_v10 = vadd.f32 %v1695_v32, %v1630_v30  ;;  %v1437_v36 = vadd.f32 %v1405_v13, %v1340_v28 }
 0x12c   : > { %v1534_v53 = vadd.f32 %v1502_v61, %v1436_v31  ;;  %v1309_v7 = vmul.f32 %v1566_v51, %v3348_v27  ;;  %v1244_v15 = vadd.f32 %v1212_v18, %v1146_v37  ;;  %v1150_v30 = vadd.f32 %v1118_v62, %v1053_v50  ;;  %v3780_v61 = vld [vmem:[#allocation2 + $0x151] sm:$0xff] }
 0x12d   : > { %v1051_v23 = vadd.f32 %v1019_v21, %v954_v14  ;;  %v1763_v11 = vadd.f32 %v3398_v39, %v1727_v10  ;;  %v1535_v41 = vadd.f32 %v3682_v6, %v1437_v36  ;;  %v953_v31 = vmul.f32 %v3710_v40, %v3321_v59  ;;  %v3789_v10 = vld [vmem:[#allocation2 + $0x16f] sm:$0xff] }
 0x12e   : > { %v1631_v2 = vadd.f32 %v1599_v46, %v1534_v53  ;;  %v1341_v28 = vadd.f32 %v1309_v7, %v1244_v15  ;;  %v1018_v51 = vmul.f32 %v3721_v56, %v3323_v60  ;;  %v1248_v46 = vadd.f32 %v1216_v22, %v1150_v30 }
 0x12f   : > { %v1148_v5 = vadd.f32 %v1116_v29, %v1051_v23  ;;  %v1795_v49 = vmax.f32 %v1763_v11, 0.0  ;;  %v1632_v37 = vadd.f32 %v1600_v9, %v1535_v41  ;;  %v1410_v16 = vmul.f32 %v3780_v61, %v3353_v33  ;;  %v3809_v29 = vld [vmem:[#allocation2 + $0x170] sm:$0xff]  ;;  %v4459_v41 = vld [vmem:[#allocation6_spill] sm:$0xff] }
 0x130   : > { %v1728_v32 = vadd.f32 %v1696_v45, %v1631_v2  ;;  %v1539_v62 = vadd.f32 %v1507_v44, %v1441_v20  ;;  %v1438_v40 = vadd.f32 %v1406_v54, %v1341_v28  ;;  %v1345_v13 = vadd.f32 %v1313_v55, %v1248_v46  ;;  %v3801_v20 = vld [vmem:[#allocation2 + $0x169] sm:$0xff]  ;;  %v4457_v2 = vld [vmem:[#allocation3_spill] sm:$0xff] }
 0x131   : > { %v1246_v14 = vadd.f32 %v3634_v52, %v1148_v5  ;;  %v1827_v6 = vmin.f32 %v1795_v49, 6.0  ;;  %v1050_v53 = vadd.f32 %v1018_v51, %v953_v31  ;;  %v1115_v56 = vmul.f32 %v1662_v35, %v3330_v4  ;;  %v4458_v54 = vld [vmem:[#allocation4_spill] sm:$0xff] }
 0x132   : > { %v1764_v50 = vadd.f32 %v3398_v39, %v1728_v32  ;;  %v1700_v52 = vmul.f32 %v3379_v17, %v3780_v61  ;;  %v1729_v9 = vadd.f32 %v3733_v0, %v1632_v37  ;;  %v1508_v39 = vmul.f32 %v3357_v42, %v3789_v10 }
 0x133   : > { %v1343_v21 = vadd.f32 %v3649_v25, %v1246_v14  ;;  %2890 = vmatmul.msk.f32.gmra.mxu1 %vm827_vm2, %v1827_v6  ;;  %v1213_v44 = vmul.f32 %v3527_v19, %v3335_v12  ;;  %v1536_v22 = vadd.f32 %v3753_v8, %v1438_v40  ;;  %v1442_v35 = vadd.f32 %v1410_v16, %v1345_v13  ;;  %v4456_v19 = vld [vmem:[#allocation5_spill] sm:$0xff] }
 0x134   : > { %v1147_v55 = vadd.f32 %v1115_v56, %v1050_v53  ;;  %v1796_v45 = vmax.f32 %v1764_v50, 0.0  ;;  %v1636_v18 = vadd.f32 %v3748_v47, %v1539_v62  ;;  %v1701_v0 = vmul.f32 %v3379_v17, %v3801_v20  ;;  %v3819_v47 = vld [vmem:[%s4444_s5] ss:$0 sm:$0xff]  ;;  %v1669_v16 = vld [vmem:[#allocation2 + $0x171] sm:$0xff] }
 0x135   : > { %v1440_v25 = vadd.f32 %v3665_v48, %v1343_v21  ;;  %v1601_v23 = vmul.f32 %v3369_v63, %v3624_v1  ;;  %v1605_v48 = vmul.f32 %v3369_v63, %v3809_v29  ;;  %v1310_v8 = vmul.f32 %v3555_v3, %v3348_v27 }
 0x136   : > { %v1245_v7 = vadd.f32 %v1213_v44, %v1147_v55  ;;  %v1765_v11 = vadd.f32 %v3819_v47, %v1729_v9  ;;  %v1407_v1 = vmul.f32 %v3569_v26, %v3353_v33  ;;  %v957_v15 = vmul.f32 %v4457_v2, %v3321_v59  ;;  %v3842_v9 = vld [vmem:[#allocation2 + $0x187] sm:$0xff] }
 0x137   : > { %v1538_v36 = vadd.f32 %v4456_v19, %v1440_v25  ;;  %v1022_v5 = vmul.f32 %v4458_v54, %v3323_v60  ;;  %v1633_v31 = vadd.f32 %v1601_v23, %v1536_v22  ;;  %v1540_v3 = vadd.f32 %v1508_v39, %v1442_v35 }
 0x138   : > { %v1342_v49 = vadd.f32 %v1310_v8, %v1245_v7  ;;  %v1828_v32 = vmin.f32 %v1796_v45, 6.0  ;;  %v1119_v51 = vmul.f32 %v3719_v24, %v3330_v4  ;;  %v1217_v14 = vmul.f32 %v3735_v34, %v3335_v12 }
 0x139   : > { %v1635_v30 = vadd.f32 %v4459_v41, %v1538_v36  ;;  %v1054_v28 = vadd.f32 %v1022_v5, %v957_v15  ;;  %v1733_v37 = vadd.f32 %v1701_v0, %v1636_v18  ;;  %v1698_v46 = vmul.f32 %v3379_v17, %v3658_v38 }
 0x13a   : > { %v1439_v6 = vadd.f32 %v1407_v1, %v1342_v49  ;;  %v1702_v50 = vmul.f32 %v3379_v17, %v1669_v16  ;;  %v1505_v62 = vmul.f32 %v3357_v42, %v4457_v2  ;;  %v1314_v21 = vmul.f32 %v3742_v57, %v3348_v27 }
 0x13b   : > { %v1732_v26 = vadd.f32 %v1700_v52, %v1635_v30  ;;  %2891 = vmatmul.msk.f32.gmra.mxu1 %vm827_vm2, %v1828_v32  ;;  %v1151_v40 = vadd.f32 %v1119_v51, %v1054_v28  ;;  %v1797_v53 = vmax.f32 %v1765_v11, 0.0  ;;  %v1730_v56 = vadd.f32 %v1698_v46, %v1633_v31  ;;  %v1670_v30 = vld [vmem:[#allocation2 + $0x189] sm:$0xff] }
 0x13c   : > { %v1637_v52 = vadd.f32 %v1605_v48, %v1540_v3  ;;  %v1537_v38 = vadd.f32 %v1505_v62, %v1439_v6  ;;  %v1411_v44 = vmul.f32 %v3801_v20, %v3353_v33  ;;  %v958_v25 = vmul.f32 %v3660_v43, %v3321_v59  ;;  %v1573_v43 = vld [vmem:[#allocation2 + $0x188] sm:$0xff] }
 0x13d   : > { %v1768_v13 = vadd.f32 %v3819_v47, %v1732_v26  ;;  %v1249_v39 = vadd.f32 %v1217_v14, %v1151_v40  ;;  %v1769_v35 = vadd.f32 %v3819_v47, %v1733_v37  ;;  %v1023_v55 = vmul.f32 %v3674_v58, %v3323_v60  ;;  %v1477_v14 = vld [vmem:[#allocation2 + $0x18f] sm:$0xff] }
 0x13e   : > { %v1602_v45 = vmul.f32 %v3369_v63, %v4458_v54  ;;  %v1509_v0 = vmul.f32 %v3357_v42, %v3842_v9  ;;  %v1120_v23 = vmul.f32 %v3780_v61, %v3330_v4  ;;  %v1766_v36 = vadd.f32 %v3819_v47, %v1730_v56 }
 0x13f   : > { %v1800_v22 = vmax.f32 %v1768_v13, 0.0  ;;  %v1346_v18 = vadd.f32 %v1314_v21, %v1249_v39  ;;  %v1055_v48 = vadd.f32 %v1023_v55, %v958_v25  ;;  %v1218_v7 = vmul.f32 %v3789_v10, %v3335_v12  ;;  %v1574_v39 = vld [vmem:[#allocation2 + $0x190] sm:$0xff] }
 0x140   : > { %v1829_v8 = vmin.f32 %v1797_v53, 6.0  ;;  %v1734_v58 = vadd.f32 %v1702_v50, %v1637_v52  ;;  %v1634_v11 = vadd.f32 %v1602_v45, %v1537_v38  ;;  %v1699_v2 = vmul.f32 %v3379_v17, %v3719_v24 }
 0x141   : > { %v1832_v19 = vmin.f32 %v1800_v22, 6.0  ;;  %v1443_v1 = vadd.f32 %v1411_v44, %v1346_v18  ;;  %v1152_v15 = vadd.f32 %v1120_v23, %v1055_v48  ;;  %v1315_v61 = vmul.f32 %v3809_v29, %v3348_v27  ;;  %v1478_v48 = vld [vmem:[#allocation2 + $0x1a7] sm:$0xff] }
 0x142   : > { %v959_v54 = vmul.f32 %v3735_v34, %v3321_v59  ;;  %v1606_v41 = vmul.f32 %v3369_v63, %v1573_v43  ;;  %v1024_v31 = vmul.f32 %v3742_v57, %v3323_v60  ;;  %v1121_v3 = vmul.f32 %v3801_v20, %v3330_v4 }
 0x143   : > { %2895 = vmatmul.msk.f32.vlgmr.msra.gmra.mxu3 %vm827_vm2, %v1832_v19  ;;  %2892 = vmatmul.msk.f32.gmra.mxu1 %vm827_vm2, %v1829_v8  ;;  %v1541_v5 = vadd.f32 %v1509_v0, %v1443_v1  ;;  %v1801_v24 = vmax.f32 %v1769_v35, 0.0  ;;  %v1798_v49 = vmax.f32 %v1766_v36, 0.0  ;;  %v1250_v32 = vadd.f32 %v1218_v7, %v1152_v15  ;;  %v1671_v36 = vld [vmem:[#allocation2 + $0x191] sm:$0xff] }
 0x144   : > { %v1412_v28 = vmul.f32 %v1669_v16, %v3353_v33  ;;  %v1770_v51 = vadd.f32 %v3819_v47, %v1734_v58  ;;  %v1731_v34 = vadd.f32 %v1699_v2, %v1634_v11  ;;  %v1056_v26 = vadd.f32 %v1024_v31, %v959_v54 }
 0x145   : > { %v1219_v37 = vmul.f32 %v3842_v9, %v3335_v12  ;;  %v1703_v46 = vmul.f32 %v3379_v17, %v1670_v30  ;;  %v1347_v6 = vadd.f32 %v1315_v61, %v1250_v32  ;;  %v1316_v57 = vmul.f32 %v1573_v43, %v3348_v27 }
 0x146   : > { %v960_v20 = vmul.f32 %v3789_v10, %v3321_v59  ;;  %v1638_v50 = vadd.f32 %v1606_v41, %v1541_v5  ;;  %v1153_v62 = vadd.f32 %v1121_v3, %v1056_v26  ;;  %v1025_v40 = vmul.f32 %v3809_v29, %v3323_v60  ;;  %v1575_v41 = vld [vmem:[#allocation2 + $0x1a8] sm:$0xff] }
 0x147   : > { %v1122_v21 = vmul.f32 %v1669_v16, %v3330_v4  ;;  %v1833_v13 = vmin.f32 %v1801_v24, 6.0  ;;  %v1444_v53 = vadd.f32 %v1412_v28, %v1347_v6  ;;  %v1510_v56 = vmul.f32 %v3357_v42, %v1477_v14  ;;  %v1479_v28 = vld [vmem:[#allocation2 + $0x1af] sm:$0xff] }
 0x148   : > { %v1830_v52 = vmin.f32 %v1798_v49, 6.0  ;;  %v1767_v38 = vadd.f32 %v3819_v47, %v1731_v34  ;;  %v1251_v44 = vadd.f32 %v1219_v37, %v1153_v62  ;;  %v1057_v25 = vadd.f32 %v1025_v40, %v960_v20 }
 0x149   : > { %v1802_v10 = vmax.f32 %v1770_v51, 0.0  ;;  %v1413_v22 = vmul.f32 %v1670_v30, %v3353_v33  ;;  %v1735_v29 = vadd.f32 %v1703_v46, %v1638_v50  ;;  %v1220_v55 = vmul.f32 %v1477_v14, %v3335_v12  ;;  %v1672_v46 = vld [vmem:[#allocation2 + $0x1a9] sm:$0xff] }
 0x14a   : > { %v1348_v35 = vadd.f32 %v1316_v57, %v1251_v44  ;;  %v1154_v16 = vadd.f32 %v1122_v21, %v1057_v25  ;;  %v1542_v45 = vadd.f32 %v1510_v56, %v1444_v53  ;;  %v1607_v18 = vmul.f32 %v3369_v63, %v1574_v39  ;;  %v1576_v53 = vld [vmem:[#allocation2 + $0x1b0] sm:$0xff] }
 0x14b   : > { %2896 = vmatmul.msk.f32.gmra.mxu3 %vm827_vm2, %v1833_v13  ;;  %2893 = vmatmul.msk.f32.gmra.mxu1 %vm827_vm2, %v1830_v52  ;;  %v961_v0 = vmul.f32 %v3842_v9, %v3321_v59  ;;  %v1026_v23 = vmul.f32 %v1573_v43, %v3323_v60  ;;  %v1799_v19 = vmax.f32 %v1767_v38, 0.0  ;;  %v1834_v7 = vmin.f32 %v1802_v10, 6.0 }
 0x14c   : > { %v1511_v8 = vmul.f32 %v3357_v42, %v1478_v48  ;;  %v1771_v58 = vadd.f32 %v3819_v47, %v1735_v29  ;;  %v1445_v11 = vadd.f32 %v1413_v22, %v1348_v35  ;;  %v1252_v1 = vadd.f32 %v1220_v55, %v1154_v16  ;;  %v1673_v22 = vld [vmem:[#allocation2 + $0x1b1] sm:$0xff] }
 0x14d   : > { %v1317_v2 = vmul.f32 %v1574_v39, %v3348_v27  ;;  %v1639_v61 = vadd.f32 %v1607_v18, %v1542_v45  ;;  %v1704_v54 = vmul.f32 %v3379_v17, %v1671_v36  ;;  %v1058_v9 = vadd.f32 %v1026_v23, %v961_v0  ;;  %v3921_v18 = vld [vmem:[#allocation2 + $0x1c7] sm:$0xff] }
 0x14e   : > { %v1123_v43 = vmul.f32 %v1670_v30, %v3330_v4  ;;  %v1831_v5 = vmin.f32 %v1799_v19, 6.0  ;;  %v1608_v31 = vmul.f32 %v3369_v63, %v1575_v41  ;;  %v1414_v3 = vmul.f32 %v1671_v36, %v3353_v33 }
 0x14f   : > { %v1803_v24 = vmax.f32 %v1771_v58, 0.0  ;;  %v1543_v49 = vadd.f32 %v1511_v8, %v1445_v11  ;;  %v1349_v32 = vadd.f32 %v1317_v2, %v1252_v1  ;;  %v1221_v51 = vmul.f32 %v1478_v48, %v3335_v12 }
 0x150   : > { %v3897_v15 = vpop.f32.mrf.mxu1  ;;  %v1736_v34 = vadd.f32 %v1704_v54, %v1639_v61  ;;  %v1155_v26 = vadd.f32 %v1123_v43, %v1058_v9  ;;  %v962_v30 = vmul.f32 %v1477_v14, %v3321_v59  ;;  %v1027_v37 = vmul.f32 %v1574_v39, %v3323_v60  ;;  %v1577_v61 = vld [vmem:[#allocation2 + $0x1c8] sm:$0xff] }
 0x151   : > { %v1705_v6 = vmul.f32 %v3379_v17, %v1672_v46  ;;  %v1512_v57 = vmul.f32 %v3357_v42, %v1479_v28  ;;  %v1835_v20 = vmin.f32 %v1803_v24, 6.0  ;;  %v1640_v50 = vadd.f32 %v1608_v31, %v1543_v49 }
 0x152   : > { %v1446_v62 = vadd.f32 %v1414_v3, %v1349_v32  ;;  %v1318_v40 = vmul.f32 %v1575_v41, %v3348_v27  ;;  %v1772_v13 = vadd.f32 %v3819_v47, %v1736_v34  ;;  %v1253_v56 = vadd.f32 %v1221_v51, %v1155_v26  ;;  %v3934_v3 = vld [vmem:[#allocation2 + $0x1cf] sm:$0xff]  ;;  %v3943_v26 = vld [vmem:[%s4446_s7] ss:$0 sm:$0xff] }
 0x153   : > { %2897 = vmatmul.msk.f32.gmra.mxu3 %vm827_vm2, %v1834_v7  ;;  %2894 = vmatmul.msk.f32.gmra.mxu1 %vm827_vm2, %v1831_v5  ;;  %v1059_v52 = vadd.f32 %v1027_v37, %v962_v30  ;;  %v1124_v14 = vmul.f32 %v1671_v36, %v3330_v4  ;;  %v1737_v38 = vadd.f32 %v1705_v6, %v1640_v50  ;;  %v1674_v34 = vld [vmem:[#allocation2 + $0x1c9] sm:$0xff] }
 0x154   : > { %v1544_v39 = vadd.f32 %v1512_v57, %v1446_v62  ;;  %v1609_v44 = vmul.f32 %v3369_v63, %v1576_v53  ;;  %v1415_v25 = vmul.f32 %v1672_v46, %v3353_v33  ;;  %v1804_v10 = vmax.f32 %v1772_v13, 0.0  ;;  %v1578_v50 = vld [vmem:[#allocation2 + $0x1d0] sm:$0xff] }
 0x155   : > { %v1350_v29 = vadd.f32 %v1318_v40, %v1253_v56  ;;  %v1156_v35 = vadd.f32 %v1124_v14, %v1059_v52  ;;  %v1222_v16 = vmul.f32 %v1479_v28, %v3335_v12  ;;  %v963_v55 = vmul.f32 %v1478_v48, %v3321_v59 }
 0x156   : > { %v1028_v45 = vmul.f32 %v1575_v41, %v3323_v60  ;;  %v1773_v0 = vadd.f32 %v3819_v47, %v1737_v38  ;;  %v1641_v23 = vadd.f32 %v1609_v44, %v1544_v39  ;;  %v1706_v19 = vmul.f32 %v3379_v17, %v1673_v22  ;;  %v2910_v38 = vld [vmem:[%s3124_s16 + $0x28] sm:$0xff] }
 0x157   : > { %v1513_v36 = vmul.f32 %v3357_v42, %v3921_v18  ;;  %v1836_v8 = vmin.f32 %v1804_v10, 6.0  ;;  %v1447_v58 = vadd.f32 %v1415_v25, %v1350_v29  ;;  %v1254_v11 = vadd.f32 %v1222_v16, %v1156_v35  ;;  %v1675_v25 = vld [vmem:[#allocation2 + $0x1d1] sm:$0xff]  ;;  %v3961_v16 = vld [vmem:[#allocation2 + $0x1e7] sm:$0xff] }
 0x158   : > { %v3911_v21 = vpop.f32.mrf.mxu1  ;;  %v1319_v1 = vmul.f32 %v1576_v53, %v3348_v27  ;;  %v1060_v48 = vadd.f32 %v1028_v45, %v963_v55  ;;  %v1125_v2 = vmul.f32 %v1672_v46, %v3330_v4  ;;  %v1805_v54 = vmax.f32 %v1773_v0, 0.0 }
 0x159   : > { %v1738_v9 = vadd.f32 %v1706_v19, %v1641_v23  ;;  %v1610_v43 = vmul.f32 %v3369_v63, %v1577_v61  ;;  %v1416_v5 = vmul.f32 %v1673_v22, %v3353_v33  ;;  %v1545_v41 = vadd.f32 %v1513_v36, %v1447_v58  ;;  %v2914_v23 = vld [vmem:[%s3124_s16 + $0x68] sm:$0xff] }
 0x15a   : > { %v1351_v31 = vadd.f32 %v1319_v1, %v1254_v11  ;;  %v964_v24 = vmul.f32 %v1479_v28, %v3321_v59  ;;  %v1029_v49 = vmul.f32 %v1576_v53, %v3323_v60  ;;  %v1157_v32 = vadd.f32 %v1125_v2, %v1060_v48 }
 0x15b   : > { %2898 = vmatmul.msk.f32.gmra.mxu3 %vm827_vm2, %v1835_v20  ;;  %v1223_v51 = vmul.f32 %v3921_v18, %v3335_v12  ;;  %v1837_v30 = vmin.f32 %v1805_v54, 6.0  ;;  %v1774_v37 = vadd.f32 %v3819_v47, %v1738_v9  ;;  %v1707_v46 = vmul.f32 %v3379_v17, %v1674_v34 }
 0x15c   : > { %v1514_v28 = vmul.f32 %v3357_v42, %v3934_v3  ;;  %v1642_v57 = vadd.f32 %v1610_v43, %v1545_v41  ;;  %v1448_v20 = vadd.f32 %v1416_v5, %v1351_v31  ;;  %v1061_v62 = vadd.f32 %v1029_v49, %v964_v24  ;;  %v2911_v41 = vld [vmem:[%s3124_s16 + $0x30] sm:$0xff]  ;;  %v3977_v49 = vld [vmem:[#allocation2 + $0x1e8] sm:$0xff] }
 0x15d   : > { %v1126_v40 = vmul.f32 %v1673_v22, %v3330_v4  ;;  %v1255_v13 = vadd.f32 %v1223_v51, %v1157_v32  ;;  %v1320_v53 = vmul.f32 %v1577_v61, %v3348_v27  ;;  %v1969_v56 = vadd.f32 %v3943_v26, %v3897_v15  ;;  %v3979_v32 = vld [vmem:[#allocation2 + $0x1e9] sm:$0xff] }
 0x15e   : > { %v1806_v52 = vmax.f32 %v1774_v37, 0.0  ;;  %v1611_v14 = vmul.f32 %v3369_v63, %v1578_v50  ;;  %v1739_v39 = vadd.f32 %v1707_v46, %v1642_v57  ;;  %v1546_v44 = vadd.f32 %v1514_v28, %v1448_v20  ;;  %v3985_v46 = vld [vmem:[#allocation2 + $0x1ef] sm:$0xff] }
 0x15f   : > { %v1158_v10 = vadd.f32 %v1126_v40, %v1061_v62  ;;  %v1224_v22 = vmul.f32 %v3934_v3, %v3335_v12  ;;  %v1352_v29 = vadd.f32 %v1320_v53, %v1255_v13  ;;  %v1417_v35 = vmul.f32 %v1674_v34, %v3353_v33 }
 0x160   : > { %v3927_v7 = vpop.f32.mrf.mxu1  ;;  %v2099_v55 = vadd.f32 %v2910_v38, %v1969_v56  ;;  %v1838_v45 = vmin.f32 %v1806_v52, 6.0  ;;  %v1708_v15 = vmul.f32 %v3379_v17, %v1675_v25  ;;  %v1775_v19 = vadd.f32 %v3819_v47, %v1739_v39  ;;  %v2915_v52 = vld [vmem:[%s3124_s16 + $0x70] sm:$0xff] }
 0x161   : > { %v1643_v36 = vadd.f32 %v1611_v14, %v1546_v44  ;;  %v1321_v58 = vmul.f32 %v1578_v50, %v3348_v27  ;;  %v1449_v1 = vadd.f32 %v1417_v35, %v1352_v29  ;;  %v1515_v48 = vmul.f32 %v3357_v42, %v3961_v16 }
 0x162   : > { %v965_v2 = vmul.f32 %v3921_v18, %v3321_v59  ;;  %v1030_v54 = vmul.f32 %v1577_v61, %v3323_v60  ;;  %v2134_v9 = vrot.slane %v2099_v55, 4  ;;  %v1972_v43 = vadd.f32 %v3943_v26, %v3911_v21 }
 0x163   : > { %2899 = vmatmul.msk.f32.gmra.mxu3 %vm827_vm2, %v1836_v8  ;;  %v1256_v8 = vadd.f32 %v1224_v22, %v1158_v10  ;;  %v1807_v31 = vmax.f32 %v1775_v19, 0.0  ;;  %v1740_v24 = vadd.f32 %v1708_v15, %v1643_v36  ;;  %v1547_v61 = vadd.f32 %v1515_v48, %v1449_v1 }
 0x164   : > { %v1062_v21 = vadd.f32 %v1030_v54, %v965_v2  ;;  %v1127_v28 = vmul.f32 %v1674_v34, %v3330_v4  ;;  %v966_v57 = vmul.f32 %v3934_v3, %v3321_v59  ;;  %v1031_v20 = vmul.f32 %v1578_v50, %v3323_v60  ;;  %v1484_v54 = vld [vmem:[#allocation2 + $0x207] sm:$0xff] }
 0x165   : > { %v1353_v51 = vadd.f32 %v1321_v58, %v1256_v8  ;;  %v2100_v62 = vadd.f32 %v2911_v41, %v1972_v43  ;;  %v1612_v13 = vmul.f32 %v3369_v63, %v3977_v49  ;;  %v1709_v53 = vmul.f32 %v3379_v17, %v3979_v32 }
 0x166   : > { %v1839_v14 = vmin.f32 %v1807_v31, 6.0  ;;  %v1776_v34 = vadd.f32 %v3819_v47, %v1740_v24  ;;  %v1516_v3 = vmul.f32 %v3357_v42, %v3985_v46  ;;  %v1225_v39 = vmul.f32 %v3961_v16, %v3335_v12 }
 0x167   : > { %v1644_v44 = vadd.f32 %v1612_v13, %v1547_v61  ;;  %v1159_v10 = vadd.f32 %v1127_v28, %v1062_v21  ;;  %v1063_v22 = vadd.f32 %v1031_v20, %v966_v57  ;;  %v1128_v29 = vmul.f32 %v1675_v25, %v3330_v4  ;;  %v1581_v21 = vld [vmem:[#allocation2 + $0x208] sm:$0xff]  ;;  %v2913_v57 = vld [vmem:[%s3124_s16 + $0x50] sm:$0xff] }
 0x168   : > { %v3949_v6 = vpop.f32.mrf.mxu1  ;;  %v2358_v35 = vrot.slane %v2100_v62, 4  ;;  %v1808_v15 = vmax.f32 %v1776_v34, 0.0  ;;  %v1226_v1 = vmul.f32 %v3985_v46, %v3335_v12  ;;  %v1322_v2 = vmul.f32 %v3977_v49, %v3348_v27  ;;  %v1678_v28 = vld [vmem:[#allocation2 + $0x209] sm:$0xff] }
 0x169   : > { %v1257_v58 = vadd.f32 %v1225_v39, %v1159_v10  ;;  %v1419_v31 = vmul.f32 %v3979_v32, %v3353_v33  ;;  %v1978_v61 = vadd.f32 %v3943_v26, %v3949_v6  ;;  %v1711_v6 = vmul.f32 %v3379_v17, %v1678_v28 }
 0x16a   : > { %v1840_v43 = vmin.f32 %v1808_v15, 6.0  ;;  %v1129_v10 = vmul.f32 %v3979_v32, %v3330_v4 }
 0x16b   : > { %2900 = vmatmul.msk.f32.gmra.mxu3 %vm827_vm2, %v1837_v30  ;;  %v1418_v30 = vmul.f32 %v1675_v25, %v3353_v33  ;;  %v1677_v25 = vld [vmem:[#allocation2 + $0x1f1] sm:$0xff] }
 0x16c   : > { %v1710_v24 = vmul.f32 %v3379_v17, %v1677_v25  ;;  %v1420_v39 = vmul.f32 %v1677_v25, %v3353_v33 }
 0x16d   : > { %v1450_v38 = vadd.f32 %v1418_v30, %v1353_v51  ;;  %v1354_v51 = vadd.f32 %v1322_v2, %v1257_v58  ;;  %v1517_v30 = vmul.f32 %v3357_v42, %v1484_v54 }
 0x16f   : > { %v1451_v13 = vadd.f32 %v1419_v31, %v1354_v51  ;;  %v1130_v31 = vmul.f32 %v1677_v25, %v3330_v4  ;;  %v1679_v51 = vld [vmem:[#allocation2 + $0x211] sm:$0xff] }
 0x170   : > { %v1980_v0 = vpop.f32.mrf.mxu1  ;;  %v1712_v4 = vmul.f32 %v3379_v17, %v1679_v51 }
 0x171   : > { %v1981_v11 = vadd.f32 %v3943_v26, %v1980_v0  ;;  %v1741_v0 = vadd.f32 %v1709_v53, %v1644_v44  ;;  %v1549_v34 = vadd.f32 %v1517_v30, %v1451_v13  ;;  %v1324_v30 = vmul.f32 %v1581_v21, %v3348_v27 }
 0x173   : > { %2901 = vmatmul.msk.f32.gmra.mxu3 %vm827_vm2, %v1838_v45  ;;  %v2103_v5 = vadd.f32 %v2914_v23, %v1981_v11  ;;  %v1580_v45 = vld [vmem:[#allocation2 + $0x1f0] sm:$0xff]  ;;  %v1548_v23 = vadd.f32 %v1516_v3, %v1450_v38  ;;  %v1160_v11 = vadd.f32 %v1128_v29, %v1063_v22  ;;  %v1614_v38 = vmul.f32 %v3369_v63, %v1581_v21 }
 0x174   : > { %v1613_v8 = vmul.f32 %v3369_v63, %v1580_v45  ;;  %v1323_v53 = vmul.f32 %v1580_v45, %v3348_v27  ;;  %v2917_v29 = vld [vmem:[%s3124_s16 + $0x90] sm:$0xff] }
 0x175   : > { %v2131_v37 = vrot.slane %v2103_v5, 4  ;;  %v3983_v18 = vsel %vm2132_vm3, %v2103_v5, %v2134_v9  ;;  %v1777_v5 = vadd.f32 %v3819_v47, %v1741_v0 }
 0x176   : > { %v1645_v41 = vadd.f32 %v1613_v8, %v1548_v23  ;;  %v1646_v23 = vadd.f32 %v1614_v38, %v1549_v34  ;;  %v1227_v8 = vmul.f32 %v1484_v54, %v3335_v12  ;;  %v1680_v34 = vld [vmem:[#allocation2 + $0x229] sm:$0xff] }
 0x177   : > { %v3992_v40 = vsel %vm2132_vm3, %v2131_v37, %v2099_v55  ;;  %v1258_v37 = vadd.f32 %v1226_v1, %v1160_v11  ;;  %v1809_v20 = vmax.f32 %v1777_v5, 0.0  ;;  %v1582_v11 = vld [vmem:[#allocation2 + $0x210] sm:$0xff] }
 0x178   : > { %v1983_v56 = vpop.f32.mrf.mxu1  ;;  %v1325_v38 = vmul.f32 %v1582_v11, %v3348_v27 }
 0x179   : > { %v1984_v50 = vadd.f32 %v3943_v26, %v1983_v56  ;;  %v1485_v56 = vld [vmem:[#allocation2 + $0x20f] sm:$0xff]  ;;  %v1355_v3 = vadd.f32 %v1323_v53, %v1258_v37  ;;  %v1421_v37 = vmul.f32 %v1678_v28, %v3353_v33 }
 0x17a   : > { %v1518_v44 = vmul.f32 %v3357_v42, %v1485_v56  ;;  %v1583_v28 = vld [vmem:[#allocation2 + $0x228] sm:$0xff] }
 0x17b   : > { %2902 = vmatmul.msk.f32.gmra.mxu3 %vm827_vm2, %v1839_v14  ;;  %v2104_v55 = vadd.f32 %v2915_v52, %v1984_v50  ;;  %v967_v52 = vmul.f32 %v3961_v16, %v3321_v59  ;;  %v1032_v14 = vmul.f32 %v3977_v49, %v3323_v60  ;;  %v2102_v50 = vadd.f32 %v2913_v57, %v1978_v61  ;;  %v1486_v61 = vld [vmem:[#allocation2 + $0x227] sm:$0xff] }
 0x17c   : > { %v1841_v16 = vmin.f32 %v1809_v20, 6.0  ;;  %v968_v49 = vmul.f32 %v3985_v46, %v3321_v59  ;;  %v1615_v46 = vmul.f32 %v3369_v63, %v1582_v11  ;;  %v1519_v25 = vmul.f32 %v3357_v42, %v1486_v61  ;;  %v2916_v11 = vld [vmem:[%s3124_s16 + $0x88] sm:$0xff] }
 0x17d   : > { %v2356_v19 = vrot.slane %v2104_v55, 4  ;;  %v4008_v36 = vsel %vm2132_vm3, %v2104_v55, %v2358_v35  ;;  %v1033_v55 = vmul.f32 %v1580_v45, %v3323_v60  ;;  %v1064_v0 = vadd.f32 %v1032_v14, %v967_v52 }
 0x17e   : > { %v2370_v32 = vrot.slane %v2102_v50, 4 }
 0x17f   : > { %v4014_v48 = vsel %vm2132_vm3, %v2356_v19, %v2100_v62  ;;  %v1742_v62 = vadd.f32 %v1710_v24, %v1645_v41  ;;  %v1452_v19 = vadd.f32 %v1420_v39, %v1355_v3  ;;  %v1161_v1 = vadd.f32 %v1129_v10, %v1064_v0 }
 0x180   : > { %v4018_v9 = vpop.f32.mrf.mxu1  ;;  %v1065_v41 = vadd.f32 %v1033_v55, %v968_v49  ;;  %v1228_v24 = vmul.f32 %v1485_v56, %v3335_v12  ;;  %v1616_v39 = vmul.f32 %v3369_v63, %v1583_v28  ;;  %v1584_v55 = vld [vmem:[#allocation2 + $0x230] sm:$0xff] }
 0x181   : > { %v1778_v35 = vadd.f32 %v3819_v47, %v1742_v62  ;;  %v1550_v5 = vadd.f32 %v1518_v44, %v1452_v19  ;;  %v1259_v45 = vadd.f32 %v1227_v8, %v1161_v1  ;;  %v1713_v44 = vmul.f32 %v3379_v17, %v1680_v34  ;;  %v2912_v8 = vld [vmem:[%s3124_s16 + $0x48] sm:$0xff] }
 0x182   : > { %v1162_v53 = vadd.f32 %v1130_v31, %v1065_v41  ;;  %v1975_v19 = vadd.f32 %v3943_v26, %v3927_v7  ;;  %v3028_v7 = vmov 1983009808  }
 0x183   : > { %2903 = vmatmul.msk.f32.gmra.mxu3 %vm827_vm2, %v1840_v43  ;;  %v1810_v2 = vmax.f32 %v1778_v35, 0.0  ;;  %v1743_v43 = vadd.f32 %v1711_v6, %v1646_v23  ;;  %v1647_v13 = vadd.f32 %v1615_v46, %v1550_v5  ;;  %v1356_v12 = vadd.f32 %v1324_v30, %v1259_v45  ;;  %v1487_v6 = vld [vmem:[#allocation2 + $0x22f] sm:$0xff] }
 0x184   : > { %v1260_v56 = vadd.f32 %v1228_v24, %v1162_v53  ;;  %v1520_v35 = vmul.f32 %v3357_v42, %v1487_v6  ;;  %v2101_v5 = vadd.f32 %v2912_v8, %v1975_v19  ;;  %v2137_v46 = vunpack.c.l.s4 %v3028_v7  ;;  %v2922_v6 = vld [vmem:[%s3124_s16 + $0xe8] sm:$0xff] }
 0x185   : > { %v1842_v20 = vmin.f32 %v1810_v2, 6.0  ;;  %v1779_v62 = vadd.f32 %v3819_v47, %v1743_v43  ;;  %v1744_v21 = vadd.f32 %v1712_v4, %v1647_v13  ;;  %v1453_v14 = vadd.f32 %v1421_v37, %v1356_v12 }
 0x186   : > { %v2146_v31 = vrot.slane %v2101_v5, 4 }
 0x187   : > { %v1811_v52 = vmax.f32 %v1779_v62, 0.0  ;;  %v1551_v3 = vadd.f32 %v1519_v25, %v1453_v14 }
 0x188   : > { %v1989_v22 = vpop.f32.mrf.mxu1 }
 0x189   : > { %v1990_v15 = vadd.f32 %v3943_v26, %v1989_v22  ;;  %v1843_v22 = vmin.f32 %v1811_v52, 6.0  ;;  %v1648_v27 = vadd.f32 %v1616_v39, %v1551_v3 }
 0x18b   : > { %2904 = vmatmul.msk.f32.gmra.mxu3 %vm827_vm2, %v1841_v16  ;;  %v2106_v58 = vadd.f32 %v2917_v29, %v1990_v15  ;;  %v1780_v29 = vadd.f32 %v3819_v47, %v1744_v21  ;;  %v1422_v16 = vmul.f32 %v1679_v51, %v3353_v33  ;;  %v1745_v0 = vadd.f32 %v1713_v44, %v1648_v27  ;;  %v1681_v33 = vld [vmem:[#allocation2 + $0x231] sm:$0xff] }
 0x18c   : > { %v1714_v41 = vmul.f32 %v3379_v17, %v1681_v33  ;;  %v4085_v51 = vunpack.c.0.s8 %v2137_v46  ;;  %v2919_v33 = vld [vmem:[%s3124_s16 + $0xb0] sm:$0xff] }
 0x18d   : > { %v2368_v59 = vrot.slane %v2106_v58, 4  ;;  %v4049_v60 = vsel %vm2132_vm3, %v2106_v58, %v2370_v32  ;;  %v1812_v15 = vmax.f32 %v1780_v29, 0.0  ;;  %v1617_v32 = vmul.f32 %v3369_v63, %v1584_v55 }
 0x18e   : > { %v1987_v58 = vadd.f32 %v3943_v26, %v4018_v9  ;;  %v1781_v2 = vadd.f32 %v3819_v47, %v1745_v0  ;;  %v2139_v62 = vperm.slane %v3992_v40, %v4085_v51  ;;  %v2143_v13 = vperm.slane %v3983_v18, %v4085_v51 }
 0x18f   : > { %v4055_v54 = vsel %vm2132_vm3, %v2368_v59, %v2102_v50  ;;  %v1357_v50 = vadd.f32 %v1325_v38, %v1260_v56  ;;  %v1844_v1 = vmin.f32 %v1812_v15, 6.0  ;;  %v2918_v38 = vld [vmem:[%s3124_s16 + $0xa8] sm:$0xff]  ;;  %v3029_v29 = vmov 1934713408  }
 0x190   : > { %v4059_v57 = vpop.f32.mrf.mxu1  ;;  %v2105_v59 = vadd.f32 %v2916_v11, %v1987_v58  ;;  %v1813_v45 = vmax.f32 %v1781_v2, 0.0  ;;  %v2182_v25 = vrot.slane %v2139_v62, 4  ;;  %v4119_v19 = vperm.slane %v4049_v60, %v4085_v51  ;;  %v2924_v58 = vld [vmem:[%s3124_s16 + $0x108] sm:$0xff]  ;;  %v2923_v2 = vld [vmem:[%s3124_s16 + $0xf0] sm:$0xff] }
 0x191   : > { %v1454_v49 = vadd.f32 %v1422_v16, %v1357_v50  ;;  %v1993_v18 = vadd.f32 %v3943_v26, %v4059_v57  ;;  %v2185_v16 = vunpack.c.l.s4 %v3029_v29 }
 0x192   : > { %v2144_v24 = vrot.slane %v2105_v59, 4  ;;  %v2147_v9 = vsel %vm2132_vm3, %v2105_v59, %v2146_v31  ;;  %v1845_v37 = vmin.f32 %v1813_v45, 6.0  ;;  %v2416_v7 = vrot.slane %v4119_v19, 4 }
 0x193   : > { %2905 = vmatmul.msk.f32.gmra.mxu3 %vm827_vm2, %v1842_v20  ;;  %v1552_v23 = vadd.f32 %v1520_v35, %v1454_v49  ;;  %v2155_v20 = vperm.slane %v2147_v9, %v4085_v51  ;;  %v2107_v50 = vadd.f32 %v2918_v38, %v1993_v18  ;;  %v2920_v35 = vld [vmem:[%s3124_s16 + $0xc8] sm:$0xff]  ;;  %v2375_v49 = vperm.slane %v4055_v54, %v4085_v51 }
 0x194   : > { %v2145_v17 = vsel %vm2132_vm3, %v2144_v24, %v2101_v5  ;;  %v4113_v0 = vunpack.c.0.s8 %v2185_v16  ;;  %v2921_v5 = vld [vmem:[%s3124_s16 + $0xd0] sm:$0xff]  ;;  %v2367_v16 = vperm.slane %v4008_v36, %v4085_v51 }
 0x195   : > { %v1649_v43 = vadd.f32 %v1617_v32, %v1552_v23  ;;  %v2151_v4 = vperm.slane %v2145_v17, %v4085_v51  ;;  %v2192_v12 = vrot.slane %v2155_v20, 4  ;;  %v2158_v27 = vrot.slane %v2107_v50, 4 }
 0x196   : > { %v2363_v23 = vperm.slane %v4014_v48, %v4085_v51 }
 0x197   : > { %v1746_v63 = vadd.f32 %v1714_v41, %v1649_v43  ;;  %v2193_v40 = vsel %vm2132_vm3, %v2192_v12, %v2143_v13  ;;  %v2183_v14 = vsel %vm2132_vm3, %v2151_v4, %v2182_v25  ;;  %v2180_v34 = vrot.slane %v2151_v4, 4 }
 0x198   : > { %v4068_v10 = vpop.f32.mrf.mxu1  ;;  %v2404_v43 = vrot.slane %v2375_v49, 4  ;;  %v2406_v59 = vrot.slane %v2363_v23, 4  ;;  %v2191_v17 = vperm.slane %v2183_v14, %v4113_v0 }
 0x199   : > { %v1782_v61 = vadd.f32 %v3819_v47, %v1746_v63  ;;  %v2194_v47 = vrot.slane %v2143_v13, 4  ;;  %v4106_v44 = vsel %vm2132_vm3, %v2180_v34, %v2139_v62  ;;  %v1996_v8 = vadd.f32 %v3943_v26, %v4068_v10 }
 0x19a   : > { %v4151_v4 = vsel %vm2132_vm3, %v2375_v49, %v2406_v59 }
 0x19b   : > { %2906 = vmatmul.msk.f32.gmra.mxu3 %vm827_vm2, %v1843_v22  ;;  %v1814_v53 = vmax.f32 %v1782_v61, 0.0  ;;  %v2195_v21 = vsel %vm2132_vm3, %v2155_v20, %v2194_v47  ;;  %v2108_v46 = vadd.f32 %v2919_v33, %v1996_v8  ;;  %v2417_v33 = vsel %vm2132_vm3, %v2416_v7, %v2367_v16 }
 0x19c   : > { %v4133_v10 = vperm.slane %v2195_v21, %v4113_v0 }
 0x19d   : > { %v1846_v52 = vmin.f32 %v1814_v53, 6.0  ;;  %v4148_v53 = vsel %vm2132_vm3, %v2404_v43, %v2363_v23  ;;  %v2382_v36 = vrot.slane %v2108_v46, 4 }
 0x19e   : > { %v2242_v13 = vrot.slane %v4133_v10, 4 }
 0x1a0   : > { %v1998_v42 = vpop.f32.mrf.mxu1 }
 0x1a1   : > { %v1999_v22 = vadd.f32 %v3943_v26, %v1998_v42 }
 0x1a3   : > { %2907 = vmatmul.msk.f32.gmra.mxu3 %vm827_vm2, %v1844_v1  ;;  %v2109_v55 = vadd.f32 %v2920_v35, %v1999_v22 }
 0x1a5   : > { %v2170_v60 = vrot.slane %v2109_v55, 4 }
 0x1a8   : > { %v2001_v30 = vpop.f32.mrf.mxu1 }
 0x1a9   : > { %v2002_v1 = vadd.f32 %v3943_v26, %v2001_v30  ;;  %v4141_v30 = vperm.slane %v2193_v40, %v4113_v0 }
 0x1ab   : > { %2908 = vmatmul.msk.f32.gmra.mxu3 %vm827_vm2, %v1845_v37  ;;  %v2110_v37 = vadd.f32 %v2921_v5, %v2002_v1 }
 0x1ad   : > { %v2394_v35 = vrot.slane %v2110_v37, 4 }
 0x1b0   : > { %v2004_v56 = vpop.f32.mrf.mxu1 }
 0x1b1   : > { %v2005_v28 = vadd.f32 %v3943_v26, %v2004_v56  ;;  %v2925_v56 = vld [vmem:[%s3124_s16 + $0x110] sm:$0xff] }
 0x1b3   : > { %2909 = vmatmul.msk.f32.gmra.mxu3 %vm827_vm2, %v1846_v52  ;;  %v2111_v39 = vadd.f32 %v2922_v6, %v2005_v28  ;;  %v2238_v28 = vrot.slane %v4141_v30, 4  ;;  %v2234_v6 = vrot.slane %v2191_v17, 4 }
 0x1b5   : > { %v2156_v57 = vrot.slane %v2111_v39, 4  ;;  %v2159_v15 = vsel %vm2132_vm3, %v2111_v39, %v2158_v27  ;;  %v4169_v27 = vperm.slane %v4106_v44, %v4113_v0 }
 0x1b6   : > { %v2167_v48 = vperm.slane %v2159_v15, %v4085_v51 }
 0x1b7   : > { %v2157_v54 = vsel %vm2132_vm3, %v2156_v57, %v2107_v50 }
 0x1b8   : > { %v2007_v3 = vpop.f32.mrf.mxu1  ;;  %v2163_v45 = vperm.slane %v2157_v54, %v4085_v51  ;;  %v2218_v61 = vrot.slane %v2167_v48, 4  ;;  %v2418_v54 = vrot.slane %v2367_v16, 4 }
 0x1b9   : > { %v2008_v11 = vadd.f32 %v3943_v26, %v2007_v3 }
 0x1ba   : > { %v2206_v21 = vrot.slane %v2163_v45, 4  ;;  %v2419_v59 = vsel %vm2132_vm3, %v4119_v19, %v2418_v54 }
 0x1bb   : > { %v2112_v63 = vadd.f32 %v2923_v2, %v2008_v11 }
 0x1bd   : > { %v2380_v40 = vrot.slane %v2112_v63, 4  ;;  %v2383_v1 = vsel %vm2132_vm3, %v2112_v63, %v2382_v36 }
 0x1be   : > { %v2391_v7 = vperm.slane %v2383_v1, %v4085_v51 }
 0x1bf   : > { %v2381_v49 = vsel %vm2132_vm3, %v2380_v40, %v2108_v46 }
 0x1c0   : > { %v2010_v32 = vpop.f32.mrf.mxu1  ;;  %v2387_v11 = vperm.slane %v2381_v49, %v4085_v51 }
 0x1c1   : > { %v2011_v42 = vadd.f32 %v3943_v26, %v2010_v32 }
 0x1c2   : > { %v2430_v46 = vrot.slane %v2387_v11, 4 }
 0x1c3   : > { %v2113_v41 = vadd.f32 %v2924_v58, %v2011_v42 }
 0x1c5   : > { %v2168_v31 = vrot.slane %v2113_v41, 4  ;;  %v2171_v24 = vsel %vm2132_vm3, %v2113_v41, %v2170_v60 }
 0x1c6   : > { %v4138_v9 = vpop.f32.mrf.mxu3  ;;  %v2179_v20 = vperm.slane %v2171_v24, %v4085_v51 }
 0x1c7   : > { %v2169_v62 = vsel %vm2132_vm3, %v2168_v31, %v2109_v55 }
 0x1c8   : > { %v2175_v12 = vperm.slane %v2169_v62, %v4085_v51  ;;  %v2216_v25 = vrot.slane %v2179_v20, 4  ;;  %v2013_v47 = vpop.f32.mrf.mxu1  ;;  %v2219_v52 = vsel %vm2132_vm3, %v2179_v20, %v2218_v61  ;;  %v2411_v20 = vperm.slane %v4148_v53, %v4113_v0 }
 0x1c9   : > { %v2014_v14 = vadd.f32 %v3943_v26, %v2013_v47  ;;  %v2227_v18 = vperm.slane %v2219_v52, %v4113_v0  ;;  %v2442_v62 = vrot.slane %v2391_v7, 4  ;;  %v2423_v53 = vperm.slane %v2417_v33, %v4113_v0 }
 0x1ca   : > { %v2217_v34 = vsel %vm2132_vm3, %v2216_v25, %v2167_v48  ;;  %v2207_v38 = vsel %vm2132_vm3, %v2175_v12, %v2206_v21  ;;  %v2204_v3 = vrot.slane %v2175_v12, 4  ;;  %v2230_v48 = vrot.slane %v4169_v27, 4 }
 0x1cb   : > { %v2114_v50 = vadd.f32 %v2925_v56, %v2014_v14  ;;  %v2243_v39 = vsel %vm2132_vm3, %v2227_v18, %v2242_v13  ;;  %v2223_v22 = vperm.slane %v2217_v34, %v4113_v0  ;;  %v2215_v29 = vperm.slane %v2207_v38, %v4113_v0 }
 0x1cc   : > { %2630 = vrot.lane.b32.xlu0 %v2243_v39, %s3030_s10  ;;  %v2205_v57 = vsel %vm2132_vm3, %v2204_v3, %v2163_v45  ;;  %v2240_v2 = vrot.slane %v2227_v18, 4  ;;  %v2454_v56 = vrot.slane %v2411_v20, 4  ;;  %v2462_v34 = vrot.slane %v2423_v53, 4 }
 0x1cd   : > { %v2392_v55 = vrot.slane %v2114_v50, 4  ;;  %v2239_v23 = vsel %vm2132_vm3, %v2223_v22, %v2238_v28  ;;  %v2235_v8 = vsel %vm2132_vm3, %v2215_v29, %v2234_v6  ;;  %v2395_v32 = vsel %vm2132_vm3, %v2114_v50, %v2394_v35  ;;  %v2927_v28 = vld [vmem:[%s3124_s16 + $0x130] sm:$0xff] }
 0x1ce   : > { %v4173_v15 = vpop.f32.mrf.mxu3  ;;  %2614 = vrot.lane.b32.xlu2 %v2239_v23, %s3031_s11  ;;  %2598 = vrot.lane.b32.xlu1 %v2235_v8, %s3032_s12  ;;  %v4182_v58 = vperm.slane %v2205_v57, %v4113_v0  ;;  %v2232_v43 = vrot.slane %v2215_v29, 4  ;;  %v2403_v60 = vperm.slane %v2395_v32, %v4085_v51  ;;  %v2241_v63 = vsel %vm2132_vm3, %v2240_v2, %v4133_v10  ;;  %v2931_v29 = vld [vmem:[%s3124_s16 + $0x170] sm:$0xff] }
 0x1cf   : > { %v2393_v44 = vsel %vm2132_vm3, %v2392_v55, %v2110_v37  ;;  %v2236_v61 = vrot.slane %v2223_v22, 4  ;;  %v2415_v10 = vperm.slane %v4151_v4, %v4113_v0  ;;  %v4231_v50 = vperm.slane %v2419_v59, %v4113_v0  ;;  %v2933_v2 = vld [vmem:[%s3124_s16 + $0x190] sm:$0xff] }
 0x1d0   : > { %v2399_v42 = vperm.slane %v2393_v44, %v4085_v51  ;;  %v2231_v41 = vsel %vm2132_vm3, %v4182_v58, %v2230_v48  ;;  %v2233_v31 = vsel %vm2132_vm3, %v2232_v43, %v2191_v17  ;;  %v2440_v24 = vrot.slane %v2403_v60, 4 }
 0x1d1   : > { %v2443_v25 = vsel %vm2132_vm3, %v2403_v60, %v2442_v62  ;;  %v2237_v47 = vsel %vm2132_vm3, %v2236_v61, %v4141_v30  ;;  %v2458_v52 = vrot.slane %v2415_v10, 4  ;;  %v2020_v30 = vadd.f32 %v3943_v26, %v4138_v9  ;;  %v2930_v61 = vld [vmem:[%s3124_s16 + $0x168] sm:$0xff] }
 0x1d2   : > { %v2428_v5 = vrot.slane %v2399_v42, 4  ;;  %v2431_v37 = vsel %vm2132_vm3, %v2399_v42, %v2430_v46  ;;  %v2441_v12 = vsel %vm2132_vm3, %v2440_v24, %v2391_v7  ;;  %v4221_v18 = vperm.slane %v2443_v25, %v4113_v0  ;;  %v2929_v42 = vld [vmem:[%s3124_s16 + $0x150] sm:$0xff]  ;;  %v2926_v62 = vld [vmem:[%s3124_s16 + $0x128] sm:$0xff] }
 0x1d3   : > { %v2439_v13 = vperm.slane %v2431_v37, %v4113_v0  ;;  %v2447_v14 = vperm.slane %v2441_v12, %v4113_v0  ;;  %v2116_v39 = vadd.f32 %v2927_v28, %v2020_v30  ;;  %v2928_v37 = vld [vmem:[%s3124_s16 + $0x148] sm:$0xff] }
 0x1d4   : > { %2582 = vrot.lane.b32.xlu0 %v2231_v41, %s3033_s13  ;;  %v2429_v19 = vsel %vm2132_vm3, %v2428_v5, %v2387_v11  ;;  %v2464_v6 = vrot.slane %v4221_v18, 4 }
 0x1d5   : > { %v2435_v17 = vperm.slane %v2429_v19, %v4113_v0  ;;  %v2459_v40 = vsel %vm2132_vm3, %v2439_v13, %v2458_v52  ;;  %v2460_v38 = vrot.slane %v2447_v14, 4  ;;  %v2463_v3 = vsel %vm2132_vm3, %v2447_v14, %v2462_v34 }
 0x1d6   : > { %v4196_v45 = vpop.f32.mrf.mxu3  ;;  %2622 = vrot.lane.b32.xlu1 %v2241_v63, %s3034_s14  ;;  %2590 = vrot.lane.b32.xlu2 %v2233_v31, %s3035_s15  ;;  %v2465_v9 = vsel %vm2132_vm3, %v2464_v6, %v4231_v50  ;;  %v2456_v57 = vrot.slane %v2439_v13, 4  ;;  %v2470_v49 = vrot.slane %v2116_v39, 4  ;;  %v2023_v31 = vadd.f32 %v3943_v26, %v4173_v15 }
 0x1d7   : > { %v2455_v21 = vsel %vm2132_vm3, %v2435_v17, %v2454_v56  ;;  %v2461_v16 = vsel %vm2132_vm3, %v2460_v38, %v2423_v53  ;;  %v2452_v23 = vrot.slane %v2435_v17, 4  ;;  %v2026_v11 = vadd.f32 %v3943_v26, %v4196_v45  ;;  %v2016_v45 = vpop.f32.mrf.mxu1 }
 0x1d8   : > { %v2457_v44 = vsel %vm2132_vm3, %v2456_v57, %v2415_v10  ;;  %v2017_v10 = vadd.f32 %v3943_v26, %v2016_v45  ;;  %v2117_v17 = vadd.f32 %v2928_v37, %v2023_v31  ;;  %v2940_v37 = vld [vmem:[%s3124_s16 + $0x208] sm:$0xff] }
 0x1d9   : > { %v2453_v54 = vsel %vm2132_vm3, %v2452_v23, %v2411_v20  ;;  %v2118_v1 = vadd.f32 %v2929_v42, %v2026_v11  ;;  %v2932_v20 = vld [vmem:[%s3124_s16 + $0x188] sm:$0xff] }
 0x1da   : > { %v2258_v56 = vrot.slane %v2117_v17, 4 }
 0x1db   : > { %v2482_v60 = vrot.slane %v2118_v1, 4 }
 0x1dc   : > { %2606 = vrot.lane.b32.xlu0 %v2237_v47, %s3036_s17  ;;  %v2115_v47 = vadd.f32 %v2926_v62, %v2017_v10 }
 0x1de   : > { %v2028_v4 = vpop.f32.mrf.mxu3  ;;  %2646 = vrot.lane.b32.xlu1 %v2455_v21, %s3037_s18  ;;  %2662 = vrot.lane.b32.xlu2 %v2459_v40, %s3038_s19  ;;  %v2246_v21 = vrot.slane %v2115_v47, 4 }
 0x1df   : > { %v2029_v24 = vadd.f32 %v3943_v26, %v2028_v4 }
 0x1e1   : > { %v2119_v13 = vadd.f32 %v2930_v61, %v2029_v24 }
 0x1e3   : > { %v2244_v52 = vrot.slane %v2119_v13, 4  ;;  %v2247_v40 = vsel %vm2132_vm3, %v2119_v13, %v2246_v21  ;;  %v2939_v13 = vld [vmem:[%s3124_s16 + $0x1f0] sm:$0xff] }
 0x1e4   : > { %2678 = vrot.lane.b32.xlu0 %v2463_v3, %s3039_s20  ;;  %v2255_v38 = vperm.slane %v2247_v40, %v4085_v51 }
 0x1e5   : > { %v2245_v4 = vsel %vm2132_vm3, %v2244_v52, %v2115_v47  ;;  %v2935_v52 = vld [vmem:[%s3124_s16 + $0x1b0] sm:$0xff] }
 0x1e6   : > { %v2031_v22 = vpop.f32.mrf.mxu3  ;;  %2670 = vrot.lane.b32.xlu1 %v2461_v16, %s3040_s21  ;;  %2686 = vrot.lane.b32.xlu2 %v2465_v9, %s3041_s22  ;;  %v2251_v34 = vperm.slane %v2245_v4, %v4085_v51 }
 0x1e7   : > { %v2032_v35 = vadd.f32 %v3943_v26, %v2031_v22  ;;  %v2306_v22 = vrot.slane %v2255_v38, 4 }
 0x1e9   : > { %v2120_v55 = vadd.f32 %v2931_v29, %v2032_v35 }
 0x1eb   : > { %v2468_v8 = vrot.slane %v2120_v55, 4  ;;  %v4242_v36 = vsel %vm2132_vm3, %v2120_v55, %v2470_v49 }
 0x1ec   : > { %2654 = vrot.lane.b32.xlu0 %v2457_v44, %s3042_s23  ;;  %v2934_v44 = vld [vmem:[%s3124_s16 + $0x1a8] sm:$0xff]  ;;  %v2479_v10 = vperm.slane %v4242_v36, %v4085_v51 }
 0x1ed   : > { %v2469_v32 = vsel %vm2132_vm3, %v2468_v8, %v2116_v39  ;;  %v2294_v39 = vrot.slane %v2251_v34, 4 }
 0x1ee   : > { %v2034_v33 = vpop.f32.mrf.mxu3  ;;  %2638 = vrot.lane.b32.xlu2 %v2453_v54, %s3043_s24  ;;  %v2475_v54 = vperm.slane %v2469_v32, %v4085_v51 }
 0x1ef   : > { %v2035_v19 = vadd.f32 %v3943_v26, %v2034_v33  ;;  %v2938_v33 = vld [vmem:[%s3124_s16 + $0x1e8] sm:$0xff] }
 0x1f1   : > { %v2121_v12 = vadd.f32 %v2932_v20, %v2035_v19 }
 0x1f3   : > { %v2256_v53 = vrot.slane %v2121_v12, 4  ;;  %v2259_v15 = vsel %vm2132_vm3, %v2121_v12, %v2258_v56 }
 0x1f4   : > { %v2267_v30 = vperm.slane %v2259_v15, %v4085_v51 }
 0x1f5   : > { %v2257_v14 = vsel %vm2132_vm3, %v2256_v53, %v2117_v17  ;;  %v2937_v53 = vld [vmem:[%s3124_s16 + $0x1d0] sm:$0xff] }
 0x1f6   : > { %v2037_v48 = vpop.f32.mrf.mxu3  ;;  %v2263_v6 = vperm.slane %v2257_v14, %v4085_v51  ;;  %v2304_v3 = vrot.slane %v2267_v30, 4  ;;  %v2307_v9 = vsel %vm2132_vm3, %v2267_v30, %v2306_v22  ;;  %v2530_v14 = vrot.slane %v2479_v10, 4 }
 0x1f7   : > { %v2038_v43 = vadd.f32 %v3943_v26, %v2037_v48  ;;  %v4309_v56 = vperm.slane %v2307_v9, %v4113_v0  ;;  %v2941_v9 = vld [vmem:[%s3124_s16 + $0x210] sm:$0xff] }
 0x1f8   : > { %v2292_v29 = vrot.slane %v2263_v6, 4  ;;  %v2295_v35 = vsel %vm2132_vm3, %v2263_v6, %v2294_v39  ;;  %v2305_v57 = vsel %vm2132_vm3, %v2304_v3, %v2255_v38 }
 0x1f9   : > { %v2122_v5 = vadd.f32 %v2933_v2, %v2038_v43  ;;  %v2518_v43 = vrot.slane %v2475_v54, 4  ;;  %v2303_v40 = vperm.slane %v2295_v35, %v4113_v0  ;;  %v2354_v39 = vrot.slane %v4309_v56, 4 }
 0x1fa   : > { %v4279_v49 = vsel %vm2132_vm3, %v2292_v29, %v2251_v34  ;;  %v4321_v34 = vperm.slane %v2305_v57, %v4113_v0 }
 0x1fb   : > { %v2480_v41 = vrot.slane %v2122_v5, 4  ;;  %v2483_v59 = vsel %vm2132_vm3, %v2122_v5, %v2482_v60  ;;  %v2936_v5 = vld [vmem:[%s3124_s16 + $0x1c8] sm:$0xff]  ;;  %s3044_s16 = smov 120  }
 0x1fc   : > { %v2491_v60 = vperm.slane %v2483_v59, %v4085_v51 }
 0x1fd   : > { %v2481_v7 = vsel %vm2132_vm3, %v2480_v41, %v2118_v1 }
 0x1fe   : > { %v2040_v46 = vpop.f32.mrf.mxu3  ;;  %v2487_v55 = vperm.slane %v2481_v7, %v4085_v51  ;;  %v2528_v24 = vrot.slane %v2491_v60, 4 }
 0x1ff   : > { %v2041_v23 = vadd.f32 %v3943_v26, %v2040_v46 }
 0x200   : > { %v2516_v11 = vrot.slane %v2487_v55, 4  ;;  %v4294_v45 = vsel %vm2132_vm3, %v2487_v55, %v2518_v43  ;;  %v4315_v15 = vsel %vm2132_vm3, %v2528_v24, %v2479_v10 }
 0x201   : > { %v2123_v1 = vadd.f32 %v2934_v44, %v2041_v23  ;;  %v2346_v44 = vrot.slane %v2303_v40, 4 }
 0x202   : > { %v4291_v41 = vsel %vm2132_vm3, %v2516_v11, %v2475_v54  ;;  %v2350_v11 = vrot.slane %v4321_v34, 4 }
 0x203   : > { %v2270_v7 = vrot.slane %v2123_v1, 4 }
 0x206   : > { %v4256_v63 = vpop.f32.mrf.mxu3 }
 0x207   : > { %v2044_v62 = vadd.f32 %v3943_v26, %v4256_v63 }
 0x209   : > { %v2124_v38 = vadd.f32 %v2935_v52, %v2044_v62 }
 0x20e   : > { %v2046_v25 = vpop.f32.mrf.mxu3 }
 0x20f   : > { %v2047_v2 = vadd.f32 %v3943_v26, %v2046_v25 }
 0x211   : > { %v2125_v32 = vadd.f32 %v2936_v5, %v2047_v2 }
 0x213   : > { %v2282_v12 = vrot.slane %v2125_v32, 4 }
 0x216   : > { %v2049_v28 = vpop.f32.mrf.mxu3 }
 0x217   : > { %v2050_v25 = vadd.f32 %v3943_v26, %v2049_v28 }
 0x219   : > { %v2126_v6 = vadd.f32 %v2937_v53, %v2050_v25  ;;  %v2494_v25 = vrot.slane %v2124_v38, 4 }
 0x21b   : > { %v2506_v5 = vrot.slane %v2126_v6, 4 }
 0x21e   : > { %v2052_v16 = vpop.f32.mrf.mxu3 }
 0x21f   : > { %v2053_v8 = vadd.f32 %v3943_v26, %v2052_v16 }
 0x221   : > { %v2127_v48 = vadd.f32 %v2938_v33, %v2053_v8 }
 0x223   : > { %v2268_v46 = vrot.slane %v2127_v48, 4  ;;  %v2271_v31 = vsel %vm2132_vm3, %v2127_v48, %v2270_v7 }
 0x224   : > { %v2279_v17 = vperm.slane %v2271_v31, %v4085_v51 }
 0x225   : > { %v2269_v59 = vsel %vm2132_vm3, %v2268_v46, %v2123_v1  ;;  %v4343_v46 = vsel %vm2132_vm3, %v2491_v60, %v2530_v14  ;;  %v2228_v14 = vrot.slane %v4182_v58, 4 }
 0x226   : > { %v2055_v42 = vpop.f32.mrf.mxu3  ;;  %v2275_v21 = vperm.slane %v2269_v59, %v4085_v51  ;;  %v2330_v30 = vrot.slane %v2279_v17, 4 }
 0x227   : > { %v2056_v61 = vadd.f32 %v3943_v26, %v2055_v42 }
 0x228   : > { %v2318_v55 = vrot.slane %v2275_v21, 4 }
 0x229   : > { %v2128_v36 = vadd.f32 %v2939_v13, %v2056_v61 }
 0x22b   : > { %v2492_v23 = vrot.slane %v2128_v36, 4 }
 0x22e   : > { %v2058_v19 = vpop.f32.mrf.mxu3 }
 0x22f   : > { %v2059_v20 = vadd.f32 %v3943_v26, %v2058_v19 }
 0x231   : > { %v2129_v47 = vadd.f32 %v2940_v37, %v2059_v20 }
 0x233   : > { %v2280_v63 = vrot.slane %v2129_v47, 4  ;;  %v2283_v4 = vsel %vm2132_vm3, %v2129_v47, %v2282_v12  ;;  %v2615_v47 = vpop.permute.xlu2 %2614 }
 0x234   : > { %v2291_v28 = vperm.slane %v2283_v4, %v4085_v51 }
 0x235   : > { %v2281_v3 = vsel %vm2132_vm3, %v2280_v63, %v2125_v32  ;;  %v2493_v32 = vsel %vm2132_vm3, %v2492_v23, %v2124_v38 }
 0x236   : > { %v2287_v22 = vperm.slane %v2281_v3, %v4085_v51  ;;  %v2328_v29 = vrot.slane %v2291_v28, 4  ;;  %v2061_v16 = vpop.f32.mrf.mxu3  ;;  %v2331_v35 = vsel %vm2132_vm3, %v2291_v28, %v2330_v30  ;;  %v2499_v60 = vperm.slane %v2493_v32, %v4085_v51 }
 0x237   : > { %v2062_v8 = vadd.f32 %v3943_v26, %v2061_v16  ;;  %v2339_v57 = vperm.slane %v2331_v35, %v4113_v0  ;;  %v4339_v26 = vperm.slane %v4279_v49, %v4113_v0 }
 0x238   : > { %v2319_v33 = vsel %vm2132_vm3, %v2287_v22, %v2318_v55  ;;  %v2329_v54 = vsel %vm2132_vm3, %v2328_v29, %v2279_v17  ;;  %v2316_v42 = vrot.slane %v2287_v22, 4  ;;  %v2542_v53 = vrot.slane %v2499_v60, 4 }
 0x239   : > { %v2130_v1 = vadd.f32 %v2941_v9, %v2062_v8  ;;  %v2355_v48 = vsel %vm2132_vm3, %v2339_v57, %v2354_v39  ;;  %v2327_v2 = vperm.slane %v2319_v33, %v4113_v0  ;;  %v2335_v43 = vperm.slane %v2329_v54, %v4113_v0 }
 0x23a   : > { %2632 = vrot.lane.b32.xlu1 %v2355_v48, %s3030_s10  ;;  %v2317_v7 = vsel %vm2132_vm3, %v2316_v42, %v2275_v21  ;;  %v2342_v10 = vrot.slane %v4339_v26, 4  ;;  %v2352_v62 = vrot.slane %v2339_v57, 4  ;;  %v2495_v21 = vsel %vm2132_vm3, %v2128_v36, %v2494_v25  ;;  %s327_s10 = scalar_lea.vmem %s4447_s8, %s2944_s25 }
 0x23b   : > { %v2504_v31 = vrot.slane %v2130_v1, 4  ;;  %v2347_v24 = vsel %vm2132_vm3, %v2327_v2, %v2346_v44  ;;  %v2351_v19 = vsel %vm2132_vm3, %v2335_v43, %v2350_v11  ;;  %v2507_v49 = vsel %vm2132_vm3, %v2130_v1, %v2506_v5 }
 0x23c   : > { %2600 = vrot.lane.b32.xlu2 %v2347_v24, %s3032_s12  ;;  %2616 = vrot.lane.b32.xlu0 %v2351_v19, %s3031_s11  ;;  %v4353_v59 = vperm.slane %v2317_v7, %v4113_v0  ;;  %v2344_v17 = vrot.slane %v2327_v2, 4  ;;  %v2515_v13 = vperm.slane %v2507_v49, %v4085_v51  ;;  %v2353_v63 = vsel %vm2132_vm3, %v2352_v62, %v4309_v56 }
 0x23d   : > { %v2505_v37 = vsel %vm2132_vm3, %v2504_v31, %v2126_v6  ;;  %v2348_v6 = vrot.slane %v2335_v43, 4  ;;  %v2523_v36 = vperm.slane %v4291_v41, %v4113_v0  ;;  %v2527_v56 = vperm.slane %v4294_v45, %v4113_v0 }
 0x23e   : > { %v2511_v61 = vperm.slane %v2505_v37, %v4085_v51  ;;  %v2631_v20 = vpop.permute.xlu0 %2630  ;;  %v2343_v52 = vsel %vm2132_vm3, %v4353_v59, %v2342_v10  ;;  %v2345_v4 = vsel %vm2132_vm3, %v2344_v17, %v2303_v40  ;;  %v2552_v30 = vrot.slane %v2515_v13, 4 }
 0x23f   : > { %v2503_v40 = vperm.slane %v2495_v21, %v4085_v51  ;;  %v2229_v29 = vsel %vm2132_vm3, %v2228_v14, %v4169_v27  ;;  %v2349_v41 = vsel %vm2132_vm3, %v2348_v6, %v4321_v34  ;;  %v2566_v45 = vrot.slane %v2523_v36, 4  ;;  %v2591_v51 = vpop.permute.xlu2 %2590 }
 0x240   : > { %v2540_v12 = vrot.slane %v2511_v61, 4  ;;  %v2543_v38 = vsel %vm2132_vm3, %v2511_v61, %v2542_v53  ;;  %v2599_v3 = vpop.permute.xlu1 %2598  ;;  %v2570_v35 = vrot.slane %v2527_v56, 4  ;;  %v2535_v8 = vperm.slane %v4315_v15, %v4113_v0 }
 0x241   : > { %v2551_v22 = vperm.slane %v2543_v38, %v4113_v0  ;;  %v2553_v16 = vsel %vm2132_vm3, %v2552_v30, %v2503_v40  ;;  %v2554_v34 = vrot.slane %v2503_v40, 4  ;;  %v2539_v37 = vperm.slane %v4343_v46, %v4113_v0 }
 0x242   : > { %2584 = vrot.lane.b32.xlu1 %v2343_v52, %s3033_s13  ;;  %v2541_v28 = vsel %vm2132_vm3, %v2540_v12, %v2499_v60  ;;  %v2559_v27 = vperm.slane %v2553_v16, %v4113_v0  ;;  %v2574_v54 = vrot.slane %v2535_v8, 4  ;;  %v2466_v62 = vrot.slane %v4231_v50, 4 }
 0x243   : > { %v2547_v39 = vperm.slane %v2541_v28, %v4113_v0  ;;  %v2571_v23 = vsel %vm2132_vm3, %v2551_v22, %v2570_v35  ;;  %v2555_v1 = vsel %vm2132_vm3, %v2515_v13, %v2554_v34  ;;  %v2568_v19 = vrot.slane %v2551_v22, 4 }
 0x244   : > { %2624 = vrot.lane.b32.xlu2 %v2353_v63, %s3034_s14  ;;  %2592 = vrot.lane.b32.xlu0 %v2345_v4, %s3035_s15  ;;  %v2572_v11 = vrot.slane %v2559_v27, 4  ;;  %v2575_v43 = vsel %vm2132_vm3, %v2559_v27, %v2574_v54  ;;  %v2563_v24 = vperm.slane %v2555_v1, %v4113_v0  ;;  %v2578_v61 = vrot.slane %v2539_v37, 4 }
 0x245   : > { %v2567_v55 = vsel %vm2132_vm3, %v2547_v39, %v2566_v45  ;;  %v2564_v42 = vrot.slane %v2547_v39, 4  ;;  %v2569_v60 = vsel %vm2132_vm3, %v2568_v19, %v2527_v56  ;;  %v2467_v17 = vsel %vm2132_vm3, %v4221_v18, %v2466_v62 }
 0x246   : > { %v2583_v58 = vpop.permute.xlu0 %2582  ;;  %v2573_v32 = vsel %vm2132_vm3, %v2572_v11, %v2535_v8  ;;  %v2576_v49 = vrot.slane %v2563_v24, 4  ;;  %v2340_v4 = vrot.slane %v4353_v59, 4 }
 0x247   : > { %v2700_v9 = vsel %vm373_vm0, %v2229_v29, %v2583_v58  ;;  %v2565_v31 = vsel %vm2132_vm3, %v2564_v42, %v2523_v36  ;;  %v2663_v0 = vpop.permute.xlu2 %2662 }
 0x248   : > { %v2703_v57 = vsel %vm2702_vm4, %v2700_v9, %v2591_v51  ;;  %v2623_v48 = vpop.permute.xlu1 %2622  ;;  %v2577_v10 = vsel %vm2132_vm3, %v2576_v49, %v2539_v37  ;;  %v2341_v50 = vsel %vm2132_vm3, %v2340_v4, %v4339_v26 }
 0x249   : > { %v2706_v33 = vsel %vm2705_vm5, %v2703_v57, %v2599_v3 }
 0x24a   : > { %2608 = vrot.lane.b32.xlu1 %v2349_v41, %s3036_s17 }
 0x24c   : > { %2648 = vrot.lane.b32.xlu2 %v2567_v55, %s3037_s18  ;;  %2664 = vrot.lane.b32.xlu0 %v2571_v23, %s3038_s19 }
 0x24e   : > { %v2607_v44 = vpop.permute.xlu0 %2606 }
 0x24f   : > { %v2708_v15 = vsel %vm827_vm2, %v2706_v33, %v2607_v44  ;;  %v2687_v46 = vpop.permute.xlu2 %2686 }
 0x250   : > { %v2711_v2 = vsel %vm2710_vm6, %v2708_v15, %v2615_v47  ;;  %v2647_v13 = vpop.permute.xlu1 %2646 }
 0x251   : > { %v2714_v5 = vsel %vm2713_vm7, %v2711_v2, %v2623_v48 }
 0x252   : > { %2680 = vrot.lane.b32.xlu1 %v2575_v43, %s3039_s20  ;;  %v2717_v7 = vsel %vm2716_vm8, %v2714_v5, %v2631_v20  ;;  %v2579_v20 = vsel %vm2132_vm3, %v2563_v24, %v2578_v61 }
 0x254   : > { %2672 = vrot.lane.b32.xlu2 %v2573_v32, %s3040_s21  ;;  %2640 = vrot.lane.b32.xlu0 %v2565_v31, %s3043_s24 }
 0x256   : > { %v2679_v12 = vpop.permute.xlu0 %2678 }
 0x257   : > { %v2639_v25 = vpop.permute.xlu2 %2638 }
 0x258   : > { %v2671_v47 = vpop.permute.xlu1 %2670  ;;  %v2720_v58 = vsel %vm2719_vm9, %v2717_v7, %v2639_v25 }
 0x259   : > { %v2723_v29 = vsel %vm2722_vm10, %v2720_v58, %v2647_v13 }
 0x25a   : > { %2656 = vrot.lane.b32.xlu1 %v2569_v60, %s3042_s23 }
 0x25c   : > { %2696 = vrot.lane.b32.xlu2 %v2579_v20, %s3044_s16  ;;  %2688 = vrot.lane.b32.xlu0 %v2577_v10, %s3041_s22 }
 0x25e   : > { %v2655_v52 = vpop.permute.xlu0 %2654 }
 0x25f   : > { %v2726_v9 = vsel %vm2725_vm11, %v2723_v29, %v2655_v52 }
 0x260   : > { %v2729_v35 = vsel %vm2728_vm12, %v2726_v9, %v2663_v0 }
 0x261   : > { %v2732_v8 = vsel %vm2731_vm13, %v2729_v35, %v2671_v47 }
 0x262   : > { %2694 = vrot.lane.b32.xlu1 %v2467_v17, %s3044_s16  ;;  %v2735_v11 = vsel %vm2734_vm14, %v2732_v8, %v2679_v12 }
 0x296   : > { %v2601_v53 = vpop.permute.xlu2 %2600 }
 0x29e   : > { %v2625_v14 = vpop.permute.xlu2 %2624 }
 0x2a6   : > { %v2649_v36 = vpop.permute.xlu2 %2648 }
 0x2ac   : > { %v2633_v21 = vpop.permute.xlu1 %2632 }
 0x2ae   : > { %v2617_v63 = vpop.permute.xlu0 %2616  ;;  %v2673_v16 = vpop.permute.xlu2 %2672 }
 0x2b4   : > { %v2585_v30 = vpop.permute.xlu1 %2584 }
 0x2b5   : > { %v2701_v18 = vsel %vm373_vm0, %v2341_v50, %v2585_v30  ;;  %vm2737_vm0 = vcmask 916480  }
 0x2b6   : > { %v2593_v28 = vpop.permute.xlu0 %2592  ;;  %v2697_v33 = vpop.permute.xlu2 %2696  ;;  %v2738_v1 = vsel %vm2737_vm0, %v2735_v11, %v2687_v46 }
 0x2b7   : > { %v2704_v38 = vsel %vm2702_vm4, %v2701_v18, %v2593_v28 }
 0x2b8   : > { %v2707_v56 = vsel %vm2705_vm5, %v2704_v38, %v2601_v53 }
 0x2bc   : > { %v2609_v6 = vpop.permute.xlu1 %2608 }
 0x2bd   : > { %v2709_v3 = vsel %vm827_vm2, %v2707_v56, %v2609_v6 }
 0x2be   : > { %v2665_v40 = vpop.permute.xlu0 %2664  ;;  %v2712_v59 = vsel %vm2710_vm6, %v2709_v3, %v2617_v63 }
 0x2bf   : > { %v2715_v26 = vsel %vm2713_vm7, %v2712_v59, %v2625_v14 }
 0x2c0   : > { %v2718_v41 = vsel %vm2716_vm8, %v2715_v26, %v2633_v21 }
 0x2c4   : > { %v2681_v39 = vpop.permute.xlu1 %2680 }
 0x2c6   : > { %v2641_v22 = vpop.permute.xlu0 %2640 }
 0x2c7   : > { %v2721_v45 = vsel %vm2719_vm9, %v2718_v41, %v2641_v22 }
 0x2c8   : > { %v2724_v55 = vsel %vm2722_vm10, %v2721_v45, %v2649_v36 }
 0x2cc   : > { %v2657_v51 = vpop.permute.xlu1 %2656 }
 0x2cd   : > { %v2727_v23 = vsel %vm2725_vm11, %v2724_v55, %v2657_v51 }
 0x2ce   : > { %v2730_v27 = vsel %vm2728_vm12, %v2727_v23, %v2665_v40  ;;  %v2689_v44 = vpop.permute.xlu0 %2688 }
 0x2cf   : > { %v2733_v57 = vsel %vm2731_vm13, %v2730_v27, %v2673_v16 }
 0x2d0   : > { %v2736_v34 = vsel %vm2734_vm14, %v2733_v57, %v2681_v39 }
 0x2d1   : > { %v2739_v54 = vsel %vm2737_vm0, %v2736_v34, %v2689_v44 }
 0x2d2   : > { %v2742_v42 = vsel %vm2740_vm15, %v2739_v54, %v2697_v33 }
 0x2d3   : > { %2744 = vst [vmem:[%s327_s10 + $0x8] sm:$0xff] %v2742_v42 }
 0x2d4   : > { %v2695_v15 = vpop.permute.xlu1 %2694 }
 0x2d5   : > { %v2741_v48 = vsel %vm2740_vm15, %v2738_v1, %v2695_v15 }
 0x2d6   : > { %2743 = vst [vmem:[%s327_s10] sm:$0xff] %v2741_v48 }
 0x2d7 PF: > { %s18_s29 = sadd.s32 1, %s3024_s29   ;;  %s4460_s27 = smov %s3020_s28 }
 0x2d8   : > { %p15_p5 = scmp.ge.s32.totalorder %s18_s29, 4   ;;  %s4461_s28 = smov %s4463_s30 }
 0x2da   :  { %17 = sbr.rel (!%p15_p5) target bundleno = 2 (0x2), region = 87 }

</bundles_post_ra>
